<compile_context>
chip_gen: v5e
topology: v5e:2x2
jax: 0.10.0
libtpu: 0.0.40
codegen_flags: <defaults>
</compile_context>

<pallas_src>
import functools

import jax
import jax.numpy as jnp
from jax import lax
from jax.experimental import pallas as pl
from jax.experimental.pallas import tpu as pltpu


def _round_up(x, m):
    return (x + m - 1) // m * m


# ---------------------------------------------------------------------------
# Fused Pallas kernel: all GRU layers + decoder
# ---------------------------------------------------------------------------
def fused_gru_kernel(gi0_ref, len_ref, wih_ref, whh_ref, bgi_ref, bhn_ref,
                     wdec_ref, bdec_ref, y_ref, gi_ref, buf_ref, *,
                     num_layers, feat, seq_len):
    """
    gi0_ref:  (seq_len, B, 3F)  bf16  precomputed layer-0 input projection (bias folded)
    len_ref:  (B, 1)            i32   valid lengths (0 for padded batch rows)
    wih_ref:  (L-1|1, F, 3F)    bf16  input->hidden weights, layers 1..L-1 (pre-T, gate blocks)
    whh_ref:  (L, F, 3F)        bf16  hidden->hidden weights, all layers
    bgi_ref:  (L-1|1, 1, 3F)    f32   gi bias for layers>=1 (b_ih; + b_hh folded for r,z)
    bhn_ref:  (L, 1, F)         f32   n-gate b_hh per layer (added inside r*(...))
    wdec_ref: (F, OUT_P)        bf16  pre-transposed decoder weight
    bdec_ref: (1, OUT_P)        f32
    y_ref:    (B, OUT_P)        f32   output (lane-dense)
    gi_ref:   (seq_len|1, B, 3F) bf16 VMEM scratch: hoisted input projection (layers>=1)
    buf_ref:  (seq_len|1, B, F)  bf16 VMEM scratch: single inter-layer activation buffer
    """
    F = feat
    B = gi0_ref.shape[1]

    lens = len_ref[...]                                   # (B, 1) int32, loaded once

    h_last = None
    for l in range(num_layers):
        is_first = (l == 0)
        is_last = (l == num_layers - 1)

        if is_first:
            gi_src = gi0_ref                               # layer-0 projection precomputed
        else:
            # Hoisted input projection: one (seq*B, F) @ (F, 3F) bf16 matmul, f32 acc.
            # buf_ref is dead after this read, so the layer can write back into it.
            xin = buf_ref[...].reshape(seq_len * B, F)     # bf16
            gi_all = jnp.dot(xin, wih_ref[l - 1],
                             preferred_element_type=jnp.float32) + bgi_ref[l - 1]
            gi_ref[...] = gi_all.reshape(seq_len, B, 3 * F).astype(gi_ref.dtype)
            gi_src = gi_ref

        whh_l = whh_ref[l]                                 # (F, 3F) bf16, loaded once
        bhn_l = jnp.broadcast_to(bhn_ref[l], (B, F))       # hoisted broadcast (f32)

        def step(t, h, gi_src=gi_src, whh_l=whh_l, bhn_l=bhn_l, is_last=is_last):
            gi = gi_src[t].astype(jnp.float32)             # (B, 3F)
            gh = jnp.dot(h.astype(jnp.bfloat16), whh_l,
                         preferred_element_type=jnp.float32)   # (B, 3F) f32 acc
            r = jax.nn.sigmoid(gi[:, 0:F] + gh[:, 0:F])
            z = jax.nn.sigmoid(gi[:, F:2 * F] + gh[:, F:2 * F])
            n = jnp.tanh(gi[:, 2 * F:3 * F] + r * (gh[:, 2 * F:3 * F] + bhn_l))
            h_new = (1.0 - z) * n + z * h
            # pack_padded_sequence semantics: freeze rows once t >= x_len[b].
            h_next = jnp.where(lens > t, h_new, h)
            if not is_last:                                # last layer: no per-t store
                buf_ref[t] = h_next.astype(buf_ref.dtype)
            return h_next

        h_last = lax.fori_loop(0, seq_len, step,
                               jnp.zeros((B, F), jnp.float32),
                               unroll=min(8, seq_len))

    # Fused decoder on hn[-1]; output is 128-lane dense (sliced in the wrapper).
    y_ref[...] = (jnp.dot(h_last.astype(jnp.bfloat16), wdec_ref[...],
                          preferred_element_type=jnp.float32) + bdec_ref[...])


# ---------------------------------------------------------------------------
# Wrapper: weight layout / tiling / pallas_call
# ---------------------------------------------------------------------------
def travel_time_estimator(x, x_len, params, num_layers, hidden_dim,
                          embed_dim, out_dim):
    """Mirrors TravelTimeEstimator.forward.

    x:     (batch, seq_len) int32 segment indices (padding index = num_segments)
    x_len: (batch,)          int32 valid lengths
    returns y: (batch, out_dim)
    """
    batch, seq_len = x.shape
    H = hidden_dim
    F = _round_up(hidden_dim, 128)
    G3 = 3 * F
    OUT_P = _round_up(out_dim, 128)
    nl_in = max(1, num_layers - 1)

    # --- Layer-0 projection baked into a per-segment table (embedding is frozen) ---
    emb = jnp.asarray(params["embedding"], jnp.float32)          # (S+1, E)
    wih0 = jnp.asarray(params["w_ih_l0"], jnp.float32)           # (3H, E)
    bih0 = jnp.asarray(params["b_ih_l0"], jnp.float32)           # (3H,)
    bhh0 = jnp.asarray(params["b_hh_l0"], jnp.float32)           # (3H,)
    gi0_tab = jnp.zeros((emb.shape[0], G3), jnp.float32)
    for g in range(3):
        blk = emb @ wih0[g * H:(g + 1) * H, :].T + bih0[g * H:(g + 1) * H]
        if g < 2:                                                # fold b_hh for r, z
            blk = blk + bhh0[g * H:(g + 1) * H]
        gi0_tab = gi0_tab.at[:, g * F:g * F + H].set(blk)

    gi0 = gi0_tab[x]                                             # (batch, seq, 3F)
    gi0 = jnp.transpose(gi0, (1, 0, 2))                          # (seq, batch, 3F)

    # --- batch tiling: >=2 grid steps when possible (v7x megacore), <=128 rows/tile ---
    Bp0 = _round_up(batch, 8)
    B_TILE = min(128, max(8, _round_up((Bp0 + 1) // 2, 8)))
    gi_steps = seq_len if num_layers > 1 else 1

    def _vmem_bytes(bt):
        est = 0
        est += 2 * seq_len * bt * G3 * 2          # gi0 input block (bf16, double-buffered)
        est += 2 * bt * 128 * 4                   # lens block (lane padding worst case)
        est += 2 * nl_in * F * G3 * 2             # W_ih layers>=1 (bf16)
        est += 2 * num_layers * F * G3 * 2        # W_hh (bf16)
        est += 2 * nl_in * G3 * 4                 # gi bias (f32)
        est += 2 * num_layers * F * 4             # b_hn (f32)
        est += 2 * (F * OUT_P * 2 + OUT_P * 4)    # decoder weight (bf16) + bias (f32)
        est += 2 * bt * OUT_P * 4                 # output block (f32)
        est += gi_steps * bt * G3 * 2             # gi scratch (bf16)
        est += gi_steps * bt * F * 2              # inter-layer buffer (bf16)
        return est

    VMEM_BUDGET = 40 * 1024 * 1024                # conservative for v7x's 64 MiB VMEM
    while B_TILE > 8 and _vmem_bytes(B_TILE) > VMEM_BUDGET:
        B_TILE = max(8, _round_up(B_TILE // 2, 8))
    Bp = _round_up(Bp0, B_TILE)
    vmem_limit = int(min(VMEM_BUDGET,
                         max(16 * 1024 * 1024, int(_vmem_bytes(B_TILE) * 1.25))))

    gi0 = jnp.pad(gi0, ((0, 0), (0, Bp - batch), (0, 0))).astype(jnp.bfloat16)
    lens = jnp.pad(jnp.asarray(x_len, jnp.int32), (0, Bp - batch)).reshape(Bp, 1)

    # --- GRU weights for layers >= 1 + recurrent weights for all layers ---
    # Gate g occupies lanes [g*F, g*F+H) of a 3F-wide block (every slice 128-aligned).
    wih_all = jnp.zeros((nl_in, F, G3), jnp.float32)
    bgi_all = jnp.zeros((nl_in, 1, G3), jnp.float32)
    whh_all = jnp.zeros((num_layers, F, G3), jnp.float32)
    bhn_all = jnp.zeros((num_layers, 1, F), jnp.float32)
    for l in range(num_layers):
        whh = jnp.asarray(params[f"w_hh_l{l}"], jnp.float32)     # (3H, H)
        bhh = jnp.asarray(params[f"b_hh_l{l}"], jnp.float32)     # (3H,)
        for g in range(3):
            whh_all = whh_all.at[l, :H, g * F:g * F + H].set(
                whh[g * H:(g + 1) * H, :].T)
        bhn_all = bhn_all.at[l, 0, :H].set(bhh[2 * H:3 * H])
        if l >= 1:
            wih = jnp.asarray(params[f"w_ih_l{l}"], jnp.float32)  # (3H, H)
            bih = jnp.asarray(params[f"b_ih_l{l}"], jnp.float32)  # (3H,)
            for g in range(3):
                wih_all = wih_all.at[l - 1, :H, g * F:g * F + H].set(
                    wih[g * H:(g + 1) * H, :].T)
                bg = bih[g * H:(g + 1) * H]
                if g < 2:                                         # fold b_hh for r, z
                    bg = bg + bhh[g * H:(g + 1) * H]
                bgi_all = bgi_all.at[l - 1, 0, g * F:g * F + H].set(bg)
    wih_all = wih_all.astype(jnp.bfloat16)
    whh_all = whh_all.astype(jnp.bfloat16)

    wdec = jnp.asarray(params["w_dec"], jnp.float32)              # (out_dim, H)
    bdec = jnp.asarray(params["b_dec"], jnp.float32)              # (out_dim,)
    wdec_p = (jnp.zeros((F, OUT_P), jnp.float32)
              .at[:H, :out_dim].set(wdec.T).astype(jnp.bfloat16))
    bdec_p = jnp.zeros((1, OUT_P), jnp.float32).at[0, :out_dim].set(bdec)

    grid = (Bp // B_TILE,)

    y_pad = pl.pallas_call(
        functools.partial(fused_gru_kernel,
                          num_layers=num_layers, feat=F, seq_len=seq_len),
        out_shape=jax.ShapeDtypeStruct((Bp, OUT_P), jnp.float32),
        grid_spec=pltpu.PrefetchScalarGridSpec(
            num_scalar_prefetch=0,
            grid=grid,
            in_specs=[
                pl.BlockSpec((seq_len, B_TILE, G3), lambda b: (0, b, 0)),
                pl.BlockSpec((B_TILE, 1), lambda b: (b, 0)),
                pl.BlockSpec((nl_in, F, G3), lambda b: (0, 0, 0)),
                pl.BlockSpec((num_layers, F, G3), lambda b: (0, 0, 0)),
                pl.BlockSpec((nl_in, 1, G3), lambda b: (0, 0, 0)),
                pl.BlockSpec((num_layers, 1, F), lambda b: (0, 0, 0)),
                pl.BlockSpec((F, OUT_P), lambda b: (0, 0)),
                pl.BlockSpec((1, OUT_P), lambda b: (0, 0)),
            ],
            out_specs=pl.BlockSpec((B_TILE, OUT_P), lambda b: (b, 0)),
            scratch_shapes=[
                pltpu.VMEM((gi_steps, B_TILE, G3), jnp.bfloat16),  # hoisted gi
                pltpu.VMEM((gi_steps, B_TILE, F), jnp.bfloat16),   # inter-layer buffer
            ],
        ),
        compiler_params=pltpu.CompilerParams(
            dimension_semantics=("parallel",),
            vmem_limit_bytes=vmem_limit,
        ),
    )(gi0, lens, wih_all, whh_all, bgi_all, bhn_all, wdec_p, bdec_p)

    return y_pad[:batch, :out_dim]


# ---------------------------------------------------------------------------
# Pure-JAX f32 reference (for correctness check only)
# ---------------------------------------------------------------------------
def _gru_layer_ref(x_seq, w_ih, w_hh, b_ih, b_hh, lens, H):
    seq_len, batch, _ = x_seq.shape
    h = jnp.zeros((batch, H), jnp.float32)
    outs = []
    for t in range(seq_len):
        gi = x_seq[t] @ w_ih.T + b_ih
        gh = h @ w_hh.T + b_hh
        r = jax.nn.sigmoid(gi[:, :H] + gh[:, :H])
        z = jax.nn.sigmoid(gi[:, H:2 * H] + gh[:, H:2 * H])
        n = jnp.tanh(gi[:, 2 * H:] + r * gh[:, 2 * H:])
        h_new = (1.0 - z) * n + z * h
        mask = (lens > t)[:, None]
        h = jnp.where(mask, h_new, h)
        outs.append(h)
    return jnp.stack(outs, 0), h


def _ref_forward(x, x_len, params, num_layers, H):
    x_emb = jnp.transpose(params["embedding"][x], (1, 0, 2))
    layer_in = x_emb
    h = None
    for l in range(num_layers):
        layer_in, h = _gru_layer_ref(
            layer_in, params[f"w_ih_l{l}"], params[f"w_hh_l{l}"],
            params[f"b_ih_l{l}"], params[f"b_hh_l{l}"], x_len, H)
    return h @ params["w_dec"].T + params["b_dec"]


# ---------------------------------------------------------------------------
# Deterministic parameter init + demo
# ---------------------------------------------------------------------------
def make_params(key, num_segments, embed_dim, hidden_dim, num_layers, out_dim):
    params = {}
    k_emb, key = jax.random.split(key)
    # Embedding table has num_segments + 1 rows (last row = padding_idx).
    params["embedding"] = jax.random.normal(
        k_emb, (num_segments + 1, embed_dim), jnp.float32)

    scale = 1.0 / jnp.sqrt(hidden_dim)
    for l in range(num_layers):
        in_dim = embed_dim if l == 0 else hidden_dim
        k1, k2, k3, k4, key = jax.random.split(key, 5)
        params[f"w_ih_l{l}"] = jax.random.uniform(
            k1, (3 * hidden_dim, in_dim), jnp.float32, -scale, scale)
        params[f"w_hh_l{l}"] = jax.random.uniform(
            k2, (3 * hidden_dim, hidden_dim), jnp.float32, -scale, scale)
        params[f"b_ih_l{l}"] = jax.random.uniform(
            k3, (3 * hidden_dim,), jnp.float32, -scale, scale)
        params[f"b_hh_l{l}"] = jax.random.uniform(
            k4, (3 * hidden_dim,), jnp.float32, -scale, scale)

    k5, k6, _ = jax.random.split(key, 3)
    dscale = 1.0 / jnp.sqrt(hidden_dim)
    params["w_dec"] = jax.random.uniform(
        k5, (out_dim, hidden_dim), jnp.float32, -dscale, dscale)
    params["b_dec"] = jax.random.uniform(
        k6, (out_dim,), jnp.float32, -dscale, dscale)
    return params


if __name__ == "__main__":
    num_segments = 10
    embed_dim = 16
    hidden_dim = 32
    num_layers = 2
    out_dim = 1
    batch = 2
    seq_len = 8

    key = jax.random.PRNGKey(0)
    k_p, k_x = jax.random.split(key)
    params = make_params(k_p, num_segments, embed_dim, hidden_dim,
                         num_layers, out_dim)

    # Token ids in [0, num_segments); pad positions beyond each length with
    # padding_idx = num_segments.
    x = jax.random.randint(k_x, (batch, seq_len), 0, num_segments, jnp.int32)
    x_len = jnp.array([seq_len, 5], jnp.int32)
    pos = jnp.arange(seq_len)[None, :]
    x = jnp.where(pos < x_len[:, None], x, num_segments)

    y = travel_time_estimator(x, x_len, params, num_layers, hidden_dim,
                              embed_dim, out_dim)
    y = jax.block_until_ready(y)

    y_ref = _ref_forward(x, x_len, params, num_layers, hidden_dim)
    assert y.shape == (batch, out_dim)
    # Tolerance loosened vs the f32 reference because MXU operands / gi are bf16.
    assert jnp.allclose(y, y_ref, rtol=3e-2, atol=3e-2), (y, y_ref)

    print("KERNEL_OK")
</pallas_src>

<mosaic_0001>
module attributes {stable_mosaic.version = 11 : i64} {
  func.func @fused_gru_kernel(%arg0: i32, %arg1: memref<8x8x384xbf16, #tpu.memory_space<vmem>>, %arg2: memref<8x1xi32, #tpu.memory_space<vmem>>, %arg3: memref<1x128x384xbf16, #tpu.memory_space<vmem>>, %arg4: memref<2x128x384xbf16, #tpu.memory_space<vmem>>, %arg5: memref<1x1x384xf32, #tpu.memory_space<vmem>>, %arg6: memref<2x1x128xf32, #tpu.memory_space<vmem>>, %arg7: memref<128x128xbf16, #tpu.memory_space<vmem>>, %arg8: memref<1x128xf32, #tpu.memory_space<vmem>>, %arg9: memref<8x128xf32, #tpu.memory_space<vmem>>, %arg10: memref<8x8x384xbf16, #tpu.memory_space<vmem>>, %arg11: memref<8x8x128xbf16, #tpu.memory_space<vmem>>) attributes {dimension_semantics = [#tpu.dimension_semantics<parallel>], iteration_bounds = array<i64: 1>, scalar_prefetch = 0 : i64, scratch_operands = 2 : i64, tpu.core_type = #tpu.core_type<tc>, window_params = [{transform_indices = @transform_0, window_bounds = array<i64: 8, 8, 384>}, {transform_indices = @transform_1, window_bounds = array<i64: 8, 1>}, {pipeline_mode = #tpu.pipeline_mode<synchronous>, transform_indices = @transform_2, window_bounds = array<i64: 1, 128, 384>}, {pipeline_mode = #tpu.pipeline_mode<synchronous>, transform_indices = @transform_3, window_bounds = array<i64: 2, 128, 384>}, {pipeline_mode = #tpu.pipeline_mode<synchronous>, transform_indices = @transform_4, window_bounds = array<i64: 1, 1, 384>}, {pipeline_mode = #tpu.pipeline_mode<synchronous>, transform_indices = @transform_5, window_bounds = array<i64: 2, 1, 128>}, {pipeline_mode = #tpu.pipeline_mode<synchronous>, transform_indices = @transform_6, window_bounds = array<i64: 128, 128>}, {pipeline_mode = #tpu.pipeline_mode<synchronous>, transform_indices = @transform_7, window_bounds = array<i64: 1, 128>}, {transform_indices = @transform_8, window_bounds = array<i64: 8, 128>}]} {
    %c0 = arith.constant 0 : index
    %c0_0 = arith.constant 0 : index
    %0 = vector.load %arg2[%c0, %c0_0] : memref<8x1xi32, #tpu.memory_space<vmem>>, vector<8x1xi32>
    %c0_1 = arith.constant 0 : index
    %c0_2 = arith.constant 0 : index
    %c0_3 = arith.constant 0 : index
    %1 = vector.load %arg4[%c0_1, %c0_2, %c0_3] : memref<2x128x384xbf16, #tpu.memory_space<vmem>>, vector<1x128x384xbf16>
    %2 = vector.shape_cast %1 : vector<1x128x384xbf16> to vector<128x384xbf16>
    %c0_4 = arith.constant 0 : index
    %c0_5 = arith.constant 0 : index
    %c0_6 = arith.constant 0 : index
    %3 = vector.load %arg6[%c0_4, %c0_5, %c0_6] : memref<2x1x128xf32, #tpu.memory_space<vmem>>, vector<1x1x128xf32>
    %4 = vector.shape_cast %3 : vector<1x1x128xf32> to vector<1x128xf32>
    %5 = vector.shape_cast %4 : vector<1x128xf32> to vector<1x128xf32>
    %6 = vector.broadcast %5 : vector<1x128xf32> to vector<8x128xf32>
    %cst = arith.constant 0.000000e+00 : f32
    %7 = vector.broadcast %cst : f32 to vector<8x128xf32>
    %c0_i32 = arith.constant 0 : i32
    %8 = arith.index_cast %c0_i32 : i32 to index
    %c0_7 = arith.constant 0 : index
    %c0_8 = arith.constant 0 : index
    %9 = vector.load %arg1[%8, %c0_7, %c0_8] : memref<8x8x384xbf16, #tpu.memory_space<vmem>>, vector<1x8x384xbf16>
    %10 = vector.shape_cast %9 : vector<1x8x384xbf16> to vector<8x384xbf16>
    %11 = arith.extf %10 : vector<8x384xbf16> to vector<8x384xf32>
    %12 = arith.truncf %7 : vector<8x128xf32> to vector<8x128xbf16>
    %cst_9 = arith.constant dense<0.000000e+00> : vector<8x384xf32>
    %13 = tpu.matmul %12, %2, %cst_9 {dimension_numbers = #tpu.dot_dimension_numbers<[1], [0], [0], [1], [0, 0, 1, 1], [], []>} : vector<8x128xbf16>, vector<128x384xbf16>, vector<8x384xf32> -> vector<8x384xf32>
    %14 = vector.extract_strided_slice %11 {offsets = [0, 0], sizes = [8, 128], strides = [1, 1]} : vector<8x384xf32> to vector<8x128xf32>
    %15 = vector.extract_strided_slice %13 {offsets = [0, 0], sizes = [8, 128], strides = [1, 1]} : vector<8x384xf32> to vector<8x128xf32>
    %16 = arith.addf %14, %15 : vector<8x128xf32>
    %17 = arith.negf %16 : vector<8x128xf32>
    %18 = math.exp %17 : vector<8x128xf32>
    %cst_10 = arith.constant 1.000000e+00 : f32
    %19 = vector.broadcast %cst_10 : f32 to vector<8x128xf32>
    %20 = arith.addf %19, %18 : vector<8x128xf32>
    %21 = arith.divf %19, %20 : vector<8x128xf32>
    %22 = vector.extract_strided_slice %11 {offsets = [0, 128], sizes = [8, 128], strides = [1, 1]} : vector<8x384xf32> to vector<8x128xf32>
    %23 = vector.extract_strided_slice %13 {offsets = [0, 128], sizes = [8, 128], strides = [1, 1]} : vector<8x384xf32> to vector<8x128xf32>
    %24 = arith.addf %22, %23 : vector<8x128xf32>
    %25 = arith.negf %24 : vector<8x128xf32>
    %26 = math.exp %25 : vector<8x128xf32>
    %cst_11 = arith.constant 1.000000e+00 : f32
    %27 = vector.broadcast %cst_11 : f32 to vector<8x128xf32>
    %28 = arith.addf %27, %26 : vector<8x128xf32>
    %29 = arith.divf %27, %28 : vector<8x128xf32>
    %30 = vector.extract_strided_slice %11 {offsets = [0, 256], sizes = [8, 128], strides = [1, 1]} : vector<8x384xf32> to vector<8x128xf32>
    %31 = vector.extract_strided_slice %13 {offsets = [0, 256], sizes = [8, 128], strides = [1, 1]} : vector<8x384xf32> to vector<8x128xf32>
    %32 = arith.addf %31, %6 : vector<8x128xf32>
    %33 = arith.mulf %21, %32 : vector<8x128xf32>
    %34 = arith.addf %30, %33 : vector<8x128xf32>
    %35 = math.tanh %34 : vector<8x128xf32>
    %cst_12 = arith.constant 1.000000e+00 : f32
    %36 = vector.broadcast %cst_12 : f32 to vector<8x128xf32>
    %37 = arith.subf %36, %29 : vector<8x128xf32>
    %38 = arith.mulf %37, %35 : vector<8x128xf32>
    %39 = arith.mulf %29, %7 : vector<8x128xf32>
    %40 = arith.addf %38, %39 : vector<8x128xf32>
    %41 = vector.broadcast %c0_i32 : i32 to vector<8x1xi32>
    %42 = arith.cmpi sgt, %0, %41 : vector<8x1xi32>
    %43 = vector.shape_cast %42 : vector<8x1xi1> to vector<8x1xi1>
    %44 = vector.broadcast %43 : vector<8x1xi1> to vector<8x128xi1>
    %45 = arith.select %44, %40, %7 : vector<8x128xi1>, vector<8x128xf32>
    %46 = arith.truncf %45 : vector<8x128xf32> to vector<8x128xbf16>
    %47 = arith.index_cast %c0_i32 : i32 to index
    %c0_13 = arith.constant 0 : index
    %c0_14 = arith.constant 0 : index
    %48 = vector.load %arg11[%47, %c0_13, %c0_14] : memref<8x8x128xbf16, #tpu.memory_space<vmem>>, vector<1x8x128xbf16>
    %49 = vector.shape_cast %48 : vector<1x8x128xbf16> to vector<8x128xbf16>
    %50 = vector.shape_cast %46 : vector<8x128xbf16> to vector<1x8x128xbf16>
    tpu.vector_store %arg11[%47, %c0_13, %c0_14], %50 {strides = array<i32>} : memref<8x8x128xbf16, #tpu.memory_space<vmem>>, vector<1x8x128xbf16>,
    %c1_i32 = arith.constant 1 : i32
    %51 = arith.index_cast %c1_i32 : i32 to index
    %c0_15 = arith.constant 0 : index
    %c0_16 = arith.constant 0 : index
    %52 = vector.load %arg1[%51, %c0_15, %c0_16] : memref<8x8x384xbf16, #tpu.memory_space<vmem>>, vector<1x8x384xbf16>
    %53 = vector.shape_cast %52 : vector<1x8x384xbf16> to vector<8x384xbf16>
    %54 = arith.extf %53 : vector<8x384xbf16> to vector<8x384xf32>
    %55 = arith.truncf %45 : vector<8x128xf32> to vector<8x128xbf16>
    %cst_17 = arith.constant dense<0.000000e+00> : vector<8x384xf32>
    %56 = tpu.matmul %55, %2, %cst_17 {dimension_numbers = #tpu.dot_dimension_numbers<[1], [0], [0], [1], [0, 0, 1, 1], [], []>} : vector<8x128xbf16>, vector<128x384xbf16>, vector<8x384xf32> -> vector<8x384xf32>
    %57 = vector.extract_strided_slice %54 {offsets = [0, 0], sizes = [8, 128], strides = [1, 1]} : vector<8x384xf32> to vector<8x128xf32>
    %58 = vector.extract_strided_slice %56 {offsets = [0, 0], sizes = [8, 128], strides = [1, 1]} : vector<8x384xf32> to vector<8x128xf32>
    %59 = arith.addf %57, %58 : vector<8x128xf32>
    %60 = arith.negf %59 : vector<8x128xf32>
    %61 = math.exp %60 : vector<8x128xf32>
    %cst_18 = arith.constant 1.000000e+00 : f32
    %62 = vector.broadcast %cst_18 : f32 to vector<8x128xf32>
    %63 = arith.addf %62, %61 : vector<8x128xf32>
    %64 = arith.divf %62, %63 : vector<8x128xf32>
    %65 = vector.extract_strided_slice %54 {offsets = [0, 128], sizes = [8, 128], strides = [1, 1]} : vector<8x384xf32> to vector<8x128xf32>
    %66 = vector.extract_strided_slice %56 {offsets = [0, 128], sizes = [8, 128], strides = [1, 1]} : vector<8x384xf32> to vector<8x128xf32>
    %67 = arith.addf %65, %66 : vector<8x128xf32>
    %68 = arith.negf %67 : vector<8x128xf32>
    %69 = math.exp %68 : vector<8x128xf32>
    %cst_19 = arith.constant 1.000000e+00 : f32
    %70 = vector.broadcast %cst_19 : f32 to vector<8x128xf32>
    %71 = arith.addf %70, %69 : vector<8x128xf32>
    %72 = arith.divf %70, %71 : vector<8x128xf32>
    %73 = vector.extract_strided_slice %54 {offsets = [0, 256], sizes = [8, 128], strides = [1, 1]} : vector<8x384xf32> to vector<8x128xf32>
    %74 = vector.extract_strided_slice %56 {offsets = [0, 256], sizes = [8, 128], strides = [1, 1]} : vector<8x384xf32> to vector<8x128xf32>
    %75 = arith.addf %74, %6 : vector<8x128xf32>
    %76 = arith.mulf %64, %75 : vector<8x128xf32>
    %77 = arith.addf %73, %76 : vector<8x128xf32>
    %78 = math.tanh %77 : vector<8x128xf32>
    %cst_20 = arith.constant 1.000000e+00 : f32
    %79 = vector.broadcast %cst_20 : f32 to vector<8x128xf32>
    %80 = arith.subf %79, %72 : vector<8x128xf32>
    %81 = arith.mulf %80, %78 : vector<8x128xf32>
    %82 = arith.mulf %72, %45 : vector<8x128xf32>
    %83 = arith.addf %81, %82 : vector<8x128xf32>
    %84 = vector.broadcast %c1_i32 : i32 to vector<8x1xi32>
    %85 = arith.cmpi sgt, %0, %84 : vector<8x1xi32>
    %86 = vector.shape_cast %85 : vector<8x1xi1> to vector<8x1xi1>
    %87 = vector.broadcast %86 : vector<8x1xi1> to vector<8x128xi1>
    %88 = arith.select %87, %83, %45 : vector<8x128xi1>, vector<8x128xf32>
    %89 = arith.truncf %88 : vector<8x128xf32> to vector<8x128xbf16>
    %90 = arith.index_cast %c1_i32 : i32 to index
    %c0_21 = arith.constant 0 : index
    %c0_22 = arith.constant 0 : index
    %91 = vector.load %arg11[%90, %c0_21, %c0_22] : memref<8x8x128xbf16, #tpu.memory_space<vmem>>, vector<1x8x128xbf16>
    %92 = vector.shape_cast %91 : vector<1x8x128xbf16> to vector<8x128xbf16>
    %93 = vector.shape_cast %89 : vector<8x128xbf16> to vector<1x8x128xbf16>
    tpu.vector_store %arg11[%90, %c0_21, %c0_22], %93 {strides = array<i32>} : memref<8x8x128xbf16, #tpu.memory_space<vmem>>, vector<1x8x128xbf16>,
    %c2_i32 = arith.constant 2 : i32
    %94 = arith.index_cast %c2_i32 : i32 to index
    %c0_23 = arith.constant 0 : index
    %c0_24 = arith.constant 0 : index
    %95 = vector.load %arg1[%94, %c0_23, %c0_24] : memref<8x8x384xbf16, #tpu.memory_space<vmem>>, vector<1x8x384xbf16>
    %96 = vector.shape_cast %95 : vector<1x8x384xbf16> to vector<8x384xbf16>
    %97 = arith.extf %96 : vector<8x384xbf16> to vector<8x384xf32>
    %98 = arith.truncf %88 : vector<8x128xf32> to vector<8x128xbf16>
    %cst_25 = arith.constant dense<0.000000e+00> : vector<8x384xf32>
    %99 = tpu.matmul %98, %2, %cst_25 {dimension_numbers = #tpu.dot_dimension_numbers<[1], [0], [0], [1], [0, 0, 1, 1], [], []>} : vector<8x128xbf16>, vector<128x384xbf16>, vector<8x384xf32> -> vector<8x384xf32>
    %100 = vector.extract_strided_slice %97 {offsets = [0, 0], sizes = [8, 128], strides = [1, 1]} : vector<8x384xf32> to vector<8x128xf32>
    %101 = vector.extract_strided_slice %99 {offsets = [0, 0], sizes = [8, 128], strides = [1, 1]} : vector<8x384xf32> to vector<8x128xf32>
    %102 = arith.addf %100, %101 : vector<8x128xf32>
    %103 = arith.negf %102 : vector<8x128xf32>
    %104 = math.exp %103 : vector<8x128xf32>
    %cst_26 = arith.constant 1.000000e+00 : f32
    %105 = vector.broadcast %cst_26 : f32 to vector<8x128xf32>
    %106 = arith.addf %105, %104 : vector<8x128xf32>
    %107 = arith.divf %105, %106 : vector<8x128xf32>
    %108 = vector.extract_strided_slice %97 {offsets = [0, 128], sizes = [8, 128], strides = [1, 1]} : vector<8x384xf32> to vector<8x128xf32>
    %109 = vector.extract_strided_slice %99 {offsets = [0, 128], sizes = [8, 128], strides = [1, 1]} : vector<8x384xf32> to vector<8x128xf32>
    %110 = arith.addf %108, %109 : vector<8x128xf32>
    %111 = arith.negf %110 : vector<8x128xf32>
    %112 = math.exp %111 : vector<8x128xf32>
    %cst_27 = arith.constant 1.000000e+00 : f32
    %113 = vector.broadcast %cst_27 : f32 to vector<8x128xf32>
    %114 = arith.addf %113, %112 : vector<8x128xf32>
    %115 = arith.divf %113, %114 : vector<8x128xf32>
    %116 = vector.extract_strided_slice %97 {offsets = [0, 256], sizes = [8, 128], strides = [1, 1]} : vector<8x384xf32> to vector<8x128xf32>
    %117 = vector.extract_strided_slice %99 {offsets = [0, 256], sizes = [8, 128], strides = [1, 1]} : vector<8x384xf32> to vector<8x128xf32>
    %118 = arith.addf %117, %6 : vector<8x128xf32>
    %119 = arith.mulf %107, %118 : vector<8x128xf32>
    %120 = arith.addf %116, %119 : vector<8x128xf32>
    %121 = math.tanh %120 : vector<8x128xf32>
    %cst_28 = arith.constant 1.000000e+00 : f32
    %122 = vector.broadcast %cst_28 : f32 to vector<8x128xf32>
    %123 = arith.subf %122, %115 : vector<8x128xf32>
    %124 = arith.mulf %123, %121 : vector<8x128xf32>
    %125 = arith.mulf %115, %88 : vector<8x128xf32>
    %126 = arith.addf %124, %125 : vector<8x128xf32>
    %127 = vector.broadcast %c2_i32 : i32 to vector<8x1xi32>
    %128 = arith.cmpi sgt, %0, %127 : vector<8x1xi32>
    %129 = vector.shape_cast %128 : vector<8x1xi1> to vector<8x1xi1>
    %130 = vector.broadcast %129 : vector<8x1xi1> to vector<8x128xi1>
    %131 = arith.select %130, %126, %88 : vector<8x128xi1>, vector<8x128xf32>
    %132 = arith.truncf %131 : vector<8x128xf32> to vector<8x128xbf16>
    %133 = arith.index_cast %c2_i32 : i32 to index
    %c0_29 = arith.constant 0 : index
    %c0_30 = arith.constant 0 : index
    %134 = vector.load %arg11[%133, %c0_29, %c0_30] : memref<8x8x128xbf16, #tpu.memory_space<vmem>>, vector<1x8x128xbf16>
    %135 = vector.shape_cast %134 : vector<1x8x128xbf16> to vector<8x128xbf16>
    %136 = vector.shape_cast %132 : vector<8x128xbf16> to vector<1x8x128xbf16>
    tpu.vector_store %arg11[%133, %c0_29, %c0_30], %136 {strides = array<i32>} : memref<8x8x128xbf16, #tpu.memory_space<vmem>>, vector<1x8x128xbf16>,
    %c3_i32 = arith.constant 3 : i32
    %137 = arith.index_cast %c3_i32 : i32 to index
    %c0_31 = arith.constant 0 : index
    %c0_32 = arith.constant 0 : index
    %138 = vector.load %arg1[%137, %c0_31, %c0_32] : memref<8x8x384xbf16, #tpu.memory_space<vmem>>, vector<1x8x384xbf16>
    %139 = vector.shape_cast %138 : vector<1x8x384xbf16> to vector<8x384xbf16>
    %140 = arith.extf %139 : vector<8x384xbf16> to vector<8x384xf32>
    %141 = arith.truncf %131 : vector<8x128xf32> to vector<8x128xbf16>
    %cst_33 = arith.constant dense<0.000000e+00> : vector<8x384xf32>
    %142 = tpu.matmul %141, %2, %cst_33 {dimension_numbers = #tpu.dot_dimension_numbers<[1], [0], [0], [1], [0, 0, 1, 1], [], []>} : vector<8x128xbf16>, vector<128x384xbf16>, vector<8x384xf32> -> vector<8x384xf32>
    %143 = vector.extract_strided_slice %140 {offsets = [0, 0], sizes = [8, 128], strides = [1, 1]} : vector<8x384xf32> to vector<8x128xf32>
    %144 = vector.extract_strided_slice %142 {offsets = [0, 0], sizes = [8, 128], strides = [1, 1]} : vector<8x384xf32> to vector<8x128xf32>
    %145 = arith.addf %143, %144 : vector<8x128xf32>
    %146 = arith.negf %145 : vector<8x128xf32>
    %147 = math.exp %146 : vector<8x128xf32>
    %cst_34 = arith.constant 1.000000e+00 : f32
    %148 = vector.broadcast %cst_34 : f32 to vector<8x128xf32>
    %149 = arith.addf %148, %147 : vector<8x128xf32>
    %150 = arith.divf %148, %149 : vector<8x128xf32>
    %151 = vector.extract_strided_slice %140 {offsets = [0, 128], sizes = [8, 128], strides = [1, 1]} : vector<8x384xf32> to vector<8x128xf32>
    %152 = vector.extract_strided_slice %142 {offsets = [0, 128], sizes = [8, 128], strides = [1, 1]} : vector<8x384xf32> to vector<8x128xf32>
    %153 = arith.addf %151, %152 : vector<8x128xf32>
    %154 = arith.negf %153 : vector<8x128xf32>
    %155 = math.exp %154 : vector<8x128xf32>
    %cst_35 = arith.constant 1.000000e+00 : f32
    %156 = vector.broadcast %cst_35 : f32 to vector<8x128xf32>
    %157 = arith.addf %156, %155 : vector<8x128xf32>
    %158 = arith.divf %156, %157 : vector<8x128xf32>
    %159 = vector.extract_strided_slice %140 {offsets = [0, 256], sizes = [8, 128], strides = [1, 1]} : vector<8x384xf32> to vector<8x128xf32>
    %160 = vector.extract_strided_slice %142 {offsets = [0, 256], sizes = [8, 128], strides = [1, 1]} : vector<8x384xf32> to vector<8x128xf32>
    %161 = arith.addf %160, %6 : vector<8x128xf32>
    %162 = arith.mulf %150, %161 : vector<8x128xf32>
    %163 = arith.addf %159, %162 : vector<8x128xf32>
    %164 = math.tanh %163 : vector<8x128xf32>
    %cst_36 = arith.constant 1.000000e+00 : f32
    %165 = vector.broadcast %cst_36 : f32 to vector<8x128xf32>
    %166 = arith.subf %165, %158 : vector<8x128xf32>
    %167 = arith.mulf %166, %164 : vector<8x128xf32>
    %168 = arith.mulf %158, %131 : vector<8x128xf32>
    %169 = arith.addf %167, %168 : vector<8x128xf32>
    %170 = vector.broadcast %c3_i32 : i32 to vector<8x1xi32>
    %171 = arith.cmpi sgt, %0, %170 : vector<8x1xi32>
    %172 = vector.shape_cast %171 : vector<8x1xi1> to vector<8x1xi1>
    %173 = vector.broadcast %172 : vector<8x1xi1> to vector<8x128xi1>
    %174 = arith.select %173, %169, %131 : vector<8x128xi1>, vector<8x128xf32>
    %175 = arith.truncf %174 : vector<8x128xf32> to vector<8x128xbf16>
    %176 = arith.index_cast %c3_i32 : i32 to index
    %c0_37 = arith.constant 0 : index
    %c0_38 = arith.constant 0 : index
    %177 = vector.load %arg11[%176, %c0_37, %c0_38] : memref<8x8x128xbf16, #tpu.memory_space<vmem>>, vector<1x8x128xbf16>
    %178 = vector.shape_cast %177 : vector<1x8x128xbf16> to vector<8x128xbf16>
    %179 = vector.shape_cast %175 : vector<8x128xbf16> to vector<1x8x128xbf16>
    tpu.vector_store %arg11[%176, %c0_37, %c0_38], %179 {strides = array<i32>} : memref<8x8x128xbf16, #tpu.memory_space<vmem>>, vector<1x8x128xbf16>,
    %c4_i32 = arith.constant 4 : i32
    %180 = arith.index_cast %c4_i32 : i32 to index
    %c0_39 = arith.constant 0 : index
    %c0_40 = arith.constant 0 : index
    %181 = vector.load %arg1[%180, %c0_39, %c0_40] : memref<8x8x384xbf16, #tpu.memory_space<vmem>>, vector<1x8x384xbf16>
    %182 = vector.shape_cast %181 : vector<1x8x384xbf16> to vector<8x384xbf16>
    %183 = arith.extf %182 : vector<8x384xbf16> to vector<8x384xf32>
    %184 = arith.truncf %174 : vector<8x128xf32> to vector<8x128xbf16>
    %cst_41 = arith.constant dense<0.000000e+00> : vector<8x384xf32>
    %185 = tpu.matmul %184, %2, %cst_41 {dimension_numbers = #tpu.dot_dimension_numbers<[1], [0], [0], [1], [0, 0, 1, 1], [], []>} : vector<8x128xbf16>, vector<128x384xbf16>, vector<8x384xf32> -> vector<8x384xf32>
    %186 = vector.extract_strided_slice %183 {offsets = [0, 0], sizes = [8, 128], strides = [1, 1]} : vector<8x384xf32> to vector<8x128xf32>
    %187 = vector.extract_strided_slice %185 {offsets = [0, 0], sizes = [8, 128], strides = [1, 1]} : vector<8x384xf32> to vector<8x128xf32>
    %188 = arith.addf %186, %187 : vector<8x128xf32>
    %189 = arith.negf %188 : vector<8x128xf32>
    %190 = math.exp %189 : vector<8x128xf32>
    %cst_42 = arith.constant 1.000000e+00 : f32
    %191 = vector.broadcast %cst_42 : f32 to vector<8x128xf32>
    %192 = arith.addf %191, %190 : vector<8x128xf32>
    %193 = arith.divf %191, %192 : vector<8x128xf32>
    %194 = vector.extract_strided_slice %183 {offsets = [0, 128], sizes = [8, 128], strides = [1, 1]} : vector<8x384xf32> to vector<8x128xf32>
    %195 = vector.extract_strided_slice %185 {offsets = [0, 128], sizes = [8, 128], strides = [1, 1]} : vector<8x384xf32> to vector<8x128xf32>
    %196 = arith.addf %194, %195 : vector<8x128xf32>
    %197 = arith.negf %196 : vector<8x128xf32>
    %198 = math.exp %197 : vector<8x128xf32>
    %cst_43 = arith.constant 1.000000e+00 : f32
    %199 = vector.broadcast %cst_43 : f32 to vector<8x128xf32>
    %200 = arith.addf %199, %198 : vector<8x128xf32>
    %201 = arith.divf %199, %200 : vector<8x128xf32>
    %202 = vector.extract_strided_slice %183 {offsets = [0, 256], sizes = [8, 128], strides = [1, 1]} : vector<8x384xf32> to vector<8x128xf32>
    %203 = vector.extract_strided_slice %185 {offsets = [0, 256], sizes = [8, 128], strides = [1, 1]} : vector<8x384xf32> to vector<8x128xf32>
    %204 = arith.addf %203, %6 : vector<8x128xf32>
    %205 = arith.mulf %193, %204 : vector<8x128xf32>
    %206 = arith.addf %202, %205 : vector<8x128xf32>
    %207 = math.tanh %206 : vector<8x128xf32>
    %cst_44 = arith.constant 1.000000e+00 : f32
    %208 = vector.broadcast %cst_44 : f32 to vector<8x128xf32>
    %209 = arith.subf %208, %201 : vector<8x128xf32>
    %210 = arith.mulf %209, %207 : vector<8x128xf32>
    %211 = arith.mulf %201, %174 : vector<8x128xf32>
    %212 = arith.addf %210, %211 : vector<8x128xf32>
    %213 = vector.broadcast %c4_i32 : i32 to vector<8x1xi32>
    %214 = arith.cmpi sgt, %0, %213 : vector<8x1xi32>
    %215 = vector.shape_cast %214 : vector<8x1xi1> to vector<8x1xi1>
    %216 = vector.broadcast %215 : vector<8x1xi1> to vector<8x128xi1>
    %217 = arith.select %216, %212, %174 : vector<8x128xi1>, vector<8x128xf32>
    %218 = arith.truncf %217 : vector<8x128xf32> to vector<8x128xbf16>
    %219 = arith.index_cast %c4_i32 : i32 to index
    %c0_45 = arith.constant 0 : index
    %c0_46 = arith.constant 0 : index
    %220 = vector.load %arg11[%219, %c0_45, %c0_46] : memref<8x8x128xbf16, #tpu.memory_space<vmem>>, vector<1x8x128xbf16>
    %221 = vector.shape_cast %220 : vector<1x8x128xbf16> to vector<8x128xbf16>
    %222 = vector.shape_cast %218 : vector<8x128xbf16> to vector<1x8x128xbf16>
    tpu.vector_store %arg11[%219, %c0_45, %c0_46], %222 {strides = array<i32>} : memref<8x8x128xbf16, #tpu.memory_space<vmem>>, vector<1x8x128xbf16>,
    %c5_i32 = arith.constant 5 : i32
    %223 = arith.index_cast %c5_i32 : i32 to index
    %c0_47 = arith.constant 0 : index
    %c0_48 = arith.constant 0 : index
    %224 = vector.load %arg1[%223, %c0_47, %c0_48] : memref<8x8x384xbf16, #tpu.memory_space<vmem>>, vector<1x8x384xbf16>
    %225 = vector.shape_cast %224 : vector<1x8x384xbf16> to vector<8x384xbf16>
    %226 = arith.extf %225 : vector<8x384xbf16> to vector<8x384xf32>
    %227 = arith.truncf %217 : vector<8x128xf32> to vector<8x128xbf16>
    %cst_49 = arith.constant dense<0.000000e+00> : vector<8x384xf32>
    %228 = tpu.matmul %227, %2, %cst_49 {dimension_numbers = #tpu.dot_dimension_numbers<[1], [0], [0], [1], [0, 0, 1, 1], [], []>} : vector<8x128xbf16>, vector<128x384xbf16>, vector<8x384xf32> -> vector<8x384xf32>
    %229 = vector.extract_strided_slice %226 {offsets = [0, 0], sizes = [8, 128], strides = [1, 1]} : vector<8x384xf32> to vector<8x128xf32>
    %230 = vector.extract_strided_slice %228 {offsets = [0, 0], sizes = [8, 128], strides = [1, 1]} : vector<8x384xf32> to vector<8x128xf32>
    %231 = arith.addf %229, %230 : vector<8x128xf32>
    %232 = arith.negf %231 : vector<8x128xf32>
    %233 = math.exp %232 : vector<8x128xf32>
    %cst_50 = arith.constant 1.000000e+00 : f32
    %234 = vector.broadcast %cst_50 : f32 to vector<8x128xf32>
    %235 = arith.addf %234, %233 : vector<8x128xf32>
    %236 = arith.divf %234, %235 : vector<8x128xf32>
    %237 = vector.extract_strided_slice %226 {offsets = [0, 128], sizes = [8, 128], strides = [1, 1]} : vector<8x384xf32> to vector<8x128xf32>
    %238 = vector.extract_strided_slice %228 {offsets = [0, 128], sizes = [8, 128], strides = [1, 1]} : vector<8x384xf32> to vector<8x128xf32>
    %239 = arith.addf %237, %238 : vector<8x128xf32>
    %240 = arith.negf %239 : vector<8x128xf32>
    %241 = math.exp %240 : vector<8x128xf32>
    %cst_51 = arith.constant 1.000000e+00 : f32
    %242 = vector.broadcast %cst_51 : f32 to vector<8x128xf32>
    %243 = arith.addf %242, %241 : vector<8x128xf32>
    %244 = arith.divf %242, %243 : vector<8x128xf32>
    %245 = vector.extract_strided_slice %226 {offsets = [0, 256], sizes = [8, 128], strides = [1, 1]} : vector<8x384xf32> to vector<8x128xf32>
    %246 = vector.extract_strided_slice %228 {offsets = [0, 256], sizes = [8, 128], strides = [1, 1]} : vector<8x384xf32> to vector<8x128xf32>
    %247 = arith.addf %246, %6 : vector<8x128xf32>
    %248 = arith.mulf %236, %247 : vector<8x128xf32>
    %249 = arith.addf %245, %248 : vector<8x128xf32>
    %250 = math.tanh %249 : vector<8x128xf32>
    %cst_52 = arith.constant 1.000000e+00 : f32
    %251 = vector.broadcast %cst_52 : f32 to vector<8x128xf32>
    %252 = arith.subf %251, %244 : vector<8x128xf32>
    %253 = arith.mulf %252, %250 : vector<8x128xf32>
    %254 = arith.mulf %244, %217 : vector<8x128xf32>
    %255 = arith.addf %253, %254 : vector<8x128xf32>
    %256 = vector.broadcast %c5_i32 : i32 to vector<8x1xi32>
    %257 = arith.cmpi sgt, %0, %256 : vector<8x1xi32>
    %258 = vector.shape_cast %257 : vector<8x1xi1> to vector<8x1xi1>
    %259 = vector.broadcast %258 : vector<8x1xi1> to vector<8x128xi1>
    %260 = arith.select %259, %255, %217 : vector<8x128xi1>, vector<8x128xf32>
    %261 = arith.truncf %260 : vector<8x128xf32> to vector<8x128xbf16>
    %262 = arith.index_cast %c5_i32 : i32 to index
    %c0_53 = arith.constant 0 : index
    %c0_54 = arith.constant 0 : index
    %263 = vector.load %arg11[%262, %c0_53, %c0_54] : memref<8x8x128xbf16, #tpu.memory_space<vmem>>, vector<1x8x128xbf16>
    %264 = vector.shape_cast %263 : vector<1x8x128xbf16> to vector<8x128xbf16>
    %265 = vector.shape_cast %261 : vector<8x128xbf16> to vector<1x8x128xbf16>
    tpu.vector_store %arg11[%262, %c0_53, %c0_54], %265 {strides = array<i32>} : memref<8x8x128xbf16, #tpu.memory_space<vmem>>, vector<1x8x128xbf16>,
    %c6_i32 = arith.constant 6 : i32
    %266 = arith.index_cast %c6_i32 : i32 to index
    %c0_55 = arith.constant 0 : index
    %c0_56 = arith.constant 0 : index
    %267 = vector.load %arg1[%266, %c0_55, %c0_56] : memref<8x8x384xbf16, #tpu.memory_space<vmem>>, vector<1x8x384xbf16>
    %268 = vector.shape_cast %267 : vector<1x8x384xbf16> to vector<8x384xbf16>
    %269 = arith.extf %268 : vector<8x384xbf16> to vector<8x384xf32>
    %270 = arith.truncf %260 : vector<8x128xf32> to vector<8x128xbf16>
    %cst_57 = arith.constant dense<0.000000e+00> : vector<8x384xf32>
    %271 = tpu.matmul %270, %2, %cst_57 {dimension_numbers = #tpu.dot_dimension_numbers<[1], [0], [0], [1], [0, 0, 1, 1], [], []>} : vector<8x128xbf16>, vector<128x384xbf16>, vector<8x384xf32> -> vector<8x384xf32>
    %272 = vector.extract_strided_slice %269 {offsets = [0, 0], sizes = [8, 128], strides = [1, 1]} : vector<8x384xf32> to vector<8x128xf32>
    %273 = vector.extract_strided_slice %271 {offsets = [0, 0], sizes = [8, 128], strides = [1, 1]} : vector<8x384xf32> to vector<8x128xf32>
    %274 = arith.addf %272, %273 : vector<8x128xf32>
    %275 = arith.negf %274 : vector<8x128xf32>
    %276 = math.exp %275 : vector<8x128xf32>
    %cst_58 = arith.constant 1.000000e+00 : f32
    %277 = vector.broadcast %cst_58 : f32 to vector<8x128xf32>
    %278 = arith.addf %277, %276 : vector<8x128xf32>
    %279 = arith.divf %277, %278 : vector<8x128xf32>
    %280 = vector.extract_strided_slice %269 {offsets = [0, 128], sizes = [8, 128], strides = [1, 1]} : vector<8x384xf32> to vector<8x128xf32>
    %281 = vector.extract_strided_slice %271 {offsets = [0, 128], sizes = [8, 128], strides = [1, 1]} : vector<8x384xf32> to vector<8x128xf32>
    %282 = arith.addf %280, %281 : vector<8x128xf32>
    %283 = arith.negf %282 : vector<8x128xf32>
    %284 = math.exp %283 : vector<8x128xf32>
    %cst_59 = arith.constant 1.000000e+00 : f32
    %285 = vector.broadcast %cst_59 : f32 to vector<8x128xf32>
    %286 = arith.addf %285, %284 : vector<8x128xf32>
    %287 = arith.divf %285, %286 : vector<8x128xf32>
    %288 = vector.extract_strided_slice %269 {offsets = [0, 256], sizes = [8, 128], strides = [1, 1]} : vector<8x384xf32> to vector<8x128xf32>
    %289 = vector.extract_strided_slice %271 {offsets = [0, 256], sizes = [8, 128], strides = [1, 1]} : vector<8x384xf32> to vector<8x128xf32>
    %290 = arith.addf %289, %6 : vector<8x128xf32>
    %291 = arith.mulf %279, %290 : vector<8x128xf32>
    %292 = arith.addf %288, %291 : vector<8x128xf32>
    %293 = math.tanh %292 : vector<8x128xf32>
    %cst_60 = arith.constant 1.000000e+00 : f32
    %294 = vector.broadcast %cst_60 : f32 to vector<8x128xf32>
    %295 = arith.subf %294, %287 : vector<8x128xf32>
    %296 = arith.mulf %295, %293 : vector<8x128xf32>
    %297 = arith.mulf %287, %260 : vector<8x128xf32>
    %298 = arith.addf %296, %297 : vector<8x128xf32>
    %299 = vector.broadcast %c6_i32 : i32 to vector<8x1xi32>
    %300 = arith.cmpi sgt, %0, %299 : vector<8x1xi32>
    %301 = vector.shape_cast %300 : vector<8x1xi1> to vector<8x1xi1>
    %302 = vector.broadcast %301 : vector<8x1xi1> to vector<8x128xi1>
    %303 = arith.select %302, %298, %260 : vector<8x128xi1>, vector<8x128xf32>
    %304 = arith.truncf %303 : vector<8x128xf32> to vector<8x128xbf16>
    %305 = arith.index_cast %c6_i32 : i32 to index
    %c0_61 = arith.constant 0 : index
    %c0_62 = arith.constant 0 : index
    %306 = vector.load %arg11[%305, %c0_61, %c0_62] : memref<8x8x128xbf16, #tpu.memory_space<vmem>>, vector<1x8x128xbf16>
    %307 = vector.shape_cast %306 : vector<1x8x128xbf16> to vector<8x128xbf16>
    %308 = vector.shape_cast %304 : vector<8x128xbf16> to vector<1x8x128xbf16>
    tpu.vector_store %arg11[%305, %c0_61, %c0_62], %308 {strides = array<i32>} : memref<8x8x128xbf16, #tpu.memory_space<vmem>>, vector<1x8x128xbf16>,
    %c7_i32 = arith.constant 7 : i32
    %309 = arith.index_cast %c7_i32 : i32 to index
    %c0_63 = arith.constant 0 : index
    %c0_64 = arith.constant 0 : index
    %310 = vector.load %arg1[%309, %c0_63, %c0_64] : memref<8x8x384xbf16, #tpu.memory_space<vmem>>, vector<1x8x384xbf16>
    %311 = vector.shape_cast %310 : vector<1x8x384xbf16> to vector<8x384xbf16>
    %312 = arith.extf %311 : vector<8x384xbf16> to vector<8x384xf32>
    %313 = arith.truncf %303 : vector<8x128xf32> to vector<8x128xbf16>
    %cst_65 = arith.constant dense<0.000000e+00> : vector<8x384xf32>
    %314 = tpu.matmul %313, %2, %cst_65 {dimension_numbers = #tpu.dot_dimension_numbers<[1], [0], [0], [1], [0, 0, 1, 1], [], []>} : vector<8x128xbf16>, vector<128x384xbf16>, vector<8x384xf32> -> vector<8x384xf32>
    %315 = vector.extract_strided_slice %312 {offsets = [0, 0], sizes = [8, 128], strides = [1, 1]} : vector<8x384xf32> to vector<8x128xf32>
    %316 = vector.extract_strided_slice %314 {offsets = [0, 0], sizes = [8, 128], strides = [1, 1]} : vector<8x384xf32> to vector<8x128xf32>
    %317 = arith.addf %315, %316 : vector<8x128xf32>
    %318 = arith.negf %317 : vector<8x128xf32>
    %319 = math.exp %318 : vector<8x128xf32>
    %cst_66 = arith.constant 1.000000e+00 : f32
    %320 = vector.broadcast %cst_66 : f32 to vector<8x128xf32>
    %321 = arith.addf %320, %319 : vector<8x128xf32>
    %322 = arith.divf %320, %321 : vector<8x128xf32>
    %323 = vector.extract_strided_slice %312 {offsets = [0, 128], sizes = [8, 128], strides = [1, 1]} : vector<8x384xf32> to vector<8x128xf32>
    %324 = vector.extract_strided_slice %314 {offsets = [0, 128], sizes = [8, 128], strides = [1, 1]} : vector<8x384xf32> to vector<8x128xf32>
    %325 = arith.addf %323, %324 : vector<8x128xf32>
    %326 = arith.negf %325 : vector<8x128xf32>
    %327 = math.exp %326 : vector<8x128xf32>
    %cst_67 = arith.constant 1.000000e+00 : f32
    %328 = vector.broadcast %cst_67 : f32 to vector<8x128xf32>
    %329 = arith.addf %328, %327 : vector<8x128xf32>
    %330 = arith.divf %328, %329 : vector<8x128xf32>
    %331 = vector.extract_strided_slice %312 {offsets = [0, 256], sizes = [8, 128], strides = [1, 1]} : vector<8x384xf32> to vector<8x128xf32>
    %332 = vector.extract_strided_slice %314 {offsets = [0, 256], sizes = [8, 128], strides = [1, 1]} : vector<8x384xf32> to vector<8x128xf32>
    %333 = arith.addf %332, %6 : vector<8x128xf32>
    %334 = arith.mulf %322, %333 : vector<8x128xf32>
    %335 = arith.addf %331, %334 : vector<8x128xf32>
    %336 = math.tanh %335 : vector<8x128xf32>
    %cst_68 = arith.constant 1.000000e+00 : f32
    %337 = vector.broadcast %cst_68 : f32 to vector<8x128xf32>
    %338 = arith.subf %337, %330 : vector<8x128xf32>
    %339 = arith.mulf %338, %336 : vector<8x128xf32>
    %340 = arith.mulf %330, %303 : vector<8x128xf32>
    %341 = arith.addf %339, %340 : vector<8x128xf32>
    %342 = vector.broadcast %c7_i32 : i32 to vector<8x1xi32>
    %343 = arith.cmpi sgt, %0, %342 : vector<8x1xi32>
    %344 = vector.shape_cast %343 : vector<8x1xi1> to vector<8x1xi1>
    %345 = vector.broadcast %344 : vector<8x1xi1> to vector<8x128xi1>
    %346 = arith.select %345, %341, %303 : vector<8x128xi1>, vector<8x128xf32>
    %347 = arith.truncf %346 : vector<8x128xf32> to vector<8x128xbf16>
    %348 = arith.index_cast %c7_i32 : i32 to index
    %c0_69 = arith.constant 0 : index
    %c0_70 = arith.constant 0 : index
    %349 = vector.load %arg11[%348, %c0_69, %c0_70] : memref<8x8x128xbf16, #tpu.memory_space<vmem>>, vector<1x8x128xbf16>
    %350 = vector.shape_cast %349 : vector<1x8x128xbf16> to vector<8x128xbf16>
    %351 = vector.shape_cast %347 : vector<8x128xbf16> to vector<1x8x128xbf16>
    tpu.vector_store %arg11[%348, %c0_69, %c0_70], %351 {strides = array<i32>} : memref<8x8x128xbf16, #tpu.memory_space<vmem>>, vector<1x8x128xbf16>,
    %c8_i32 = arith.constant 8 : i32
    %c0_71 = arith.constant 0 : index
    %c0_72 = arith.constant 0 : index
    %c0_73 = arith.constant 0 : index
    %352 = vector.load %arg11[%c0_71, %c0_72, %c0_73] : memref<8x8x128xbf16, #tpu.memory_space<vmem>>, vector<8x8x128xbf16>
    %353 = vector.shape_cast %352 : vector<8x8x128xbf16> to vector<64x128xbf16>
    %c0_74 = arith.constant 0 : index
    %c0_75 = arith.constant 0 : index
    %c0_76 = arith.constant 0 : index
    %354 = vector.load %arg3[%c0_74, %c0_75, %c0_76] : memref<1x128x384xbf16, #tpu.memory_space<vmem>>, vector<1x128x384xbf16>
    %355 = vector.shape_cast %354 : vector<1x128x384xbf16> to vector<128x384xbf16>
    %cst_77 = arith.constant dense<0.000000e+00> : vector<64x384xf32>
    %356 = tpu.matmul %353, %355, %cst_77 {dimension_numbers = #tpu.dot_dimension_numbers<[1], [0], [0], [1], [0, 0, 1, 1], [], []>} : vector<64x128xbf16>, vector<128x384xbf16>, vector<64x384xf32> -> vector<64x384xf32>
    %c0_78 = arith.constant 0 : index
    %c0_79 = arith.constant 0 : index
    %c0_80 = arith.constant 0 : index
    %357 = vector.load %arg5[%c0_78, %c0_79, %c0_80] : memref<1x1x384xf32, #tpu.memory_space<vmem>>, vector<1x1x384xf32>
    %358 = vector.shape_cast %357 : vector<1x1x384xf32> to vector<1x384xf32>
    %359 = vector.broadcast %358 : vector<1x384xf32> to vector<64x384xf32>
    %360 = arith.addf %356, %359 : vector<64x384xf32>
    %361 = vector.shape_cast %360 : vector<64x384xf32> to vector<8x8x384xf32>
    %362 = arith.truncf %361 : vector<8x8x384xf32> to vector<8x8x384xbf16>
    %c0_81 = arith.constant 0 : index
    %c0_82 = arith.constant 0 : index
    %c0_83 = arith.constant 0 : index
    %363 = vector.load %arg10[%c0_81, %c0_82, %c0_83] : memref<8x8x384xbf16, #tpu.memory_space<vmem>>, vector<8x8x384xbf16>
    tpu.vector_store %arg10[%c0_81, %c0_82, %c0_83], %362 {strides = array<i32>} : memref<8x8x384xbf16, #tpu.memory_space<vmem>>, vector<8x8x384xbf16>,
    %c1 = arith.constant 1 : index
    %c0_84 = arith.constant 0 : index
    %c0_85 = arith.constant 0 : index
    %364 = vector.load %arg4[%c1, %c0_84, %c0_85] : memref<2x128x384xbf16, #tpu.memory_space<vmem>>, vector<1x128x384xbf16>
    %365 = vector.shape_cast %364 : vector<1x128x384xbf16> to vector<128x384xbf16>
    %c1_86 = arith.constant 1 : index
    %c0_87 = arith.constant 0 : index
    %c0_88 = arith.constant 0 : index
    %366 = vector.load %arg6[%c1_86, %c0_87, %c0_88] : memref<2x1x128xf32, #tpu.memory_space<vmem>>, vector<1x1x128xf32>
    %367 = vector.shape_cast %366 : vector<1x1x128xf32> to vector<1x128xf32>
    %368 = vector.shape_cast %367 : vector<1x128xf32> to vector<1x128xf32>
    %369 = vector.broadcast %368 : vector<1x128xf32> to vector<8x128xf32>
    %cst_89 = arith.constant 0.000000e+00 : f32
    %370 = vector.broadcast %cst_89 : f32 to vector<8x128xf32>
    %c0_i32_90 = arith.constant 0 : i32
    %371 = arith.index_cast %c0_i32_90 : i32 to index
    %c0_91 = arith.constant 0 : index
    %c0_92 = arith.constant 0 : index
    %372 = vector.load %arg10[%371, %c0_91, %c0_92] : memref<8x8x384xbf16, #tpu.memory_space<vmem>>, vector<1x8x384xbf16>
    %373 = vector.shape_cast %372 : vector<1x8x384xbf16> to vector<8x384xbf16>
    %374 = arith.extf %373 : vector<8x384xbf16> to vector<8x384xf32>
    %375 = arith.truncf %370 : vector<8x128xf32> to vector<8x128xbf16>
    %cst_93 = arith.constant dense<0.000000e+00> : vector<8x384xf32>
    %376 = tpu.matmul %375, %365, %cst_93 {dimension_numbers = #tpu.dot_dimension_numbers<[1], [0], [0], [1], [0, 0, 1, 1], [], []>} : vector<8x128xbf16>, vector<128x384xbf16>, vector<8x384xf32> -> vector<8x384xf32>
    %377 = vector.extract_strided_slice %374 {offsets = [0, 0], sizes = [8, 128], strides = [1, 1]} : vector<8x384xf32> to vector<8x128xf32>
    %378 = vector.extract_strided_slice %376 {offsets = [0, 0], sizes = [8, 128], strides = [1, 1]} : vector<8x384xf32> to vector<8x128xf32>
    %379 = arith.addf %377, %378 : vector<8x128xf32>
    %380 = arith.negf %379 : vector<8x128xf32>
    %381 = math.exp %380 : vector<8x128xf32>
    %cst_94 = arith.constant 1.000000e+00 : f32
    %382 = vector.broadcast %cst_94 : f32 to vector<8x128xf32>
    %383 = arith.addf %382, %381 : vector<8x128xf32>
    %384 = arith.divf %382, %383 : vector<8x128xf32>
    %385 = vector.extract_strided_slice %374 {offsets = [0, 128], sizes = [8, 128], strides = [1, 1]} : vector<8x384xf32> to vector<8x128xf32>
    %386 = vector.extract_strided_slice %376 {offsets = [0, 128], sizes = [8, 128], strides = [1, 1]} : vector<8x384xf32> to vector<8x128xf32>
    %387 = arith.addf %385, %386 : vector<8x128xf32>
    %388 = arith.negf %387 : vector<8x128xf32>
    %389 = math.exp %388 : vector<8x128xf32>
    %cst_95 = arith.constant 1.000000e+00 : f32
    %390 = vector.broadcast %cst_95 : f32 to vector<8x128xf32>
    %391 = arith.addf %390, %389 : vector<8x128xf32>
    %392 = arith.divf %390, %391 : vector<8x128xf32>
    %393 = vector.extract_strided_slice %374 {offsets = [0, 256], sizes = [8, 128], strides = [1, 1]} : vector<8x384xf32> to vector<8x128xf32>
    %394 = vector.extract_strided_slice %376 {offsets = [0, 256], sizes = [8, 128], strides = [1, 1]} : vector<8x384xf32> to vector<8x128xf32>
    %395 = arith.addf %394, %369 : vector<8x128xf32>
    %396 = arith.mulf %384, %395 : vector<8x128xf32>
    %397 = arith.addf %393, %396 : vector<8x128xf32>
    %398 = math.tanh %397 : vector<8x128xf32>
    %cst_96 = arith.constant 1.000000e+00 : f32
    %399 = vector.broadcast %cst_96 : f32 to vector<8x128xf32>
    %400 = arith.subf %399, %392 : vector<8x128xf32>
    %401 = arith.mulf %400, %398 : vector<8x128xf32>
    %402 = arith.mulf %392, %370 : vector<8x128xf32>
    %403 = arith.addf %401, %402 : vector<8x128xf32>
    %404 = vector.broadcast %c0_i32_90 : i32 to vector<8x1xi32>
    %405 = arith.cmpi sgt, %0, %404 : vector<8x1xi32>
    %406 = vector.shape_cast %405 : vector<8x1xi1> to vector<8x1xi1>
    %407 = vector.broadcast %406 : vector<8x1xi1> to vector<8x128xi1>
    %408 = arith.select %407, %403, %370 : vector<8x128xi1>, vector<8x128xf32>
    %c1_i32_97 = arith.constant 1 : i32
    %409 = arith.index_cast %c1_i32_97 : i32 to index
    %c0_98 = arith.constant 0 : index
    %c0_99 = arith.constant 0 : index
    %410 = vector.load %arg10[%409, %c0_98, %c0_99] : memref<8x8x384xbf16, #tpu.memory_space<vmem>>, vector<1x8x384xbf16>
    %411 = vector.shape_cast %410 : vector<1x8x384xbf16> to vector<8x384xbf16>
    %412 = arith.extf %411 : vector<8x384xbf16> to vector<8x384xf32>
    %413 = arith.truncf %408 : vector<8x128xf32> to vector<8x128xbf16>
    %cst_100 = arith.constant dense<0.000000e+00> : vector<8x384xf32>
    %414 = tpu.matmul %413, %365, %cst_100 {dimension_numbers = #tpu.dot_dimension_numbers<[1], [0], [0], [1], [0, 0, 1, 1], [], []>} : vector<8x128xbf16>, vector<128x384xbf16>, vector<8x384xf32> -> vector<8x384xf32>
    %415 = vector.extract_strided_slice %412 {offsets = [0, 0], sizes = [8, 128], strides = [1, 1]} : vector<8x384xf32> to vector<8x128xf32>
    %416 = vector.extract_strided_slice %414 {offsets = [0, 0], sizes = [8, 128], strides = [1, 1]} : vector<8x384xf32> to vector<8x128xf32>
    %417 = arith.addf %415, %416 : vector<8x128xf32>
    %418 = arith.negf %417 : vector<8x128xf32>
    %419 = math.exp %418 : vector<8x128xf32>
    %cst_101 = arith.constant 1.000000e+00 : f32
    %420 = vector.broadcast %cst_101 : f32 to vector<8x128xf32>
    %421 = arith.addf %420, %419 : vector<8x128xf32>
    %422 = arith.divf %420, %421 : vector<8x128xf32>
    %423 = vector.extract_strided_slice %412 {offsets = [0, 128], sizes = [8, 128], strides = [1, 1]} : vector<8x384xf32> to vector<8x128xf32>
    %424 = vector.extract_strided_slice %414 {offsets = [0, 128], sizes = [8, 128], strides = [1, 1]} : vector<8x384xf32> to vector<8x128xf32>
    %425 = arith.addf %423, %424 : vector<8x128xf32>
    %426 = arith.negf %425 : vector<8x128xf32>
    %427 = math.exp %426 : vector<8x128xf32>
    %cst_102 = arith.constant 1.000000e+00 : f32
    %428 = vector.broadcast %cst_102 : f32 to vector<8x128xf32>
    %429 = arith.addf %428, %427 : vector<8x128xf32>
    %430 = arith.divf %428, %429 : vector<8x128xf32>
    %431 = vector.extract_strided_slice %412 {offsets = [0, 256], sizes = [8, 128], strides = [1, 1]} : vector<8x384xf32> to vector<8x128xf32>
    %432 = vector.extract_strided_slice %414 {offsets = [0, 256], sizes = [8, 128], strides = [1, 1]} : vector<8x384xf32> to vector<8x128xf32>
    %433 = arith.addf %432, %369 : vector<8x128xf32>
    %434 = arith.mulf %422, %433 : vector<8x128xf32>
    %435 = arith.addf %431, %434 : vector<8x128xf32>
    %436 = math.tanh %435 : vector<8x128xf32>
    %cst_103 = arith.constant 1.000000e+00 : f32
    %437 = vector.broadcast %cst_103 : f32 to vector<8x128xf32>
    %438 = arith.subf %437, %430 : vector<8x128xf32>
    %439 = arith.mulf %438, %436 : vector<8x128xf32>
    %440 = arith.mulf %430, %408 : vector<8x128xf32>
    %441 = arith.addf %439, %440 : vector<8x128xf32>
    %442 = vector.broadcast %c1_i32_97 : i32 to vector<8x1xi32>
    %443 = arith.cmpi sgt, %0, %442 : vector<8x1xi32>
    %444 = vector.shape_cast %443 : vector<8x1xi1> to vector<8x1xi1>
    %445 = vector.broadcast %444 : vector<8x1xi1> to vector<8x128xi1>
    %446 = arith.select %445, %441, %408 : vector<8x128xi1>, vector<8x128xf32>
    %c2_i32_104 = arith.constant 2 : i32
    %447 = arith.index_cast %c2_i32_104 : i32 to index
    %c0_105 = arith.constant 0 : index
    %c0_106 = arith.constant 0 : index
    %448 = vector.load %arg10[%447, %c0_105, %c0_106] : memref<8x8x384xbf16, #tpu.memory_space<vmem>>, vector<1x8x384xbf16>
    %449 = vector.shape_cast %448 : vector<1x8x384xbf16> to vector<8x384xbf16>
    %450 = arith.extf %449 : vector<8x384xbf16> to vector<8x384xf32>
    %451 = arith.truncf %446 : vector<8x128xf32> to vector<8x128xbf16>
    %cst_107 = arith.constant dense<0.000000e+00> : vector<8x384xf32>
    %452 = tpu.matmul %451, %365, %cst_107 {dimension_numbers = #tpu.dot_dimension_numbers<[1], [0], [0], [1], [0, 0, 1, 1], [], []>} : vector<8x128xbf16>, vector<128x384xbf16>, vector<8x384xf32> -> vector<8x384xf32>
    %453 = vector.extract_strided_slice %450 {offsets = [0, 0], sizes = [8, 128], strides = [1, 1]} : vector<8x384xf32> to vector<8x128xf32>
    %454 = vector.extract_strided_slice %452 {offsets = [0, 0], sizes = [8, 128], strides = [1, 1]} : vector<8x384xf32> to vector<8x128xf32>
    %455 = arith.addf %453, %454 : vector<8x128xf32>
    %456 = arith.negf %455 : vector<8x128xf32>
    %457 = math.exp %456 : vector<8x128xf32>
    %cst_108 = arith.constant 1.000000e+00 : f32
    %458 = vector.broadcast %cst_108 : f32 to vector<8x128xf32>
    %459 = arith.addf %458, %457 : vector<8x128xf32>
    %460 = arith.divf %458, %459 : vector<8x128xf32>
    %461 = vector.extract_strided_slice %450 {offsets = [0, 128], sizes = [8, 128], strides = [1, 1]} : vector<8x384xf32> to vector<8x128xf32>
    %462 = vector.extract_strided_slice %452 {offsets = [0, 128], sizes = [8, 128], strides = [1, 1]} : vector<8x384xf32> to vector<8x128xf32>
    %463 = arith.addf %461, %462 : vector<8x128xf32>
    %464 = arith.negf %463 : vector<8x128xf32>
    %465 = math.exp %464 : vector<8x128xf32>
    %cst_109 = arith.constant 1.000000e+00 : f32
    %466 = vector.broadcast %cst_109 : f32 to vector<8x128xf32>
    %467 = arith.addf %466, %465 : vector<8x128xf32>
    %468 = arith.divf %466, %467 : vector<8x128xf32>
    %469 = vector.extract_strided_slice %450 {offsets = [0, 256], sizes = [8, 128], strides = [1, 1]} : vector<8x384xf32> to vector<8x128xf32>
    %470 = vector.extract_strided_slice %452 {offsets = [0, 256], sizes = [8, 128], strides = [1, 1]} : vector<8x384xf32> to vector<8x128xf32>
    %471 = arith.addf %470, %369 : vector<8x128xf32>
    %472 = arith.mulf %460, %471 : vector<8x128xf32>
    %473 = arith.addf %469, %472 : vector<8x128xf32>
    %474 = math.tanh %473 : vector<8x128xf32>
    %cst_110 = arith.constant 1.000000e+00 : f32
    %475 = vector.broadcast %cst_110 : f32 to vector<8x128xf32>
    %476 = arith.subf %475, %468 : vector<8x128xf32>
    %477 = arith.mulf %476, %474 : vector<8x128xf32>
    %478 = arith.mulf %468, %446 : vector<8x128xf32>
    %479 = arith.addf %477, %478 : vector<8x128xf32>
    %480 = vector.broadcast %c2_i32_104 : i32 to vector<8x1xi32>
    %481 = arith.cmpi sgt, %0, %480 : vector<8x1xi32>
    %482 = vector.shape_cast %481 : vector<8x1xi1> to vector<8x1xi1>
    %483 = vector.broadcast %482 : vector<8x1xi1> to vector<8x128xi1>
    %484 = arith.select %483, %479, %446 : vector<8x128xi1>, vector<8x128xf32>
    %c3_i32_111 = arith.constant 3 : i32
    %485 = arith.index_cast %c3_i32_111 : i32 to index
    %c0_112 = arith.constant 0 : index
    %c0_113 = arith.constant 0 : index
    %486 = vector.load %arg10[%485, %c0_112, %c0_113] : memref<8x8x384xbf16, #tpu.memory_space<vmem>>, vector<1x8x384xbf16>
    %487 = vector.shape_cast %486 : vector<1x8x384xbf16> to vector<8x384xbf16>
    %488 = arith.extf %487 : vector<8x384xbf16> to vector<8x384xf32>
    %489 = arith.truncf %484 : vector<8x128xf32> to vector<8x128xbf16>
    %cst_114 = arith.constant dense<0.000000e+00> : vector<8x384xf32>
    %490 = tpu.matmul %489, %365, %cst_114 {dimension_numbers = #tpu.dot_dimension_numbers<[1], [0], [0], [1], [0, 0, 1, 1], [], []>} : vector<8x128xbf16>, vector<128x384xbf16>, vector<8x384xf32> -> vector<8x384xf32>
    %491 = vector.extract_strided_slice %488 {offsets = [0, 0], sizes = [8, 128], strides = [1, 1]} : vector<8x384xf32> to vector<8x128xf32>
    %492 = vector.extract_strided_slice %490 {offsets = [0, 0], sizes = [8, 128], strides = [1, 1]} : vector<8x384xf32> to vector<8x128xf32>
    %493 = arith.addf %491, %492 : vector<8x128xf32>
    %494 = arith.negf %493 : vector<8x128xf32>
    %495 = math.exp %494 : vector<8x128xf32>
    %cst_115 = arith.constant 1.000000e+00 : f32
    %496 = vector.broadcast %cst_115 : f32 to vector<8x128xf32>
    %497 = arith.addf %496, %495 : vector<8x128xf32>
    %498 = arith.divf %496, %497 : vector<8x128xf32>
    %499 = vector.extract_strided_slice %488 {offsets = [0, 128], sizes = [8, 128], strides = [1, 1]} : vector<8x384xf32> to vector<8x128xf32>
    %500 = vector.extract_strided_slice %490 {offsets = [0, 128], sizes = [8, 128], strides = [1, 1]} : vector<8x384xf32> to vector<8x128xf32>
    %501 = arith.addf %499, %500 : vector<8x128xf32>
    %502 = arith.negf %501 : vector<8x128xf32>
    %503 = math.exp %502 : vector<8x128xf32>
    %cst_116 = arith.constant 1.000000e+00 : f32
    %504 = vector.broadcast %cst_116 : f32 to vector<8x128xf32>
    %505 = arith.addf %504, %503 : vector<8x128xf32>
    %506 = arith.divf %504, %505 : vector<8x128xf32>
    %507 = vector.extract_strided_slice %488 {offsets = [0, 256], sizes = [8, 128], strides = [1, 1]} : vector<8x384xf32> to vector<8x128xf32>
    %508 = vector.extract_strided_slice %490 {offsets = [0, 256], sizes = [8, 128], strides = [1, 1]} : vector<8x384xf32> to vector<8x128xf32>
    %509 = arith.addf %508, %369 : vector<8x128xf32>
    %510 = arith.mulf %498, %509 : vector<8x128xf32>
    %511 = arith.addf %507, %510 : vector<8x128xf32>
    %512 = math.tanh %511 : vector<8x128xf32>
    %cst_117 = arith.constant 1.000000e+00 : f32
    %513 = vector.broadcast %cst_117 : f32 to vector<8x128xf32>
    %514 = arith.subf %513, %506 : vector<8x128xf32>
    %515 = arith.mulf %514, %512 : vector<8x128xf32>
    %516 = arith.mulf %506, %484 : vector<8x128xf32>
    %517 = arith.addf %515, %516 : vector<8x128xf32>
    %518 = vector.broadcast %c3_i32_111 : i32 to vector<8x1xi32>
    %519 = arith.cmpi sgt, %0, %518 : vector<8x1xi32>
    %520 = vector.shape_cast %519 : vector<8x1xi1> to vector<8x1xi1>
    %521 = vector.broadcast %520 : vector<8x1xi1> to vector<8x128xi1>
    %522 = arith.select %521, %517, %484 : vector<8x128xi1>, vector<8x128xf32>
    %c4_i32_118 = arith.constant 4 : i32
    %523 = arith.index_cast %c4_i32_118 : i32 to index
    %c0_119 = arith.constant 0 : index
    %c0_120 = arith.constant 0 : index
    %524 = vector.load %arg10[%523, %c0_119, %c0_120] : memref<8x8x384xbf16, #tpu.memory_space<vmem>>, vector<1x8x384xbf16>
    %525 = vector.shape_cast %524 : vector<1x8x384xbf16> to vector<8x384xbf16>
    %526 = arith.extf %525 : vector<8x384xbf16> to vector<8x384xf32>
    %527 = arith.truncf %522 : vector<8x128xf32> to vector<8x128xbf16>
    %cst_121 = arith.constant dense<0.000000e+00> : vector<8x384xf32>
    %528 = tpu.matmul %527, %365, %cst_121 {dimension_numbers = #tpu.dot_dimension_numbers<[1], [0], [0], [1], [0, 0, 1, 1], [], []>} : vector<8x128xbf16>, vector<128x384xbf16>, vector<8x384xf32> -> vector<8x384xf32>
    %529 = vector.extract_strided_slice %526 {offsets = [0, 0], sizes = [8, 128], strides = [1, 1]} : vector<8x384xf32> to vector<8x128xf32>
    %530 = vector.extract_strided_slice %528 {offsets = [0, 0], sizes = [8, 128], strides = [1, 1]} : vector<8x384xf32> to vector<8x128xf32>
    %531 = arith.addf %529, %530 : vector<8x128xf32>
    %532 = arith.negf %531 : vector<8x128xf32>
    %533 = math.exp %532 : vector<8x128xf32>
    %cst_122 = arith.constant 1.000000e+00 : f32
    %534 = vector.broadcast %cst_122 : f32 to vector<8x128xf32>
    %535 = arith.addf %534, %533 : vector<8x128xf32>
    %536 = arith.divf %534, %535 : vector<8x128xf32>
    %537 = vector.extract_strided_slice %526 {offsets = [0, 128], sizes = [8, 128], strides = [1, 1]} : vector<8x384xf32> to vector<8x128xf32>
    %538 = vector.extract_strided_slice %528 {offsets = [0, 128], sizes = [8, 128], strides = [1, 1]} : vector<8x384xf32> to vector<8x128xf32>
    %539 = arith.addf %537, %538 : vector<8x128xf32>
    %540 = arith.negf %539 : vector<8x128xf32>
    %541 = math.exp %540 : vector<8x128xf32>
    %cst_123 = arith.constant 1.000000e+00 : f32
    %542 = vector.broadcast %cst_123 : f32 to vector<8x128xf32>
    %543 = arith.addf %542, %541 : vector<8x128xf32>
    %544 = arith.divf %542, %543 : vector<8x128xf32>
    %545 = vector.extract_strided_slice %526 {offsets = [0, 256], sizes = [8, 128], strides = [1, 1]} : vector<8x384xf32> to vector<8x128xf32>
    %546 = vector.extract_strided_slice %528 {offsets = [0, 256], sizes = [8, 128], strides = [1, 1]} : vector<8x384xf32> to vector<8x128xf32>
    %547 = arith.addf %546, %369 : vector<8x128xf32>
    %548 = arith.mulf %536, %547 : vector<8x128xf32>
    %549 = arith.addf %545, %548 : vector<8x128xf32>
    %550 = math.tanh %549 : vector<8x128xf32>
    %cst_124 = arith.constant 1.000000e+00 : f32
    %551 = vector.broadcast %cst_124 : f32 to vector<8x128xf32>
    %552 = arith.subf %551, %544 : vector<8x128xf32>
    %553 = arith.mulf %552, %550 : vector<8x128xf32>
    %554 = arith.mulf %544, %522 : vector<8x128xf32>
    %555 = arith.addf %553, %554 : vector<8x128xf32>
    %556 = vector.broadcast %c4_i32_118 : i32 to vector<8x1xi32>
    %557 = arith.cmpi sgt, %0, %556 : vector<8x1xi32>
    %558 = vector.shape_cast %557 : vector<8x1xi1> to vector<8x1xi1>
    %559 = vector.broadcast %558 : vector<8x1xi1> to vector<8x128xi1>
    %560 = arith.select %559, %555, %522 : vector<8x128xi1>, vector<8x128xf32>
    %c5_i32_125 = arith.constant 5 : i32
    %561 = arith.index_cast %c5_i32_125 : i32 to index
    %c0_126 = arith.constant 0 : index
    %c0_127 = arith.constant 0 : index
    %562 = vector.load %arg10[%561, %c0_126, %c0_127] : memref<8x8x384xbf16, #tpu.memory_space<vmem>>, vector<1x8x384xbf16>
    %563 = vector.shape_cast %562 : vector<1x8x384xbf16> to vector<8x384xbf16>
    %564 = arith.extf %563 : vector<8x384xbf16> to vector<8x384xf32>
    %565 = arith.truncf %560 : vector<8x128xf32> to vector<8x128xbf16>
    %cst_128 = arith.constant dense<0.000000e+00> : vector<8x384xf32>
    %566 = tpu.matmul %565, %365, %cst_128 {dimension_numbers = #tpu.dot_dimension_numbers<[1], [0], [0], [1], [0, 0, 1, 1], [], []>} : vector<8x128xbf16>, vector<128x384xbf16>, vector<8x384xf32> -> vector<8x384xf32>
    %567 = vector.extract_strided_slice %564 {offsets = [0, 0], sizes = [8, 128], strides = [1, 1]} : vector<8x384xf32> to vector<8x128xf32>
    %568 = vector.extract_strided_slice %566 {offsets = [0, 0], sizes = [8, 128], strides = [1, 1]} : vector<8x384xf32> to vector<8x128xf32>
    %569 = arith.addf %567, %568 : vector<8x128xf32>
    %570 = arith.negf %569 : vector<8x128xf32>
    %571 = math.exp %570 : vector<8x128xf32>
    %cst_129 = arith.constant 1.000000e+00 : f32
    %572 = vector.broadcast %cst_129 : f32 to vector<8x128xf32>
    %573 = arith.addf %572, %571 : vector<8x128xf32>
    %574 = arith.divf %572, %573 : vector<8x128xf32>
    %575 = vector.extract_strided_slice %564 {offsets = [0, 128], sizes = [8, 128], strides = [1, 1]} : vector<8x384xf32> to vector<8x128xf32>
    %576 = vector.extract_strided_slice %566 {offsets = [0, 128], sizes = [8, 128], strides = [1, 1]} : vector<8x384xf32> to vector<8x128xf32>
    %577 = arith.addf %575, %576 : vector<8x128xf32>
    %578 = arith.negf %577 : vector<8x128xf32>
    %579 = math.exp %578 : vector<8x128xf32>
    %cst_130 = arith.constant 1.000000e+00 : f32
    %580 = vector.broadcast %cst_130 : f32 to vector<8x128xf32>
    %581 = arith.addf %580, %579 : vector<8x128xf32>
    %582 = arith.divf %580, %581 : vector<8x128xf32>
    %583 = vector.extract_strided_slice %564 {offsets = [0, 256], sizes = [8, 128], strides = [1, 1]} : vector<8x384xf32> to vector<8x128xf32>
    %584 = vector.extract_strided_slice %566 {offsets = [0, 256], sizes = [8, 128], strides = [1, 1]} : vector<8x384xf32> to vector<8x128xf32>
    %585 = arith.addf %584, %369 : vector<8x128xf32>
    %586 = arith.mulf %574, %585 : vector<8x128xf32>
    %587 = arith.addf %583, %586 : vector<8x128xf32>
    %588 = math.tanh %587 : vector<8x128xf32>
    %cst_131 = arith.constant 1.000000e+00 : f32
    %589 = vector.broadcast %cst_131 : f32 to vector<8x128xf32>
    %590 = arith.subf %589, %582 : vector<8x128xf32>
    %591 = arith.mulf %590, %588 : vector<8x128xf32>
    %592 = arith.mulf %582, %560 : vector<8x128xf32>
    %593 = arith.addf %591, %592 : vector<8x128xf32>
    %594 = vector.broadcast %c5_i32_125 : i32 to vector<8x1xi32>
    %595 = arith.cmpi sgt, %0, %594 : vector<8x1xi32>
    %596 = vector.shape_cast %595 : vector<8x1xi1> to vector<8x1xi1>
    %597 = vector.broadcast %596 : vector<8x1xi1> to vector<8x128xi1>
    %598 = arith.select %597, %593, %560 : vector<8x128xi1>, vector<8x128xf32>
    %c6_i32_132 = arith.constant 6 : i32
    %599 = arith.index_cast %c6_i32_132 : i32 to index
    %c0_133 = arith.constant 0 : index
    %c0_134 = arith.constant 0 : index
    %600 = vector.load %arg10[%599, %c0_133, %c0_134] : memref<8x8x384xbf16, #tpu.memory_space<vmem>>, vector<1x8x384xbf16>
    %601 = vector.shape_cast %600 : vector<1x8x384xbf16> to vector<8x384xbf16>
    %602 = arith.extf %601 : vector<8x384xbf16> to vector<8x384xf32>
    %603 = arith.truncf %598 : vector<8x128xf32> to vector<8x128xbf16>
    %cst_135 = arith.constant dense<0.000000e+00> : vector<8x384xf32>
    %604 = tpu.matmul %603, %365, %cst_135 {dimension_numbers = #tpu.dot_dimension_numbers<[1], [0], [0], [1], [0, 0, 1, 1], [], []>} : vector<8x128xbf16>, vector<128x384xbf16>, vector<8x384xf32> -> vector<8x384xf32>
    %605 = vector.extract_strided_slice %602 {offsets = [0, 0], sizes = [8, 128], strides = [1, 1]} : vector<8x384xf32> to vector<8x128xf32>
    %606 = vector.extract_strided_slice %604 {offsets = [0, 0], sizes = [8, 128], strides = [1, 1]} : vector<8x384xf32> to vector<8x128xf32>
    %607 = arith.addf %605, %606 : vector<8x128xf32>
    %608 = arith.negf %607 : vector<8x128xf32>
    %609 = math.exp %608 : vector<8x128xf32>
    %cst_136 = arith.constant 1.000000e+00 : f32
    %610 = vector.broadcast %cst_136 : f32 to vector<8x128xf32>
    %611 = arith.addf %610, %609 : vector<8x128xf32>
    %612 = arith.divf %610, %611 : vector<8x128xf32>
    %613 = vector.extract_strided_slice %602 {offsets = [0, 128], sizes = [8, 128], strides = [1, 1]} : vector<8x384xf32> to vector<8x128xf32>
    %614 = vector.extract_strided_slice %604 {offsets = [0, 128], sizes = [8, 128], strides = [1, 1]} : vector<8x384xf32> to vector<8x128xf32>
    %615 = arith.addf %613, %614 : vector<8x128xf32>
    %616 = arith.negf %615 : vector<8x128xf32>
    %617 = math.exp %616 : vector<8x128xf32>
    %cst_137 = arith.constant 1.000000e+00 : f32
    %618 = vector.broadcast %cst_137 : f32 to vector<8x128xf32>
    %619 = arith.addf %618, %617 : vector<8x128xf32>
    %620 = arith.divf %618, %619 : vector<8x128xf32>
    %621 = vector.extract_strided_slice %602 {offsets = [0, 256], sizes = [8, 128], strides = [1, 1]} : vector<8x384xf32> to vector<8x128xf32>
    %622 = vector.extract_strided_slice %604 {offsets = [0, 256], sizes = [8, 128], strides = [1, 1]} : vector<8x384xf32> to vector<8x128xf32>
    %623 = arith.addf %622, %369 : vector<8x128xf32>
    %624 = arith.mulf %612, %623 : vector<8x128xf32>
    %625 = arith.addf %621, %624 : vector<8x128xf32>
    %626 = math.tanh %625 : vector<8x128xf32>
    %cst_138 = arith.constant 1.000000e+00 : f32
    %627 = vector.broadcast %cst_138 : f32 to vector<8x128xf32>
    %628 = arith.subf %627, %620 : vector<8x128xf32>
    %629 = arith.mulf %628, %626 : vector<8x128xf32>
    %630 = arith.mulf %620, %598 : vector<8x128xf32>
    %631 = arith.addf %629, %630 : vector<8x128xf32>
    %632 = vector.broadcast %c6_i32_132 : i32 to vector<8x1xi32>
    %633 = arith.cmpi sgt, %0, %632 : vector<8x1xi32>
    %634 = vector.shape_cast %633 : vector<8x1xi1> to vector<8x1xi1>
    %635 = vector.broadcast %634 : vector<8x1xi1> to vector<8x128xi1>
    %636 = arith.select %635, %631, %598 : vector<8x128xi1>, vector<8x128xf32>
    %c7_i32_139 = arith.constant 7 : i32
    %637 = arith.index_cast %c7_i32_139 : i32 to index
    %c0_140 = arith.constant 0 : index
    %c0_141 = arith.constant 0 : index
    %638 = vector.load %arg10[%637, %c0_140, %c0_141] : memref<8x8x384xbf16, #tpu.memory_space<vmem>>, vector<1x8x384xbf16>
    %639 = vector.shape_cast %638 : vector<1x8x384xbf16> to vector<8x384xbf16>
    %640 = arith.extf %639 : vector<8x384xbf16> to vector<8x384xf32>
    %641 = arith.truncf %636 : vector<8x128xf32> to vector<8x128xbf16>
    %cst_142 = arith.constant dense<0.000000e+00> : vector<8x384xf32>
    %642 = tpu.matmul %641, %365, %cst_142 {dimension_numbers = #tpu.dot_dimension_numbers<[1], [0], [0], [1], [0, 0, 1, 1], [], []>} : vector<8x128xbf16>, vector<128x384xbf16>, vector<8x384xf32> -> vector<8x384xf32>
    %643 = vector.extract_strided_slice %640 {offsets = [0, 0], sizes = [8, 128], strides = [1, 1]} : vector<8x384xf32> to vector<8x128xf32>
    %644 = vector.extract_strided_slice %642 {offsets = [0, 0], sizes = [8, 128], strides = [1, 1]} : vector<8x384xf32> to vector<8x128xf32>
    %645 = arith.addf %643, %644 : vector<8x128xf32>
    %646 = arith.negf %645 : vector<8x128xf32>
    %647 = math.exp %646 : vector<8x128xf32>
    %cst_143 = arith.constant 1.000000e+00 : f32
    %648 = vector.broadcast %cst_143 : f32 to vector<8x128xf32>
    %649 = arith.addf %648, %647 : vector<8x128xf32>
    %650 = arith.divf %648, %649 : vector<8x128xf32>
    %651 = vector.extract_strided_slice %640 {offsets = [0, 128], sizes = [8, 128], strides = [1, 1]} : vector<8x384xf32> to vector<8x128xf32>
    %652 = vector.extract_strided_slice %642 {offsets = [0, 128], sizes = [8, 128], strides = [1, 1]} : vector<8x384xf32> to vector<8x128xf32>
    %653 = arith.addf %651, %652 : vector<8x128xf32>
    %654 = arith.negf %653 : vector<8x128xf32>
    %655 = math.exp %654 : vector<8x128xf32>
    %cst_144 = arith.constant 1.000000e+00 : f32
    %656 = vector.broadcast %cst_144 : f32 to vector<8x128xf32>
    %657 = arith.addf %656, %655 : vector<8x128xf32>
    %658 = arith.divf %656, %657 : vector<8x128xf32>
    %659 = vector.extract_strided_slice %640 {offsets = [0, 256], sizes = [8, 128], strides = [1, 1]} : vector<8x384xf32> to vector<8x128xf32>
    %660 = vector.extract_strided_slice %642 {offsets = [0, 256], sizes = [8, 128], strides = [1, 1]} : vector<8x384xf32> to vector<8x128xf32>
    %661 = arith.addf %660, %369 : vector<8x128xf32>
    %662 = arith.mulf %650, %661 : vector<8x128xf32>
    %663 = arith.addf %659, %662 : vector<8x128xf32>
    %664 = math.tanh %663 : vector<8x128xf32>
    %cst_145 = arith.constant 1.000000e+00 : f32
    %665 = vector.broadcast %cst_145 : f32 to vector<8x128xf32>
    %666 = arith.subf %665, %658 : vector<8x128xf32>
    %667 = arith.mulf %666, %664 : vector<8x128xf32>
    %668 = arith.mulf %658, %636 : vector<8x128xf32>
    %669 = arith.addf %667, %668 : vector<8x128xf32>
    %670 = vector.broadcast %c7_i32_139 : i32 to vector<8x1xi32>
    %671 = arith.cmpi sgt, %0, %670 : vector<8x1xi32>
    %672 = vector.shape_cast %671 : vector<8x1xi1> to vector<8x1xi1>
    %673 = vector.broadcast %672 : vector<8x1xi1> to vector<8x128xi1>
    %674 = arith.select %673, %669, %636 : vector<8x128xi1>, vector<8x128xf32>
    %c8_i32_146 = arith.constant 8 : i32
    %675 = arith.truncf %674 : vector<8x128xf32> to vector<8x128xbf16>
    %c0_147 = arith.constant 0 : index
    %c0_148 = arith.constant 0 : index
    %676 = vector.load %arg7[%c0_147, %c0_148] : memref<128x128xbf16, #tpu.memory_space<vmem>>, vector<128x128xbf16>
    %cst_149 = arith.constant dense<0.000000e+00> : vector<8x128xf32>
    %677 = tpu.matmul %675, %676, %cst_149 {dimension_numbers = #tpu.dot_dimension_numbers<[1], [0], [0], [1], [0, 0, 1, 1], [], []>} : vector<8x128xbf16>, vector<128x128xbf16>, vector<8x128xf32> -> vector<8x128xf32>
    %c0_150 = arith.constant 0 : index
    %c0_151 = arith.constant 0 : index
    %678 = vector.load %arg8[%c0_150, %c0_151] : memref<1x128xf32, #tpu.memory_space<vmem>>, vector<1x128xf32>
    %679 = vector.broadcast %678 : vector<1x128xf32> to vector<8x128xf32>
    %680 = arith.addf %677, %679 : vector<8x128xf32>
    %c0_152 = arith.constant 0 : index
    %c0_153 = arith.constant 0 : index
    %681 = vector.load %arg9[%c0_152, %c0_153] : memref<8x128xf32, #tpu.memory_space<vmem>>, vector<8x128xf32>
    tpu.vector_store %arg9[%c0_152, %c0_153], %680 {strides = array<i32>} : memref<8x128xf32, #tpu.memory_space<vmem>>, vector<8x128xf32>,
    return
  }
  func.func @transform_0(%arg0: i32) -> (i32, i32, i32) {
    %c0_i32 = arith.constant 0 : i32
    %c0_i32_0 = arith.constant 0 : i32
    %c0_i32_1 = arith.constant 0 : i32
    return %c0_i32, %arg0, %c0_i32_0 : i32, i32, i32
  }
  func.func @transform_1(%arg0: i32) -> (i32, i32) {
    %c0_i32 = arith.constant 0 : i32
    %c0_i32_0 = arith.constant 0 : i32
    return %arg0, %c0_i32 : i32, i32
  }
  func.func @transform_2(%arg0: i32) -> (i32, i32, i32) {
    %c0_i32 = arith.constant 0 : i32
    %c0_i32_0 = arith.constant 0 : i32
    %c0_i32_1 = arith.constant 0 : i32
    %c0_i32_2 = arith.constant 0 : i32
    return %c0_i32, %c0_i32_0, %c0_i32_1 : i32, i32, i32
  }
  func.func @transform_3(%arg0: i32) -> (i32, i32, i32) {
    %c0_i32 = arith.constant 0 : i32
    %c0_i32_0 = arith.constant 0 : i32
    %c0_i32_1 = arith.constant 0 : i32
    %c0_i32_2 = arith.constant 0 : i32
    return %c0_i32, %c0_i32_0, %c0_i32_1 : i32, i32, i32
  }
  func.func @transform_4(%arg0: i32) -> (i32, i32, i32) {
    %c0_i32 = arith.constant 0 : i32
    %c0_i32_0 = arith.constant 0 : i32
    %c0_i32_1 = arith.constant 0 : i32
    %c0_i32_2 = arith.constant 0 : i32
    return %c0_i32, %c0_i32_0, %c0_i32_1 : i32, i32, i32
  }
  func.func @transform_5(%arg0: i32) -> (i32, i32, i32) {
    %c0_i32 = arith.constant 0 : i32
    %c0_i32_0 = arith.constant 0 : i32
    %c0_i32_1 = arith.constant 0 : i32
    %c0_i32_2 = arith.constant 0 : i32
    return %c0_i32, %c0_i32_0, %c0_i32_1 : i32, i32, i32
  }
  func.func @transform_6(%arg0: i32) -> (i32, i32) {
    %c0_i32 = arith.constant 0 : i32
    %c0_i32_0 = arith.constant 0 : i32
    %c0_i32_1 = arith.constant 0 : i32
    return %c0_i32, %c0_i32_0 : i32, i32
  }
  func.func @transform_7(%arg0: i32) -> (i32, i32) {
    %c0_i32 = arith.constant 0 : i32
    %c0_i32_0 = arith.constant 0 : i32
    %c0_i32_1 = arith.constant 0 : i32
    return %c0_i32, %c0_i32_0 : i32, i32
  }
  func.func @transform_8(%arg0: i32) -> (i32, i32) {
    %c0_i32 = arith.constant 0 : i32
    %c0_i32_0 = arith.constant 0 : i32
    return %arg0, %c0_i32 : i32, i32
  }
}

</mosaic_0001>

<bundles_post_ra>
// kernel: tpu_custom_call.1
= control target key start
LH: loop header
LB: loop body
LE: loop exit
PB: predicated region body
PF: predicated region fallthrough
CT: control target
= control target key end

     0   :  { %13 = vsyncpa [#allocation5], 0  ;;  %s4098_s0 = inlined_call_operand.hbm [shape: bf16[8,8,384], index: 0, kind: input, shape index: {}]   ;;  %s4099_s1 = inlined_call_operand.vmem [shape: s32[8,1], index: 1, kind: input, shape index: {}]   ;;  %s4100_s2 = inlined_call_operand.hbm [shape: bf16[1,128,384], index: 2, kind: input, shape index: {}]   ;;  %s4101_s3 = inlined_call_operand.hbm [shape: bf16[2,128,384], index: 3, kind: input, shape index: {}]   ;;  %s4102_s4 = inlined_call_operand.vmem [shape: f32[1,1,384], index: 4, kind: input, shape index: {}]   ;;  %s4103_s5 = inlined_call_operand.vmem [shape: f32[2,1,128], index: 5, kind: input, shape index: {}]   ;;  %s4104_s6 = inlined_call_operand.hbm [shape: bf16[128,128], index: 6, kind: input, shape index: {}]   ;;  %s4105_s7 = inlined_call_operand.vmem [shape: f32[1,128], index: 7, kind: input, shape index: {}]   ;;  %s4106_s8 = inlined_call_operand.hbm [shape: f32[8,128], index: 8, kind: output, shape index: {}]  }
   0x1   :  { %14 = vsyncpa [#allocation8], 0 }
   0x2   :  { %15 = vsyncpa [#allocation11], 0 }
   0x3   :  { %16 = vsyncpa [#allocation6], 0  ;;  %s36_s29 = sshll.u32 %s4100_s2, 4  ;;  %s3203_s30 = smov [#allocation7]   ;;  %s37_s29 = int_to_ptr.hbm [resolvable:$true] %s36_s29 }
   0x4   :  { %s38_s9 = sshll.u32 %s3203_s30, 4  ;;  %s21_s12 = sshll.u32 %s4098_s0, 4  ;;  %s39_s9 = int_to_ptr.vmem [resolvable:$true] %s38_s9  ;;  %s22_s12 = int_to_ptr.hbm [resolvable:$true] %s21_s12 }
   0x5   :  { %s3204_s13 = smov 192   ;;  %s3205_s14 = smov 12  }
   0x6   :  { %44 = dma.hbm_to_vmem [thread:$0]  %s37_s29, 3072, %s39_s9, [#allocation8], %s3204_s13, %s3204_s13, %s3205_s14  }
   0x7   :  { %s3206_s15 = smov [#allocation4]   ;;  %s49_s19 = sshll.u32 %s4101_s3, 4  ;;  %s50_s19 = int_to_ptr.hbm [resolvable:$true] %s49_s19 }
   0x8   :  { %s23_s16 = sshll.u32 %s3206_s15, 4  ;;  %s66_s21 = sshll.u32 %s4104_s6, 4  ;;  %s24_s16 = int_to_ptr.vmem [resolvable:$true] %s23_s16  ;;  %s67_s21 = int_to_ptr.hbm [resolvable:$true] %s66_s21 }
   0x9   :  { %29 = dma.hbm_to_vmem [thread:$0]  %s22_s12, 1536, %s24_s16, [#allocation5], %s3204_s13, %s3204_s13, %s3205_s14  }
   0xa   :  { %s3207_s22 = smov [#allocation9]   ;;  %s3208_s0 = smov [#allocation10]  }
   0xb   :  { %s51_s23 = sshll.u32 %s3207_s22, 4  ;;  %s68_s24 = sshll.u32 %s3208_s0, 4  ;;  %s52_s23 = int_to_ptr.vmem [resolvable:$true] %s51_s23  ;;  %s69_s24 = int_to_ptr.vmem [resolvable:$true] %s68_s24 }
   0xc   :  { %57 = dma.hbm_to_vmem [thread:$0]  %s50_s19, 6144, %s52_s23, [#allocation8], %s3204_s13, %s3204_s13, %s3205_s14  }
   0xd   :  { %s3209_s25 = smov 64   ;;  %s3210_s26 = smov 4  }
   0xe   :  { %74 = dma.hbm_to_vmem [thread:$0]  %s67_s21, 1024, %s69_s24, [#allocation11], %s3209_s25, %s3209_s25, %s3210_s26  }
   0xf   :  { %3195 = dma.done.wait [#allocation5], 1536  }
  0x10   :  { %3196 = vsyncadd [#allocation5], 4294965760 }
  0x11   :  { %3197 = dma.done.wait [#allocation8], 9216  }
  0x12   :  { %3198 = vsyncadd [#allocation8], 4294958080 }
  0x13   :  { %3199 = dma.done.wait [#allocation11], 1024  }
  0x14   :  { %3200 = vsyncadd [#allocation11], 4294966272  ;;  %v2512_v0 = vld [vmem:[#allocation9 + $0xa8] sm:$0xf]  ;;  %v2835_v1 = vld [vmem:[#allocation9 + $0xb0] sm:$0xf0] }
  0x15   :  { %v2834_v2 = vld [vmem:[#allocation9 + $0xac] sm:$0xf]  ;;  %v3270_v3 = vor.u32 %v2835_v1, %v2512_v0  ;;  %v2514_v4 = vld [vmem:[#allocation9 + $0xb4] sm:$0xf0]  ;;  %v2500_v5 = vld [vmem:[#allocation9 + $0x90] sm:$0xf] }
  0x16   :  { %v2832_v6 = vld [vmem:[#allocation9 + $0x98] sm:$0xf0]  ;;  %v3272_v7 = vor.u32 %v2834_v2, %v2514_v4  ;;  %v2831_v8 = vld [vmem:[#allocation9 + $0x94] sm:$0xf]  ;;  %v2502_v9 = vld [vmem:[#allocation9 + $0x9c] sm:$0xf0] }
  0x17   :  { %264 = vmatpush.bf16.msra.mxu0 %v3270_v3  ;;  %v3275_v10 = vor.u32 %v2832_v6, %v2500_v5  ;;  %366 = vmatpush.bf16.msra.mxu3 %v3270_v3  ;;  %v3279_v11 = vor.u32 %v2831_v8, %v2502_v9  ;;  %v2488_v12 = vld [vmem:[#allocation9 + $0x78] sm:$0xf]  ;;  %v2829_v13 = vld [vmem:[#allocation9 + $0x80] sm:$0xf0]  ;;  %v2828_v14 = vld [vmem:[#allocation9 + $0x7c] sm:$0xf] }
  0x18   :  { %277 = vmatpush.bf16.msra.mxu1 %v3272_v7  ;;  %v2490_v15 = vld [vmem:[#allocation9 + $0x84] sm:$0xf0]  ;;  %v2520_v16 = vld [vmem:[#allocation9 + $0xb0] sm:$0xf]  ;;  %v2836_v17 = vld [vmem:[#allocation9 + $0xb8] sm:$0xf0]  ;;  %v3284_v19 = vor.u32 %v2829_v13, %v2488_v12 }
  0x19   :  { %v3281_v18 = vor.u32 %v2836_v17, %v2520_v16  ;;  %v2508_v20 = vld [vmem:[#allocation9 + $0x98] sm:$0xf]  ;;  %v2833_v21 = vld [vmem:[#allocation9 + $0xa0] sm:$0xf0]  ;;  %v3288_v22 = vor.u32 %v2828_v14, %v2490_v15  ;;  %v2476_v23 = vld [vmem:[#allocation9 + $0x60] sm:$0xf] }
  0x1a   :  { %v2826_v24 = vld [vmem:[#allocation9 + $0x68] sm:$0xf0]  ;;  %v2825_v25 = vld [vmem:[#allocation9 + $0x64] sm:$0xf]  ;;  %v3291_v26 = vor.u32 %v2833_v21, %v2508_v20  ;;  %v2478_v27 = vld [vmem:[#allocation9 + $0x6c] sm:$0xf0] }
  0x1b   :  { %265 = vmatpush.bf16.msra.mxu0 %v3275_v10  ;;  %367 = vmatpush.bf16.msra.mxu3 %v3275_v10  ;;  %v2496_v28 = vld [vmem:[#allocation9 + $0x80] sm:$0xf]  ;;  %v2830_v29 = vld [vmem:[#allocation9 + $0x88] sm:$0xf0]  ;;  %v3294_v30 = vor.u32 %v2826_v24, %v2476_v23  ;;  %v3298_v31 = vor.u32 %v2825_v25, %v2478_v27  ;;  %v2464_v32 = vld [vmem:[#allocation9 + $0x48] sm:$0xf] }
  0x1c   :  { %278 = vmatpush.bf16.msra.mxu1 %v3279_v11  ;;  %290 = vmatpush.bf16.msra.mxu2 %v3281_v18  ;;  %v2823_v33 = vld [vmem:[#allocation9 + $0x50] sm:$0xf0]  ;;  %v2822_v34 = vld [vmem:[#allocation9 + $0x4c] sm:$0xf]  ;;  %v3301_v35 = vor.u32 %v2830_v29, %v2496_v28  ;;  %v2466_v36 = vld [vmem:[#allocation9 + $0x54] sm:$0xf0] }
  0x1d   :  { %v2484_v37 = vld [vmem:[#allocation9 + $0x68] sm:$0xf]  ;;  %v2827_v38 = vld [vmem:[#allocation9 + $0x70] sm:$0xf0]  ;;  %v3306_v39 = vld [vmem:[%s4099_s1] sm:$0xff]  ;;  %v3309_v40 = vor.u32 %v2823_v33, %v2464_v32  ;;  %v3211_v44 = vmov 0   ;;  %v3313_v45 = vor.u32 %v2822_v34, %v2466_v36 }
  0x1e   :  { %v2452_v41 = vld [vmem:[#allocation9 + $0x30] sm:$0xf]  ;;  %v2820_v42 = vld [vmem:[#allocation9 + $0x38] sm:$0xf0]  ;;  %v2819_v43 = vld [vmem:[#allocation9 + $0x34] sm:$0xf]  ;;  %2907 = vset.pattern.permute.xlu0 %v3211_v44  ;;  %v3316_v47 = vor.u32 %v2827_v38, %v2484_v37  ;;  %2908 = vset.pattern.permute.xlu1 %v3211_v44 }
  0x1f   :  { %266 = vmatpush.bf16.msra.mxu0 %v3284_v19  ;;  %368 = vmatpush.bf16.msra.mxu3 %v3284_v19  ;;  %v2454_v46 = vld [vmem:[#allocation9 + $0x3c] sm:$0xf0]  ;;  %v2472_v48 = vld [vmem:[#allocation9 + $0x50] sm:$0xf]  ;;  %vm351_vm0 = vcmp.gt.s32.totalorder %v3306_v39, 0  ;;  %v3324_v51 = vor.u32 %v2820_v42, %v2452_v41  ;;  %vm453_vm1 = vcmp.gt.s32.totalorder %v3306_v39, 1 }
  0x20   :  { %279 = vmatpush.bf16.msra.mxu1 %v3288_v22  ;;  %291 = vmatpush.bf16.msra.mxu2 %v3291_v26  ;;  %v2824_v49 = vld [vmem:[#allocation9 + $0x58] sm:$0xf0]  ;;  %v352_v50 = vsel %vm351_vm0, 1, %v3211_v44  ;;  %v2440_v52 = vld [vmem:[#allocation9 + $0x18] sm:$0xf]  ;;  %v3327_v53 = vor.u32 %v2819_v43, %v2454_v46  ;;  %v454_v61 = vsel %vm453_vm1, 1, %v3211_v44 }
  0x21   :  { %354 = vperm.xlu0 %2907, %v352_v50   ;;  %2909 = vset.pattern.permute.xlu2 %v3211_v44  ;;  %v2817_v54 = vld [vmem:[#allocation9 + $0x20] sm:$0xf0]  ;;  %v2816_v55 = vld [vmem:[#allocation9 + $0x1c] sm:$0xf]  ;;  %v3330_v56 = vor.u32 %v2824_v49, %v2472_v48  ;;  %v2442_v57 = vld [vmem:[#allocation9 + $0x24] sm:$0xf0] }
  0x22   :  { %v2460_v58 = vld [vmem:[#allocation9 + $0x38] sm:$0xf]  ;;  %v2821_v59 = vld [vmem:[#allocation9 + $0x40] sm:$0xf0]  ;;  %v3335_v60 = vor.u32 %v2817_v54, %v2440_v52  ;;  %v3339_v62 = vor.u32 %v2816_v55, %v2442_v57  ;;  %v2428_v63 = vld [vmem:[#allocation9] sm:$0xf] }
  0x23   :  { %267 = vmatpush.bf16.msra.mxu0 %v3294_v30  ;;  %369 = vmatpush.bf16.msra.mxu3 %v3294_v30  ;;  %v2814_v0 = vld [vmem:[#allocation9 + $0x8] sm:$0xf0]  ;;  %v2813_v1 = vld [vmem:[#allocation9 + $0x4] sm:$0xf]  ;;  %v3342_v2 = vor.u32 %v2821_v59, %v2460_v58  ;;  %v2430_v4 = vld [vmem:[#allocation9 + $0xc] sm:$0xf0] }
  0x24   :  { %280 = vmatpush.bf16.msra.mxu1 %v3298_v31  ;;  %292 = vmatpush.bf16.msra.mxu2 %v3301_v35  ;;  %v2448_v5 = vld [vmem:[#allocation9 + $0x20] sm:$0xf]  ;;  %v2818_v6 = vld [vmem:[#allocation9 + $0x28] sm:$0xf0]  ;;  %v3346_v8 = vor.u32 %v2814_v0, %v2428_v63  ;;  %v3349_v9 = vor.u32 %v2813_v1, %v2430_v4  ;;  %vm968_vm2 = vcmp.gt.s32.totalorder %v3306_v39, 6  ;;  %vm556_vm13 = vcmp.gt.s32.totalorder %v3306_v39, 2 }
  0x25   :  { %v3352_v12 = vor.u32 %v2818_v6, %v2448_v5  ;;  %v2436_v13 = vld [vmem:[#allocation9 + $0x8] sm:$0xf]  ;;  %v2815_v14 = vld [vmem:[#allocation9 + $0x10] sm:$0xf0]  ;;  %v969_v15 = vsel %vm968_vm2, 1, %v3211_v44  ;;  %v131_v17 = vld [vmem:[#allocation4] sm:$0xff] }
  0x26   :  { %v3360_v16 = vor.u32 %v2815_v14, %v2436_v13  ;;  %v133_v20 = vunpack.c.l.bf16 %v131_v17  ;;  %v134_v21 = vunpack.c.h.bf16 %v131_v17  ;;  %v3426_v50 = vld [vmem:[%s4103_s5] ss:$0 sm:$0xff]  ;;  %v132_v59 = vld [vmem:[#allocation4 + $0x8] sm:$0xf]  ;;  %vm659_vm14 = vcmp.gt.s32.totalorder %v3306_v39, 3  ;;  %s3212_s14 = smov [#allocation12]  }
  0x27   :  { %268 = vmatpush.bf16.msra.mxu0 %v3309_v40  ;;  %370 = vmatpush.bf16.msra.mxu3 %v3309_v40  ;;  %v135_v4 = vunpack.c.l.bf16 %v132_v59  ;;  %s2412_s15 = sshll.u32 %s3212_s14, 4  ;;  %s2414_s18 = sshll.u32 %s4106_s8, 4  ;;  %s2413_s15 = int_to_ptr.vmem [resolvable:$true] %s2412_s15  ;;  %s2415_s18 = int_to_ptr.hbm [resolvable:$true] %s2414_s18 }
  0x28   :  { %281 = vmatpush.bf16.msra.mxu1 %v3313_v45  ;;  %293 = vmatpush.bf16.msra.mxu2 %v3316_v47 }
  0x29   :  { %456 = vperm.xlu0 %2907, %v454_v61  }
  0x2b   :  { %269 = vmatpush.bf16.msra.mxu0 %v3324_v51  ;;  %371 = vmatpush.bf16.msra.mxu3 %v3324_v51 }
  0x2c   :  { %282 = vmatpush.bf16.msra.mxu1 %v3327_v53  ;;  %294 = vmatpush.bf16.msra.mxu2 %v3330_v56 }
  0x2f   :  { %270 = vmatpush.bf16.msra.mxu0 %v3335_v60  ;;  %372 = vmatpush.bf16.msra.mxu3 %v3335_v60 }
  0x30   :  { %283 = vmatpush.bf16.msra.mxu1 %v3339_v62  ;;  %295 = vmatpush.bf16.msra.mxu2 %v3342_v2 }
  0x31   :  { %971 = vperm.xlu0 %2907, %v969_v15  }
  0x33   :  { %271 = vmatpush.bf16.msra.mxu0 %v3346_v8  ;;  %373 = vmatpush.bf16.msra.mxu3 %v3346_v8 }
  0x34   :  { %284 = vmatpush.bf16.msra.mxu1 %v3349_v9  ;;  %296 = vmatpush.bf16.msra.mxu2 %v3352_v12 }
  0x36   :  { %272 = vmatmul.bf16.vlgmr.msra.gmra.mxu0 %v3211_v44 }
  0x37   :  { %379 = vmatpush.bf16.msrb.mxu0 %v3272_v7  ;;  %285 = vmatmul.bf16.vlgmr.msra.gmra.mxu1 %v3211_v44 }
  0x38   :  { %392 = vmatpush.bf16.msrb.mxu1 %v3281_v18  ;;  %297 = vmatpush.bf16.msra.mxu2 %v3360_v16 }
  0x39   :  { %482 = vmatpush.bf16.msrb.mxu3 %v3272_v7 }
  0x3b   :  { %380 = vmatpush.bf16.msrb.mxu0 %v3279_v11  ;;  %298 = vmatmul.bf16.vlgmr.msra.gmra.mxu2 %v3211_v44 }
  0x3c   :  { %393 = vmatpush.bf16.msrb.mxu1 %v3291_v26  ;;  %469 = vmatpush.bf16.msrb.mxu2 %v3270_v3 }
  0x3d   :  { %483 = vmatpush.bf16.msrb.mxu3 %v3279_v11 }
  0x3f   :  { %381 = vmatpush.bf16.msrb.mxu0 %v3288_v22 }
  0x40   :  { %394 = vmatpush.bf16.msrb.mxu1 %v3301_v35  ;;  %470 = vmatpush.bf16.msrb.mxu2 %v3275_v10 }
  0x41   :  { %484 = vmatpush.bf16.msrb.mxu3 %v3288_v22 }
  0x43   :  { %382 = vmatpush.bf16.msrb.mxu0 %v3298_v31 }
  0x44   :  { %395 = vmatpush.bf16.msrb.mxu1 %v3316_v47  ;;  %471 = vmatpush.bf16.msrb.mxu2 %v3284_v19 }
  0x45   :  { %485 = vmatpush.bf16.msrb.mxu3 %v3298_v31 }
  0x47   :  { %383 = vmatpush.bf16.msrb.mxu0 %v3313_v45 }
  0x48   :  { %396 = vmatpush.bf16.msrb.mxu1 %v3330_v56  ;;  %472 = vmatpush.bf16.msrb.mxu2 %v3294_v30 }
  0x49   :  { %486 = vmatpush.bf16.msrb.mxu3 %v3313_v45 }
  0x4b   :  { %384 = vmatpush.bf16.msrb.mxu0 %v3327_v53 }
  0x4c   :  { %397 = vmatpush.bf16.msrb.mxu1 %v3342_v2  ;;  %473 = vmatpush.bf16.msrb.mxu2 %v3309_v40 }
  0x4d   :  { %487 = vmatpush.bf16.msrb.mxu3 %v3327_v53 }
  0x4f   :  { %385 = vmatpush.bf16.msrb.mxu0 %v3339_v62 }
  0x50   :  { %398 = vmatpush.bf16.msrb.mxu1 %v3352_v12  ;;  %474 = vmatpush.bf16.msrb.mxu2 %v3324_v51 }
  0x51   :  { %488 = vmatpush.bf16.msrb.mxu3 %v3339_v62 }
  0x53   :  { %386 = vmatpush.bf16.msrb.mxu0 %v3349_v9 }
  0x54   :  { %399 = vmatpush.bf16.msrb.mxu1 %v3360_v16  ;;  %475 = vmatpush.bf16.msrb.mxu2 %v3335_v60 }
  0x55   :  { %489 = vmatpush.bf16.msrb.mxu3 %v3349_v9 }
  0x57   :  { %495 = vmatpush.bf16.msra.mxu0 %v3281_v18 }
  0x58   :  { %572 = vmatpush.bf16.msra.mxu1 %v3270_v3  ;;  %476 = vmatpush.bf16.msrb.mxu2 %v3346_v8 }
  0x5b   :  { %496 = vmatpush.bf16.msra.mxu0 %v3291_v26 }
  0x5c   :  { %585 = vmatpush.bf16.msra.mxu2 %v3272_v7  ;;  %573 = vmatpush.bf16.msra.mxu1 %v3275_v10 }
  0x5f   :  { %497 = vmatpush.bf16.msra.mxu0 %v3301_v35 }
  0x60   :  { %586 = vmatpush.bf16.msra.mxu2 %v3279_v11  ;;  %574 = vmatpush.bf16.msra.mxu1 %v3284_v19 }
  0x63   :  { %498 = vmatpush.bf16.msra.mxu0 %v3316_v47 }
  0x64   :  { %587 = vmatpush.bf16.msra.mxu2 %v3288_v22  ;;  %575 = vmatpush.bf16.msra.mxu1 %v3294_v30 }
  0x67   :  { %499 = vmatpush.bf16.msra.mxu0 %v3330_v56 }
  0x68   :  { %588 = vmatpush.bf16.msra.mxu2 %v3298_v31  ;;  %576 = vmatpush.bf16.msra.mxu1 %v3309_v40 }
  0x6b   :  { %500 = vmatpush.bf16.msra.mxu0 %v3342_v2 }
  0x6c   :  { %589 = vmatpush.bf16.msra.mxu2 %v3313_v45  ;;  %577 = vmatpush.bf16.msra.mxu1 %v3324_v51 }
  0x6f   :  { %501 = vmatpush.bf16.msra.mxu0 %v3352_v12 }
  0x70   :  { %590 = vmatpush.bf16.msra.mxu2 %v3327_v53  ;;  %578 = vmatpush.bf16.msra.mxu1 %v3335_v60 }
  0x73   :  { %502 = vmatpush.bf16.msra.mxu0 %v3360_v16 }
  0x74   :  { %591 = vmatpush.bf16.msra.mxu2 %v3339_v62  ;;  %579 = vmatpush.bf16.msra.mxu1 %v3346_v8 }
  0x78   :  { %592 = vmatpush.bf16.msra.mxu2 %v3349_v9 }
  0xb3   :  { %v273_v23 = vpop.f32.mrf.mxu0 }
  0xb4   :  { %v303_v24 = vadd.f32 %v273_v23, %v133_v20  ;;  %v286_v25 = vpop.f32.mrf.mxu1 }
  0xb5   :  { %v323_v27 = vadd.f32 %v286_v25, %v134_v21 }
  0xb6   :  { %v2522_v28 = vmul.f32 -1.442695, %v303_v24 }
  0xb7   :  { %v2523_v29 = vmul.f32 -1.442695, %v323_v27 }
  0xb8   :  { %2913 = vpow2.f32 %v2522_v28  ;;  %v3429_v28 = vpop.permute.xlu0 %354 }
  0xb9   :  { %2915 = vpow2.f32 %v2523_v29  ;;  %vm356_vm11 = vcmp.eq.s32.totalorder %v3429_v28, 1 }
  0xba   :  { %vm3435_vm12 = vmpackc.low %vm356_vm11, %vm356_vm11 }
  0xbb   :  { %v275_v32 = vpop.f32.mrf.mxu0 }
  0xbc   :  { %v288_v33 = vpop.f32.mrf.mxu1 }
  0xbe   :  { %v2914_v34 = vpop.eup %2913  ;;  %v299_v36 = vpop.f32.mrf.mxu2 }
  0xbf   :  { %v2916_v37 = vpop.eup %2915  ;;  %v307_v38 = vadd.f32 1.0, %v2914_v34  ;;  %v343_v0 = vadd.f32 %v3426_v50, %v299_v36 }
  0xc0   :  { %v327_v41 = vadd.f32 1.0, %v2916_v37 }
  0xc1   :  { %2917 = vrcp.f32 %v307_v38  ;;  %v319_v55 = vand.u32 2147483648, %v307_v38  ;;  %v317_v58 = vand.u32 2147483647, %v307_v38  ;;  %vm313_vm4 = vweird.f32 %v307_v38 }
  0xc2   :  { %2919 = vrcp.f32 %v327_v41  ;;  %vm333_vm7 = vweird.f32 %v327_v41  ;;  %v339_v15 = vand.u32 2147483648, %v327_v41  ;;  %v337_v17 = vand.u32 2147483647, %v327_v41 }
  0xc3   :  { %v320_v1 = vor.u32 1.1754944e-38, %v319_v55  ;;  %vm318_vm6 = vcmp.eq.f32.partialorder %v317_v58, 8.507059e+37 }
  0xc4   :  { %v340_v23 = vor.u32 1.1754944e-38, %v339_v15  ;;  %vm338_vm10 = vcmp.eq.f32.partialorder %v337_v17, 8.507059e+37 }
  0xc6   :  { %v301_v42 = vpop.f32.mrf.mxu2 }
  0xc7   :  { %v2918_v43 = vpop.eup %2917 }
  0xc8   :  { %v2920_v46 = vpop.eup %2919  ;;  %v309_v48 = vmul.f32 %v2918_v43, %v307_v38  ;;  %vm314_vm3 = vweird.f32 %v2918_v43 }
  0xc9   :  { %v329_v49 = vmul.f32 %v2920_v46, %v327_v41  ;;  %vm315_vm5 = vmor %vm313_vm4, %vm314_vm3  ;;  %vm334_vm8 = vweird.f32 %v2920_v46  ;;  %v361_v41 = vld [vmem:[#allocation4 + $0xc] sm:$0xff]  ;;  %vm1071_vm4 = vcmp.gt.s32.totalorder %v3306_v39, 7 }
  0xca   :  { %v310_v52 = vsub.f32 1.0, %v309_v48  ;;  %vm335_vm9 = vmor %vm333_vm7, %vm334_vm8  ;;  %v364_v42 = vunpack.c.h.bf16 %v361_v41 }
  0xcb   :  { %v330_v54 = vsub.f32 1.0, %v329_v49 }
  0xcc   :  { %v311_v57 = vmul.f32 %v2918_v43, %v310_v52  ;;  %v363_v52 = vunpack.c.l.bf16 %v361_v41 }
  0xcd   :  { %v331_v61 = vmul.f32 %v2920_v46, %v330_v54 }
  0xce   :  { %v312_v63 = vadd.f32 %v2918_v43, %v311_v57 }
  0xcf   :  { %v332_v13 = vadd.f32 %v2920_v46, %v331_v61 }
  0xd0   :  { %v316_v5 = vsel %vm315_vm5, %v2918_v43, %v312_v63 }
  0xd1   :  { %v321_v6 = vsel %vm318_vm6, %v320_v1, %v316_v5  ;;  %v336_v21 = vsel %vm335_vm9, %v2920_v46, %v332_v13  ;;  %v557_v13 = vsel %vm556_vm13, 1, %v3211_v44 }
  0xd2   :  { %v344_v14 = vmul.f32 %v343_v0, %v321_v6  ;;  %v341_v24 = vsel %vm338_vm10, %v340_v23, %v336_v21  ;;  %559 = vperm.xlu1 %2908, %v557_v13  }
  0xd3   :  { %v347_v25 = vsub.f32 1.0, %v341_v24  ;;  %v349_v32 = vmul.f32 0.0, %v341_v24 }
  0xd4   :  { %v345_v20 = vadd.f32 %v344_v14, %v135_v4 }
  0xd6   :  { %2921 = vtanh.f32 %v345_v20 }
  0xdc   :  { %v2922_v27 = vpop.eup %2921 }
  0xdd   :  { %v348_v29 = vmul.f32 %v2922_v27, %v347_v25  ;;  %v660_v25 = vsel %vm659_vm14, 1, %v3211_v44 }
  0xde   :  { %662 = vperm.xlu1 %2908, %v660_v25  }
  0xdf   :  { %v350_v33 = vadd.f32 %v349_v32, %v348_v29  ;;  %v362_v29 = vld [vmem:[#allocation4 + $0x14] sm:$0xf] }
  0xe1   :  { %v3441_v36 = vsel %vm356_vm11, %v350_v33, 0.0  ;;  %v2525_v37 = vpack.c.bf16 %v350_v33, %v350_v33 }
  0xe2   :  { %v358_v38 = vpack.c.bf16 %v3441_v36, %v3441_v36 }
  0xe3   :  { %2526 = vmatmul.msk.bf16.vlgmr.msra.gmra.mxu3 %vm3435_vm12, %v2525_v37  ;;  %2529 = vmatmul.msk.bf16.vlgmr.msrb.gmra.mxu0 %vm3435_vm12, %v2525_v37 }
  0xe4   :  { %359 = vst [vmem:[#allocation3] sm:$0xf] %v358_v38  ;;  %2532 = vmatmul.msk.bf16.vlgmr.msrb.gmra.mxu1 %vm3435_vm12, %v2525_v37  ;;  %598 = vmatpush.bf16.msra.mxu3 %v3281_v18  ;;  %v365_v38 = vunpack.c.l.bf16 %v362_v29 }
  0xe5   :  { %675 = vmatpush.bf16.msrb.mxu0 %v3270_v3  ;;  %688 = vmatpush.bf16.msrb.mxu1 %v3272_v7 }
  0xe8   :  { %599 = vmatpush.bf16.msra.mxu3 %v3291_v26 }
  0xe9   :  { %676 = vmatpush.bf16.msrb.mxu0 %v3275_v10  ;;  %689 = vmatpush.bf16.msrb.mxu1 %v3279_v11 }
  0xec   :  { %600 = vmatpush.bf16.msra.mxu3 %v3301_v35 }
  0xed   :  { %677 = vmatpush.bf16.msrb.mxu0 %v3284_v19  ;;  %690 = vmatpush.bf16.msrb.mxu1 %v3288_v22 }
  0xf0   :  { %601 = vmatpush.bf16.msra.mxu3 %v3316_v47 }
  0xf1   :  { %678 = vmatpush.bf16.msrb.mxu0 %v3294_v30  ;;  %691 = vmatpush.bf16.msrb.mxu1 %v3298_v31 }
  0xf4   :  { %602 = vmatpush.bf16.msra.mxu3 %v3330_v56 }
  0xf5   :  { %679 = vmatpush.bf16.msrb.mxu0 %v3309_v40  ;;  %692 = vmatpush.bf16.msrb.mxu1 %v3313_v45 }
  0xf8   :  { %603 = vmatpush.bf16.msra.mxu3 %v3342_v2 }
  0xf9   :  { %680 = vmatpush.bf16.msrb.mxu0 %v3324_v51  ;;  %693 = vmatpush.bf16.msrb.mxu1 %v3327_v53 }
  0xfc   :  { %604 = vmatpush.bf16.msra.mxu3 %v3352_v12 }
  0xfd   :  { %681 = vmatpush.bf16.msrb.mxu0 %v3335_v60  ;;  %694 = vmatpush.bf16.msrb.mxu1 %v3339_v62 }
 0x100   :  { %605 = vmatpush.bf16.msra.mxu3 %v3360_v16 }
 0x101   :  { %682 = vmatpush.bf16.msrb.mxu0 %v3346_v8  ;;  %695 = vmatpush.bf16.msrb.mxu1 %v3349_v9 }
 0x160   :  { %v388_v43 = vpop.f32.mrf.mxu0 }
 0x161   :  { %v425_v46 = vadd.f32 %v388_v43, %v364_v42  ;;  %v401_v48 = vpop.f32.mrf.mxu1 }
 0x162   :  { %v445_v37 = vadd.f32 %v3426_v50, %v401_v48 }
 0x163   :  { %v2534_v49 = vmul.f32 -1.442695, %v425_v46 }
 0x165   :  { %2923 = vpow2.f32 %v2534_v49 }
 0x166   :  { %v375_v54 = vpop.f32.mrf.mxu3 }
 0x167   :  { %v405_v55 = vadd.f32 %v375_v54, %v363_v52 }
 0x168   :  { %v390_v57 = vpop.f32.mrf.mxu0 }
 0x169   :  { %v2533_v58 = vmul.f32 -1.442695, %v405_v55  ;;  %v403_v59 = vpop.f32.mrf.mxu1  ;;  %v1072_v55 = vsel %vm1071_vm4, 1, %v3211_v44  ;;  %vm762_vm4 = vcmp.gt.s32.totalorder %v3306_v39, 4 }
 0x16a   :  { %1074 = vperm.xlu1 %2908, %v1072_v55  }
 0x16b   :  { %v2924_v61 = vpop.eup %2923  ;;  %2925 = vpow2.f32 %v2533_v58 }
 0x16c   :  { %v429_v63 = vadd.f32 1.0, %v2924_v61 }
 0x16e   :  { %v377_v0 = vpop.f32.mrf.mxu3  ;;  %2927 = vrcp.f32 %v429_v63  ;;  %v441_v46 = vand.u32 2147483648, %v429_v63  ;;  %vm435_vm5 = vweird.f32 %v429_v63  ;;  %v439_v52 = vand.u32 2147483647, %v429_v63 }
 0x170   :  { %v442_v58 = vor.u32 1.1754944e-38, %v441_v46  ;;  %vm440_vm7 = vcmp.eq.f32.partialorder %v439_v52, 8.507059e+37 }
 0x171   :  { %v2926_v1 = vpop.eup %2925 }
 0x172   :  { %v409_v4 = vadd.f32 1.0, %v2926_v1 }
 0x174   :  { %2929 = vrcp.f32 %v409_v4  ;;  %v2928_v5 = vpop.eup %2927  ;;  %v421_v21 = vand.u32 2147483648, %v409_v4  ;;  %v419_v24 = vand.u32 2147483647, %v409_v4  ;;  %vm415_vm0 = vweird.f32 %v409_v4 }
 0x175   :  { %v431_v6 = vmul.f32 %v2928_v5, %v429_v63  ;;  %vm436_vm3 = vweird.f32 %v2928_v5 }
 0x176   :  { %v422_v33 = vor.u32 1.1754944e-38, %v421_v21  ;;  %vm420_vm2 = vcmp.eq.f32.partialorder %v419_v24, 8.507059e+37  ;;  %vm437_vm6 = vmor %vm435_vm5, %vm436_vm3  ;;  %vm865_vm5 = vcmp.gt.s32.totalorder %v3306_v39, 5 }
 0x177   :  { %v432_v17 = vsub.f32 1.0, %v431_v6 }
 0x179   :  { %v433_v27 = vmul.f32 %v2928_v5, %v432_v17 }
 0x17a   :  { %v2930_v14 = vpop.eup %2929 }
 0x17b   :  { %v411_v15 = vmul.f32 %v2930_v14, %v409_v4  ;;  %vm416_vm15 = vweird.f32 %v2930_v14  ;;  %v434_v42 = vadd.f32 %v2928_v5, %v433_v27  ;;  %v3483_v4 = vpop.permute.xlu0 %456 }
 0x17c   :  { %vm417_vm1 = vmor %vm415_vm0, %vm416_vm15  ;;  %vm458_vm8 = vcmp.eq.s32.totalorder %v3483_v4, 1 }
 0x17d   :  { %v412_v20 = vsub.f32 1.0, %v411_v15  ;;  %v438_v57 = vsel %vm437_vm6, %v2928_v5, %v434_v42 }
 0x17e   :  { %v443_v48 = vsel %vm440_vm7, %v442_v58, %v438_v57 }
 0x17f   :  { %v413_v23 = vmul.f32 %v2930_v14, %v412_v20  ;;  %v449_v59 = vsub.f32 1.0, %v443_v48  ;;  %v451_v1 = vmul.f32 %v443_v48, %v3441_v36 }
 0x181   :  { %v414_v32 = vadd.f32 %v2930_v14, %v413_v23 }
 0x183   :  { %v418_v41 = vsel %vm417_vm1, %v2930_v14, %v414_v32 }
 0x184   :  { %v423_v43 = vsel %vm420_vm2, %v422_v33, %v418_v41 }
 0x185   :  { %v446_v49 = vmul.f32 %v445_v37, %v423_v43 }
 0x187   :  { %v447_v54 = vadd.f32 %v446_v49, %v365_v38 }
 0x189   :  { %2931 = vtanh.f32 %v447_v54 }
 0x18f   :  { %v2932_v61 = vpop.eup %2931 }
 0x190   :  { %v450_v0 = vmul.f32 %v2932_v61, %v449_v59  ;;  %v465_v59 = vld [vmem:[#allocation4 + $0x20] sm:$0xf] }
 0x192   :  { %v452_v6 = vadd.f32 %v451_v1, %v450_v0 }
 0x194   :  { %v3489_v63 = vsel %vm458_vm8, %v452_v6, %v3441_v36  ;;  %v464_v36 = vld [vmem:[#allocation4 + $0x18] sm:$0xff] }
 0x195   :  { %v460_v5 = vpack.c.bf16 %v3489_v63, %v3489_v63  ;;  %v466_v14 = vunpack.c.l.bf16 %v464_v36  ;;  %v467_v15 = vunpack.c.h.bf16 %v464_v36 }
 0x197   :  { %462 = vst [vmem:[#allocation3 + $0x4] sm:$0xf] %v460_v5  ;;  %477 = vmatmul.bf16.vlgmr.msrb.gmra.mxu2 %v460_v5  ;;  %490 = vmatmul.bf16.vlgmr.msrb.gmra.mxu3 %v460_v5 }
 0x198   :  { %503 = vmatmul.bf16.vlgmr.msra.gmra.mxu0 %v460_v5  ;;  %701 = vmatpush.bf16.msrb.mxu2 %v3281_v18  ;;  %v468_v5 = vunpack.c.l.bf16 %v465_v59 }
 0x199   :  { %778 = vmatpush.bf16.msrb.mxu3 %v3270_v3  ;;  %791 = vmatpush.bf16.msra.mxu0 %v3272_v7 }
 0x19c   :  { %702 = vmatpush.bf16.msrb.mxu2 %v3291_v26 }
 0x19d   :  { %779 = vmatpush.bf16.msrb.mxu3 %v3275_v10  ;;  %792 = vmatpush.bf16.msra.mxu0 %v3279_v11 }
 0x1a0   :  { %703 = vmatpush.bf16.msrb.mxu2 %v3301_v35 }
 0x1a1   :  { %780 = vmatpush.bf16.msrb.mxu3 %v3284_v19  ;;  %793 = vmatpush.bf16.msra.mxu0 %v3288_v22 }
 0x1a4   :  { %704 = vmatpush.bf16.msrb.mxu2 %v3316_v47 }
 0x1a5   :  { %781 = vmatpush.bf16.msrb.mxu3 %v3294_v30  ;;  %794 = vmatpush.bf16.msra.mxu0 %v3298_v31 }
 0x1a8   :  { %705 = vmatpush.bf16.msrb.mxu2 %v3330_v56 }
 0x1a9   :  { %782 = vmatpush.bf16.msrb.mxu3 %v3309_v40  ;;  %795 = vmatpush.bf16.msra.mxu0 %v3313_v45 }
 0x1ac   :  { %706 = vmatpush.bf16.msrb.mxu2 %v3342_v2 }
 0x1ad   :  { %783 = vmatpush.bf16.msrb.mxu3 %v3324_v51  ;;  %796 = vmatpush.bf16.msra.mxu0 %v3327_v53 }
 0x1b0   :  { %707 = vmatpush.bf16.msrb.mxu2 %v3352_v12 }
 0x1b1   :  { %784 = vmatpush.bf16.msrb.mxu3 %v3335_v60  ;;  %797 = vmatpush.bf16.msra.mxu0 %v3339_v62 }
 0x1b4   :  { %708 = vmatpush.bf16.msrb.mxu2 %v3360_v16 }
 0x1b5   :  { %785 = vmatpush.bf16.msrb.mxu3 %v3346_v8  ;;  %798 = vmatpush.bf16.msra.mxu0 %v3349_v9 }
 0x215   :  { %v504_v13 = vpop.f32.mrf.mxu0 }
 0x216   :  { %v548_v1 = vadd.f32 %v3426_v50, %v504_v13  ;;  %v3518_v13 = vpop.permute.xlu1 %559 }
 0x217   :  { %vm561_vm3 = vcmp.eq.s32.totalorder %v3518_v13, 1 }
 0x21a   :  { %v478_v17 = vpop.f32.mrf.mxu2  ;;  %v491_v20 = vpop.f32.mrf.mxu3 }
 0x21b   :  { %v508_v21 = vadd.f32 %v478_v17, %v466_v14  ;;  %v528_v23 = vadd.f32 %v491_v20, %v467_v15 }
 0x21d   :  { %v2535_v24 = vmul.f32 -1.442695, %v508_v21  ;;  %v2536_v25 = vmul.f32 -1.442695, %v528_v23  ;;  %v506_v27 = vpop.f32.mrf.mxu0 }
 0x21f   :  { %2933 = vpow2.f32 %v2535_v24 }
 0x220   :  { %2935 = vpow2.f32 %v2536_v25 }
 0x222   :  { %v480_v29 = vpop.f32.mrf.mxu2  ;;  %v493_v32 = vpop.f32.mrf.mxu3 }
 0x225   :  { %v2934_v33 = vpop.eup %2933 }
 0x226   :  { %v2936_v37 = vpop.eup %2935  ;;  %v512_v38 = vadd.f32 1.0, %v2934_v33 }
 0x227   :  { %v532_v41 = vadd.f32 1.0, %v2936_v37 }
 0x228   :  { %2937 = vrcp.f32 %v512_v38  ;;  %v524_v54 = vand.u32 2147483648, %v512_v38  ;;  %v522_v58 = vand.u32 2147483647, %v512_v38  ;;  %vm518_vm10 = vweird.f32 %v512_v38 }
 0x229   :  { %2939 = vrcp.f32 %v532_v41  ;;  %v544_v15 = vand.u32 2147483648, %v532_v41  ;;  %vm538_vm0 = vweird.f32 %v532_v41  ;;  %v542_v20 = vand.u32 2147483647, %v532_v41 }
 0x22a   :  { %v525_v0 = vor.u32 1.1754944e-38, %v524_v54  ;;  %vm523_vm14 = vcmp.eq.f32.partialorder %v522_v58, 8.507059e+37 }
 0x22b   :  { %v545_v24 = vor.u32 1.1754944e-38, %v544_v15  ;;  %vm543_vm2 = vcmp.eq.f32.partialorder %v542_v20, 8.507059e+37 }
 0x22e   :  { %v2938_v42 = vpop.eup %2937 }
 0x22f   :  { %v2940_v43 = vpop.eup %2939  ;;  %v514_v46 = vmul.f32 %v2938_v42, %v512_v38  ;;  %vm519_vm9 = vweird.f32 %v2938_v42 }
 0x230   :  { %v534_v49 = vmul.f32 %v2940_v43, %v532_v41  ;;  %vm520_vm13 = vmor %vm518_vm10, %vm519_vm9  ;;  %vm539_vm15 = vweird.f32 %v2940_v43 }
 0x231   :  { %v515_v52 = vsub.f32 1.0, %v514_v46  ;;  %vm540_vm1 = vmor %vm538_vm0, %vm539_vm15 }
 0x232   :  { %v535_v55 = vsub.f32 1.0, %v534_v49 }
 0x233   :  { %v516_v57 = vmul.f32 %v2938_v42, %v515_v52 }
 0x234   :  { %v536_v48 = vmul.f32 %v2940_v43, %v535_v55 }
 0x235   :  { %v517_v61 = vadd.f32 %v2938_v42, %v516_v57 }
 0x236   :  { %v537_v14 = vadd.f32 %v2940_v43, %v536_v48 }
 0x237   :  { %v521_v6 = vsel %vm520_vm13, %v2938_v42, %v517_v61 }
 0x238   :  { %v526_v36 = vsel %vm523_vm14, %v525_v0, %v521_v6  ;;  %v541_v23 = vsel %vm540_vm1, %v2940_v43, %v537_v14 }
 0x239   :  { %v549_v17 = vmul.f32 %v548_v1, %v526_v36  ;;  %v546_v25 = vsel %vm543_vm2, %v545_v24, %v541_v23  ;;  %v763_v36 = vsel %vm762_vm4, 1, %v3211_v44 }
 0x23a   :  { %v552_v27 = vsub.f32 1.0, %v546_v25  ;;  %v554_v33 = vmul.f32 %v546_v25, %v3489_v63  ;;  %765 = vperm.xlu2 %2909, %v763_v36   ;;  %v866_v25 = vsel %vm865_vm5, 1, %v3211_v44 }
 0x23b   :  { %v550_v21 = vadd.f32 %v549_v17, %v468_v5 }
 0x23d   :  { %2941 = vtanh.f32 %v550_v21  ;;  %v568_v21 = vld [vmem:[#allocation4 + $0x2c] sm:$0xf] }
 0x242   :  { %868 = vperm.xlu2 %2909, %v866_v25  }
 0x243   :  { %v2942_v29 = vpop.eup %2941 }
 0x244   :  { %v553_v32 = vmul.f32 %v2942_v29, %v552_v27 }
 0x246   :  { %v555_v37 = vadd.f32 %v554_v33, %v553_v32  ;;  %v571_v33 = vunpack.c.l.bf16 %v568_v21 }
 0x248   :  { %v3525_v38 = vsel %vm561_vm3, %v555_v37, %v3489_v63  ;;  %v567_v63 = vld [vmem:[#allocation4 + $0x24] sm:$0xff] }
 0x249   :  { %v563_v41 = vpack.c.bf16 %v3525_v38, %v3525_v38  ;;  %v569_v42 = vunpack.c.l.bf16 %v567_v63  ;;  %v570_v52 = vunpack.c.h.bf16 %v567_v63 }
 0x24b   :  { %565 = vst [vmem:[#allocation3 + $0x8] sm:$0xf] %v563_v41  ;;  %580 = vmatmul.bf16.vlgmr.msra.gmra.mxu1 %v563_v41  ;;  %593 = vmatmul.bf16.vlgmr.msra.gmra.mxu2 %v563_v41 }
 0x24c   :  { %606 = vmatmul.bf16.vlgmr.msra.gmra.mxu3 %v563_v41  ;;  %804 = vmatpush.bf16.msra.mxu1 %v3281_v18 }
 0x24d   :  { %881 = vmatpush.bf16.msra.mxu2 %v3270_v3  ;;  %894 = vmatpush.bf16.msra.mxu3 %v3272_v7 }
 0x250   :  { %805 = vmatpush.bf16.msra.mxu1 %v3291_v26 }
 0x251   :  { %882 = vmatpush.bf16.msra.mxu2 %v3275_v10  ;;  %895 = vmatpush.bf16.msra.mxu3 %v3279_v11 }
 0x254   :  { %806 = vmatpush.bf16.msra.mxu1 %v3301_v35 }
 0x255   :  { %883 = vmatpush.bf16.msra.mxu2 %v3284_v19  ;;  %896 = vmatpush.bf16.msra.mxu3 %v3288_v22 }
 0x258   :  { %807 = vmatpush.bf16.msra.mxu1 %v3316_v47 }
 0x259   :  { %884 = vmatpush.bf16.msra.mxu2 %v3294_v30  ;;  %897 = vmatpush.bf16.msra.mxu3 %v3298_v31 }
 0x25c   :  { %808 = vmatpush.bf16.msra.mxu1 %v3330_v56 }
 0x25d   :  { %885 = vmatpush.bf16.msra.mxu2 %v3309_v40  ;;  %898 = vmatpush.bf16.msra.mxu3 %v3313_v45 }
 0x260   :  { %809 = vmatpush.bf16.msra.mxu1 %v3342_v2 }
 0x261   :  { %886 = vmatpush.bf16.msra.mxu2 %v3324_v51  ;;  %899 = vmatpush.bf16.msra.mxu3 %v3327_v53 }
 0x264   :  { %810 = vmatpush.bf16.msra.mxu1 %v3352_v12 }
 0x265   :  { %887 = vmatpush.bf16.msra.mxu2 %v3335_v60  ;;  %900 = vmatpush.bf16.msra.mxu3 %v3339_v62 }
 0x268   :  { %811 = vmatpush.bf16.msra.mxu1 %v3360_v16 }
 0x269   :  { %888 = vmatpush.bf16.msra.mxu2 %v3346_v8  ;;  %901 = vmatpush.bf16.msra.mxu3 %v3349_v9 }
 0x2c8   :  { %v581_v43 = vpop.f32.mrf.mxu1 }
 0x2c9   :  { %v611_v46 = vadd.f32 %v581_v43, %v569_v42 }
 0x2cb   :  { %v2537_v49 = vmul.f32 -1.442695, %v611_v46 }
 0x2cd   :  { %2943 = vpow2.f32 %v2537_v49 }
 0x2ce   :  { %v594_v54 = vpop.f32.mrf.mxu2 }
 0x2cf   :  { %v631_v55 = vadd.f32 %v594_v54, %v570_v52  ;;  %v607_v57 = vpop.f32.mrf.mxu3 }
 0x2d0   :  { %v583_v58 = vpop.f32.mrf.mxu1  ;;  %v651_v39 = vadd.f32 %v3426_v50, %v607_v57 }
 0x2d1   :  { %v2538_v48 = vmul.f32 -1.442695, %v631_v55 }
 0x2d3   :  { %v2944_v59 = vpop.eup %2943  ;;  %2945 = vpow2.f32 %v2538_v48 }
 0x2d4   :  { %v615_v61 = vadd.f32 1.0, %v2944_v59 }
 0x2d6   :  { %2947 = vrcp.f32 %v615_v61  ;;  %v596_v0 = vpop.f32.mrf.mxu2  ;;  %v627_v20 = vand.u32 2147483648, %v615_v61  ;;  %v625_v24 = vand.u32 2147483647, %v615_v61  ;;  %vm621_vm7 = vweird.f32 %v615_v61 }
 0x2d7   :  { %v609_v1 = vpop.f32.mrf.mxu3 }
 0x2d8   :  { %v628_v37 = vor.u32 1.1754944e-38, %v627_v20  ;;  %vm626_vm10 = vcmp.eq.f32.partialorder %v625_v24, 8.507059e+37 }
 0x2d9   :  { %v2946_v6 = vpop.eup %2945 }
 0x2da   :  { %v635_v5 = vadd.f32 1.0, %v2946_v6  ;;  %v3559_v6 = vpop.permute.xlu1 %662 }
 0x2db   :  { %vm664_vm1 = vcmp.eq.s32.totalorder %v3559_v6, 1 }
 0x2dc   :  { %v2948_v14 = vpop.eup %2947  ;;  %2949 = vrcp.f32 %v635_v5  ;;  %v647_v46 = vand.u32 2147483648, %v635_v5  ;;  %v645_v52 = vand.u32 2147483647, %v635_v5  ;;  %vm641_vm14 = vweird.f32 %v635_v5 }
 0x2dd   :  { %v617_v15 = vmul.f32 %v2948_v14, %v615_v61  ;;  %vm622_vm6 = vweird.f32 %v2948_v14 }
 0x2de   :  { %vm623_vm9 = vmor %vm621_vm7, %vm622_vm6  ;;  %v648_v58 = vor.u32 1.1754944e-38, %v647_v46  ;;  %vm646_vm0 = vcmp.eq.f32.partialorder %v645_v52, 8.507059e+37 }
 0x2df   :  { %v618_v17 = vsub.f32 1.0, %v617_v15 }
 0x2e1   :  { %v619_v23 = vmul.f32 %v2948_v14, %v618_v17 }
 0x2e2   :  { %v2950_v27 = vpop.eup %2949 }
 0x2e3   :  { %v637_v29 = vmul.f32 %v2950_v27, %v635_v5  ;;  %v620_v32 = vadd.f32 %v2948_v14, %v619_v23  ;;  %vm642_vm13 = vweird.f32 %v2950_v27 }
 0x2e4   :  { %vm643_vm15 = vmor %vm641_vm14, %vm642_vm13 }
 0x2e5   :  { %v638_v41 = vsub.f32 1.0, %v637_v29  ;;  %v624_v63 = vsel %vm623_vm9, %v2948_v14, %v620_v32 }
 0x2e6   :  { %v629_v42 = vsel %vm626_vm10, %v628_v37, %v624_v63 }
 0x2e7   :  { %v639_v43 = vmul.f32 %v2950_v27, %v638_v41  ;;  %v652_v49 = vmul.f32 %v651_v39, %v629_v42 }
 0x2e9   :  { %v640_v54 = vadd.f32 %v2950_v27, %v639_v43  ;;  %v653_v55 = vadd.f32 %v652_v49, %v571_v33  ;;  %v671_v33 = vld [vmem:[#allocation4 + $0x38] sm:$0xf] }
 0x2ea   :  { %v674_v63 = vunpack.c.l.bf16 %v671_v33  ;;  %v2589_v33 = vld [vmem:[#allocation7 + $0x30] sm:$0xf] }
 0x2eb   :  { %v644_v48 = vsel %vm643_vm15, %v2950_v27, %v640_v54  ;;  %2951 = vtanh.f32 %v653_v55 }
 0x2ec   :  { %v649_v59 = vsel %vm646_vm0, %v648_v58, %v644_v48 }
 0x2ed   :  { %v655_v61 = vsub.f32 1.0, %v649_v59  ;;  %v657_v57 = vmul.f32 %v649_v59, %v3525_v38 }
 0x2f1   :  { %v2952_v0 = vpop.eup %2951 }
 0x2f2   :  { %v656_v1 = vmul.f32 %v2952_v0, %v655_v61 }
 0x2f4   :  { %v658_v36 = vadd.f32 %v657_v57, %v656_v1  ;;  %v3594_v1 = vpop.permute.xlu2 %765 }
 0x2f5   :  { %vm767_vm14 = vcmp.eq.s32.totalorder %v3594_v1, 1 }
 0x2f6   :  { %v3565_v5 = vsel %vm664_vm1, %v658_v36, %v3525_v38 }
 0x2f7   :  { %v666_v14 = vpack.c.bf16 %v3565_v5, %v3565_v5 }
 0x2f9   :  { %668 = vst [vmem:[#allocation3 + $0xc] sm:$0xf] %v666_v14  ;;  %683 = vmatmul.bf16.vlgmr.msrb.gmra.mxu0 %v666_v14  ;;  %696 = vmatmul.bf16.vlgmr.msrb.gmra.mxu1 %v666_v14 }
 0x2fa   :  { %709 = vmatmul.bf16.vlgmr.msrb.gmra.mxu2 %v666_v14  ;;  %907 = vmatpush.bf16.msrb.mxu0 %v3281_v18 }
 0x2fb   :  { %984 = vmatpush.bf16.msrb.mxu1 %v3270_v3  ;;  %997 = vmatpush.bf16.msrb.mxu2 %v3272_v7  ;;  %v670_v3 = vld [vmem:[#allocation4 + $0x30] sm:$0xff] }
 0x2fc   :  { %v672_v7 = vunpack.c.l.bf16 %v670_v3 }
 0x2fe   :  { %908 = vmatpush.bf16.msrb.mxu0 %v3291_v26 }
 0x2ff   :  { %985 = vmatpush.bf16.msrb.mxu1 %v3275_v10  ;;  %998 = vmatpush.bf16.msrb.mxu2 %v3279_v11  ;;  %v673_v10 = vunpack.c.h.bf16 %v670_v3 }
 0x302   :  { %909 = vmatpush.bf16.msrb.mxu0 %v3301_v35 }
 0x303   :  { %986 = vmatpush.bf16.msrb.mxu1 %v3284_v19  ;;  %999 = vmatpush.bf16.msrb.mxu2 %v3288_v22 }
 0x306   :  { %910 = vmatpush.bf16.msrb.mxu0 %v3316_v47 }
 0x307   :  { %987 = vmatpush.bf16.msrb.mxu1 %v3294_v30  ;;  %1000 = vmatpush.bf16.msrb.mxu2 %v3298_v31 }
 0x30a   :  { %911 = vmatpush.bf16.msrb.mxu0 %v3330_v56 }
 0x30b   :  { %988 = vmatpush.bf16.msrb.mxu1 %v3309_v40  ;;  %1001 = vmatpush.bf16.msrb.mxu2 %v3313_v45 }
 0x30e   :  { %912 = vmatpush.bf16.msrb.mxu0 %v3342_v2 }
 0x30f   :  { %989 = vmatpush.bf16.msrb.mxu1 %v3324_v51  ;;  %1002 = vmatpush.bf16.msrb.mxu2 %v3327_v53 }
 0x312   :  { %913 = vmatpush.bf16.msrb.mxu0 %v3352_v12 }
 0x313   :  { %990 = vmatpush.bf16.msrb.mxu1 %v3335_v60  ;;  %1003 = vmatpush.bf16.msrb.mxu2 %v3339_v62 }
 0x316   :  { %914 = vmatpush.bf16.msrb.mxu0 %v3360_v16 }
 0x317   :  { %991 = vmatpush.bf16.msrb.mxu1 %v3346_v8  ;;  %1004 = vmatpush.bf16.msrb.mxu2 %v3349_v9 }
 0x376   :  { %v684_v11 = vpop.f32.mrf.mxu0  ;;  %v697_v19 = vpop.f32.mrf.mxu1 }
 0x377   :  { %v714_v22 = vadd.f32 %v684_v11, %v672_v7  ;;  %v734_v30 = vadd.f32 %v697_v19, %v673_v10 }
 0x379   :  { %v2539_v31 = vmul.f32 -1.442695, %v714_v22  ;;  %v2540_v40 = vmul.f32 -1.442695, %v734_v30  ;;  %v2649_v30 = vld [vmem:[#allocation7 + $0xa8] sm:$0xf] }
 0x37b   :  { %2953 = vpow2.f32 %v2539_v31 }
 0x37c   :  { %2955 = vpow2.f32 %v2540_v40 }
 0x37d   :  { %v710_v45 = vpop.f32.mrf.mxu2 }
 0x37e   :  { %v686_v51 = vpop.f32.mrf.mxu0  ;;  %v699_v53 = vpop.f32.mrf.mxu1  ;;  %v754_v42 = vadd.f32 %v3426_v50, %v710_v45 }
 0x37f   :  { %v2625_v53 = vld [vmem:[#allocation7 + $0x78] sm:$0xf] }
 0x381   :  { %v2954_v60 = vpop.eup %2953 }
 0x382   :  { %v2956_v62 = vpop.eup %2955  ;;  %v718_v38 = vadd.f32 1.0, %v2954_v60  ;;  %v2857_v60 = vld [vmem:[#allocation7 + $0x80] sm:$0xf0] }
 0x383   :  { %v738_v8 = vadd.f32 1.0, %v2956_v62 }
 0x384   :  { %2957 = vrcp.f32 %v718_v38  ;;  %v730_v25 = vand.u32 2147483648, %v718_v38  ;;  %v728_v29 = vand.u32 2147483647, %v718_v38  ;;  %vm724_vm4 = vweird.f32 %v718_v38 }
 0x385   :  { %2959 = vrcp.f32 %v738_v8  ;;  %v712_v9 = vpop.f32.mrf.mxu2  ;;  %v750_v52 = vand.u32 2147483648, %v738_v8  ;;  %vm744_vm9 = vweird.f32 %v738_v8  ;;  %v748_v54 = vand.u32 2147483647, %v738_v8 }
 0x386   :  { %v731_v41 = vor.u32 1.1754944e-38, %v730_v25  ;;  %vm729_vm6 = vcmp.eq.f32.partialorder %v728_v29, 8.507059e+37  ;;  %v2601_v25 = vld [vmem:[#allocation7 + $0x48] sm:$0xf] }
 0x387   :  { %v751_v48 = vor.u32 1.1754944e-38, %v750_v52  ;;  %vm749_vm13 = vcmp.eq.f32.partialorder %v748_v54, 8.507059e+37 }
 0x38a   :  { %v2958_v15 = vpop.eup %2957 }
 0x38b   :  { %v2960_v17 = vpop.eup %2959  ;;  %v720_v20 = vmul.f32 %v2958_v15, %v718_v38  ;;  %vm725_vm2 = vweird.f32 %v2958_v15 }
 0x38c   :  { %v740_v21 = vmul.f32 %v2960_v17, %v738_v8  ;;  %vm726_vm5 = vmor %vm724_vm4, %vm725_vm2  ;;  %vm745_vm7 = vweird.f32 %v2960_v17  ;;  %v2626_v8 = vor.u32 %v2857_v60, %v2625_v53  ;;  %v3628_v53 = vld [vmem:[#allocation3] sm:$0xff]  ;;  %v3631_v60 = vld [vmem:[#allocation3 + $0x8] sm:$0xff] }
 0x38d   :  { %v721_v23 = vsub.f32 1.0, %v720_v20  ;;  %vm746_vm10 = vmor %vm744_vm9, %vm745_vm7 }
 0x38e   :  { %v741_v24 = vsub.f32 1.0, %v740_v21 }
 0x38f   :  { %v722_v27 = vmul.f32 %v2958_v15, %v721_v23 }
 0x390   :  { %v742_v32 = vmul.f32 %v2960_v17, %v741_v24 }
 0x391   :  { %v723_v37 = vadd.f32 %v2958_v15, %v722_v27  ;;  %v2851_v27 = vld [vmem:[#allocation7 + $0x50] sm:$0xf0] }
 0x392   :  { %v743_v46 = vadd.f32 %v2960_v17, %v742_v32  ;;  %v2602_v29 = vor.u32 %v2851_v27, %v2601_v25 }
 0x393   :  { %v727_v39 = vsel %vm726_vm5, %v2958_v15, %v723_v37  ;;  %v2613_v15 = vld [vmem:[#allocation7 + $0x60] sm:$0xf]  ;;  %v2848_v37 = vld [vmem:[#allocation7 + $0x38] sm:$0xf0] }
 0x394   :  { %v732_v43 = vsel %vm729_vm6, %v731_v41, %v727_v39  ;;  %v747_v58 = vsel %vm746_vm10, %v2960_v17, %v743_v46  ;;  %v2854_v17 = vld [vmem:[#allocation7 + $0x68] sm:$0xf0]  ;;  %v2590_v41 = vor.u32 %v2848_v37, %v2589_v33  ;;  %v2577_v39 = vld [vmem:[#allocation7 + $0x18] sm:$0xf] }
 0x395   :  { %v755_v49 = vmul.f32 %v754_v42, %v732_v43  ;;  %v752_v59 = vsel %vm749_vm13, %v751_v48, %v747_v58  ;;  %v2614_v21 = vor.u32 %v2854_v17, %v2613_v15  ;;  %v2845_v42 = vld [vmem:[#allocation7 + $0x20] sm:$0xf0]  ;;  %v2842_v58 = vld [vmem:[#allocation7 + $0x8] sm:$0xf0]  ;;  %v2884_v15 = vld [vmem:[#allocation9 + $0x158] sm:$0xf0] }
 0x396   :  { %v758_v61 = vsub.f32 1.0, %v752_v59  ;;  %v760_v36 = vmul.f32 %v752_v59, %v3565_v5  ;;  %v2578_v52 = vor.u32 %v2845_v42, %v2577_v39  ;;  %v2878_v33 = vld [vmem:[#allocation9 + $0x128] sm:$0xf0]  ;;  %v2651_v42 = vld [vmem:[#allocation7 + $0xb4] sm:$0xf0] }
 0x397   :  { %v756_v55 = vadd.f32 %v755_v49, %v674_v63  ;;  %v2862_v39 = vld [vmem:[#allocation7 + $0xac] sm:$0xf] }
 0x399   :  { %2961 = vtanh.f32 %v756_v55  ;;  %v2565_v55 = vld [vmem:[#allocation7] sm:$0xf] }
 0x39f   :  { %v2962_v0 = vpop.eup %2961 }
 0x3a0   :  { %v759_v57 = vmul.f32 %v2962_v0, %v758_v61  ;;  %v774_v0 = vld [vmem:[#allocation4 + $0x44] sm:$0xf] }
 0x3a2   :  { %v761_v14 = vadd.f32 %v760_v36, %v759_v57  ;;  %v2566_v36 = vor.u32 %v2842_v58, %v2565_v55 }
 0x3a4   :  { %v3601_v3 = vsel %vm767_vm14, %v761_v14, %v3565_v5  ;;  %v773_v5 = vld [vmem:[#allocation4 + $0x3c] sm:$0xff] }
 0x3a5   :  { %v769_v7 = vpack.c.bf16 %v3601_v3, %v3601_v3  ;;  %v776_v10 = vunpack.c.h.bf16 %v773_v5 }
 0x3a7   :  { %771 = vst [vmem:[#allocation3 + $0x10] sm:$0xf] %v769_v7  ;;  %786 = vmatmul.bf16.vlgmr.msrb.gmra.mxu3 %v769_v7  ;;  %799 = vmatmul.bf16.vlgmr.msra.gmra.mxu0 %v769_v7 }
 0x3a8   :  { %812 = vmatmul.bf16.vlgmr.msra.gmra.mxu1 %v769_v7  ;;  %1010 = vmatpush.bf16.msrb.mxu3 %v3281_v18 }
 0x3ac   :  { %1011 = vmatpush.bf16.msrb.mxu3 %v3291_v26  ;;  %v775_v26 = vunpack.c.l.bf16 %v773_v5  ;;  %v777_v5 = vunpack.c.l.bf16 %v774_v0  ;;  %v2875_v0 = vld [vmem:[#allocation9 + $0x110] sm:$0xf0] }
 0x3b0   :  { %1012 = vmatpush.bf16.msrb.mxu3 %v3301_v35 }
 0x3b4   :  { %1013 = vmatpush.bf16.msrb.mxu3 %v3316_v47  ;;  %v2863_v47 = vld [vmem:[#allocation7 + $0xb0] sm:$0xf0] }
 0x3b8   :  { %1014 = vmatpush.bf16.msrb.mxu3 %v3330_v56  ;;  %v2650_v56 = vor.u32 %v2863_v47, %v2649_v30 }
 0x3ba   :  { %1281 = vmatpush.bf16.msra.mxu0 %v2650_v56 }
 0x3bc   :  { %1015 = vmatpush.bf16.msrb.mxu3 %v3342_v2 }
 0x3c0   :  { %1016 = vmatpush.bf16.msrb.mxu3 %v3352_v12  ;;  %v2637_v12 = vld [vmem:[#allocation7 + $0x90] sm:$0xf] }
 0x3c4   :  { %1017 = vmatpush.bf16.msrb.mxu3 %v3360_v16  ;;  %v2860_v16 = vld [vmem:[#allocation7 + $0x98] sm:$0xf0] }
 0x3c5   :  { %v2638_v51 = vor.u32 %v2860_v16, %v2637_v12 }
 0x3c7   :  { %1282 = vmatpush.bf16.msra.mxu0 %v2638_v51 }
 0x3cb   :  { %1283 = vmatpush.bf16.msra.mxu0 %v2626_v8 }
 0x3cf   :  { %1284 = vmatpush.bf16.msra.mxu0 %v2614_v21 }
 0x3d3   :  { %1285 = vmatpush.bf16.msra.mxu0 %v2602_v29 }
 0x3d7   :  { %1286 = vmatpush.bf16.msra.mxu0 %v2590_v41 }
 0x3db   :  { %1287 = vmatpush.bf16.msra.mxu0 %v2578_v52  ;;  %v2654_v52 = vor.u32 %v2862_v39, %v2651_v42  ;;  %v2603_v42 = vld [vmem:[#allocation7 + $0x54] sm:$0xf0] }
 0x3dd   :  { %1310 = vmatpush.bf16.msra.mxu1 %v2654_v52 }
 0x3df   :  { %1288 = vmatpush.bf16.msra.mxu0 %v2566_v36  ;;  %v2639_v36 = vld [vmem:[#allocation7 + $0x9c] sm:$0xf0] }
 0x424   :  { %v800_v11 = vpop.f32.mrf.mxu0 }
 0x425   :  { %v837_v19 = vadd.f32 %v800_v11, %v776_v10  ;;  %v3613_v22 = vpop.f32.mrf.mxu1 }
 0x426   :  { %v857_v7 = vadd.f32 %v3426_v50, %v3613_v22  ;;  %v3617_v22 = vpop.permute.xlu2 %868 }
 0x427   :  { %v2542_v18 = vmul.f32 -1.442695, %v837_v19  ;;  %vm870_vm10 = vcmp.eq.s32.totalorder %v3617_v22, 1 }
 0x429   :  { %2963 = vpow2.f32 %v2542_v18 }
 0x42a   :  { %v787_v35 = vpop.f32.mrf.mxu3 }
 0x42b   :  { %v817_v31 = vadd.f32 %v787_v35, %v775_v26 }
 0x42c   :  { %v802_v40 = vpop.f32.mrf.mxu0 }
 0x42d   :  { %v2541_v2 = vmul.f32 -1.442695, %v817_v31  ;;  %v815_v45 = vpop.f32.mrf.mxu1 }
 0x42f   :  { %v2964_v62 = vpop.eup %2963  ;;  %2965 = vpow2.f32 %v2541_v2 }
 0x430   :  { %v841_v38 = vadd.f32 1.0, %v2964_v62 }
 0x432   :  { %v789_v9 = vpop.f32.mrf.mxu3  ;;  %2967 = vrcp.f32 %v841_v38  ;;  %v853_v18 = vand.u32 2147483648, %v841_v38  ;;  %vm847_vm6 = vweird.f32 %v841_v38  ;;  %v851_v35 = vand.u32 2147483647, %v841_v38 }
 0x433   :  { %v2734_v9 = vld [vmem:[#allocation9 + $0x150] sm:$0xf] }
 0x434   :  { %v854_v31 = vor.u32 1.1754944e-38, %v853_v18  ;;  %vm852_vm9 = vcmp.eq.f32.partialorder %v851_v35, 8.507059e+37  ;;  %v3640_v17 = vor.u32 %v2884_v15, %v2734_v9  ;;  %v2872_v18 = vld [vmem:[#allocation9 + $0xf8] sm:$0xf0]  ;;  %v2853_v15 = vld [vmem:[#allocation7 + $0x64] sm:$0xf] }
 0x435   :  { %v2966_v20 = vpop.eup %2965 }
 0x436   :  { %v821_v23 = vadd.f32 1.0, %v2966_v20  ;;  %v876_v20 = vld [vmem:[#allocation4 + $0x48] sm:$0xff] }
 0x437   :  { %v878_v27 = vunpack.c.l.bf16 %v876_v20  ;;  %v879_v29 = vunpack.c.h.bf16 %v876_v20  ;;  %v2615_v20 = vld [vmem:[#allocation7 + $0x6c] sm:$0xf0] }
 0x438   :  { %2969 = vrcp.f32 %v821_v23  ;;  %v2968_v24 = vpop.eup %2967  ;;  %v833_v54 = vand.u32 2147483648, %v821_v23  ;;  %v831_v59 = vand.u32 2147483647, %v821_v23  ;;  %vm827_vm0 = vweird.f32 %v821_v23 }
 0x439   :  { %v843_v32 = vmul.f32 %v2968_v24, %v841_v38  ;;  %vm848_vm5 = vweird.f32 %v2968_v24  ;;  %v2887_v38 = vld [vmem:[#allocation9 + $0x170] sm:$0xf0] }
 0x43a   :  { %v834_v14 = vor.u32 1.1754944e-38, %v833_v54  ;;  %vm832_vm4 = vcmp.eq.f32.partialorder %v831_v59, 8.507059e+37  ;;  %vm849_vm7 = vmor %vm847_vm6, %vm848_vm5  ;;  %v2864_v54 = vld [vmem:[#allocation7 + $0xb8] sm:$0xf0] }
 0x43b   :  { %v844_v46 = vsub.f32 1.0, %v843_v32  ;;  %v2710_v32 = vld [vmem:[#allocation9 + $0x120] sm:$0xf] }
 0x43d   :  { %v845_v61 = vmul.f32 %v2968_v24, %v844_v46 }
 0x43e   :  { %v2970_v63 = vpop.eup %2969 }
 0x43f   :  { %v823_v43 = vmul.f32 %v2970_v63, %v821_v23  ;;  %vm828_vm15 = vweird.f32 %v2970_v63  ;;  %v846_v11 = vadd.f32 %v2968_v24, %v845_v61  ;;  %v2722_v23 = vld [vmem:[#allocation9 + $0x138] sm:$0xf]  ;;  %v2698_v61 = vld [vmem:[#allocation9 + $0x108] sm:$0xf] }
 0x440   :  { %vm829_vm2 = vmor %vm827_vm0, %vm828_vm15 }
 0x441   :  { %v824_v49 = vsub.f32 1.0, %v823_v43  ;;  %v850_v47 = vsel %vm849_vm7, %v2968_v24, %v846_v11  ;;  %v2881_v24 = vld [vmem:[#allocation9 + $0x140] sm:$0xf0]  ;;  %v2657_v43 = vld [vmem:[#allocation7 + $0xb0] sm:$0xf] }
 0x442   :  { %v855_v56 = vsel %vm852_vm9, %v854_v31, %v850_v47  ;;  %v3645_v25 = vor.u32 %v2881_v24, %v2722_v23  ;;  %v2658_v55 = vor.u32 %v2864_v54, %v2657_v43  ;;  %v2686_v11 = vld [vmem:[#allocation9 + $0xf0] sm:$0xf]  ;;  %v2856_v47 = vld [vmem:[#allocation7 + $0x7c] sm:$0xf]  ;;  %v2627_v31 = vld [vmem:[#allocation7 + $0x84] sm:$0xf0]  ;;  %v2618_v24 = vor.u32 %v2853_v15, %v2615_v20 }
 0x443   :  { %v825_v48 = vmul.f32 %v2970_v63, %v824_v49  ;;  %v861_v40 = vsub.f32 1.0, %v855_v56  ;;  %v863_v45 = vmul.f32 %v855_v56, %v3601_v3  ;;  %v2633_v56 = vld [vmem:[#allocation7 + $0x80] sm:$0xf]  ;;  %v2609_v43 = vld [vmem:[#allocation7 + $0x50] sm:$0xf] }
 0x445   :  { %v826_v57 = vadd.f32 %v2970_v63, %v825_v48 }
 0x447   :  { %v830_v10 = vsel %vm829_vm2, %v2970_v63, %v826_v57  ;;  %v3648_v63 = vor.u32 %v2878_v33, %v2710_v32  ;;  %v2859_v57 = vld [vmem:[#allocation7 + $0x94] sm:$0xf]  ;;  %v2662_v32 = vld [vmem:[#allocation9 + $0xc0] sm:$0xf] }
 0x448   :  { %v835_v19 = vsel %vm832_vm4, %v834_v14, %v830_v10  ;;  %v3651_v14 = vor.u32 %v2875_v0, %v2698_v61  ;;  %v2861_v10 = vld [vmem:[#allocation7 + $0xa0] sm:$0xf0] }
 0x449   :  { %v858_v26 = vmul.f32 %v857_v7, %v835_v19  ;;  %v2642_v7 = vor.u32 %v2859_v57, %v2639_v36  ;;  %v2849_v57 = vld [vmem:[#allocation7 + $0x40] sm:$0xf0] }
 0x44b   :  { %v859_v30 = vadd.f32 %v858_v26, %v777_v5  ;;  %v2645_v5 = vld [vmem:[#allocation7 + $0x98] sm:$0xf]  ;;  %1311 = vmatpush.bf16.msra.mxu1 %v2642_v7  ;;  %v3654_v26 = vor.u32 %v2872_v18, %v2686_v11  ;;  %v2579_v11 = vld [vmem:[#allocation7 + $0x24] sm:$0xf0] }
 0x44c   :  { %v2646_v19 = vor.u32 %v2861_v10, %v2645_v5  ;;  %v2844_v10 = vld [vmem:[#allocation7 + $0x1c] sm:$0xf] }
 0x44d   :  { %2971 = vtanh.f32 %v859_v30 }
 0x453   :  { %v2972_v50 = vpop.eup %2971 }
 0x454   :  { %v862_v2 = vmul.f32 %v2972_v50, %v861_v40  ;;  %v2630_v40 = vor.u32 %v2856_v47, %v2627_v31  ;;  %v2858_v50 = vld [vmem:[#allocation7 + $0x88] sm:$0xf0] }
 0x455   :  { %v2846_v47 = vld [vmem:[#allocation7 + $0x28] sm:$0xf0] }
 0x456   :  { %v864_v12 = vadd.f32 %v863_v45, %v862_v2  ;;  %v2634_v2 = vor.u32 %v2858_v50, %v2633_v56  ;;  %1312 = vmatpush.bf16.msra.mxu1 %v2630_v40  ;;  %v877_v40 = vld [vmem:[#allocation4 + $0x50] sm:$0xf] }
 0x458   :  { %v3624_v16 = vsel %vm870_vm10, %v864_v12, %v3601_v3  ;;  %v2746_v3 = vld [vmem:[#allocation9 + $0x168] sm:$0xf]  ;;  %v2674_v12 = vld [vmem:[#allocation9 + $0xd8] sm:$0xf] }
 0x459   :  { %v872_v51 = vpack.c.bf16 %v3624_v16, %v3624_v16  ;;  %v3637_v8 = vor.u32 %v2887_v38, %v2746_v3 }
 0x45a   :  { %1313 = vmatpush.bf16.msra.mxu1 %v2618_v24  ;;  %v2843_v24 = vld [vmem:[#allocation7 + $0x10] sm:$0xf0] }
 0x45b   :  { %874 = vst [vmem:[#allocation3 + $0x14] sm:$0xf] %v872_v51  ;;  %889 = vmatmul.bf16.vlgmr.msra.gmra.mxu2 %v872_v51  ;;  %902 = vmatmul.bf16.vlgmr.msra.gmra.mxu3 %v872_v51 }
 0x45c   :  { %915 = vmatmul.bf16.vlgmr.msrb.gmra.mxu0 %v872_v51  ;;  %1571 = vmatpush.bf16.msra.mxu3 %v3637_v8  ;;  %v2869_v51 = vld [vmem:[#allocation9 + $0xe0] sm:$0xf0] }
 0x45d   :  { %1339 = vmatpush.bf16.msra.mxu2 %v2658_v55  ;;  %v3659_v9 = vor.u32 %v2869_v51, %v2674_v12  ;;  %v2847_v55 = vld [vmem:[#allocation7 + $0x34] sm:$0xf]  ;;  %v2841_v12 = vld [vmem:[#allocation7 + $0x4] sm:$0xf]  ;;  %v2567_v51 = vld [vmem:[#allocation7 + $0xc] sm:$0xf0] }
 0x45e   :  { %v2570_v20 = vor.u32 %v2841_v12, %v2567_v51  ;;  %v2868_v51 = vld [vmem:[#allocation9 + $0xdc] sm:$0xf] }
 0x460   :  { %1572 = vmatpush.bf16.msra.mxu3 %v3640_v17 }
 0x461   :  { %1340 = vmatpush.bf16.msra.mxu2 %v2646_v19 }
 0x462   :  { %v3634_v62 = vld [vmem:[#allocation3 + $0x10] sm:$0xff] }
 0x464   :  { %1573 = vmatpush.bf16.msra.mxu3 %v3645_v25 }
 0x465   :  { %1341 = vmatpush.bf16.msra.mxu2 %v2634_v2 }
 0x468   :  { %1574 = vmatpush.bf16.msra.mxu3 %v3648_v63 }
 0x46c   :  { %1289 = vmatmul.bf16.vlgmr.msra.gmra.mxu0 %v3628_v53  ;;  %1575 = vmatpush.bf16.msra.mxu3 %v3651_v14 }
 0x470   :  { %1576 = vmatpush.bf16.msra.mxu3 %v3654_v26 }
 0x474   :  { %1577 = vmatpush.bf16.msra.mxu3 %v3659_v9 }
 0x47c   :  { %1294 = vmatmul.bf16.gmra.mxu0 %v3631_v60 }
 0x48c   :  { %1299 = vmatmul.bf16.gmra.mxu0 %v3634_v62 }
 0x4d9   :  { %v3643_v21 = vpop.f32.mrf.mxu0 }
 0x4de   :  { %v890_v37 = vpop.f32.mrf.mxu2  ;;  %v903_v41 = vpop.f32.mrf.mxu3 }
 0x4df   :  { %v920_v46 = vadd.f32 %v890_v37, %v878_v27  ;;  %v940_v49 = vadd.f32 %v903_v41, %v879_v29  ;;  %v2621_v27 = vld [vmem:[#allocation7 + $0x68] sm:$0xf]  ;;  %v2855_v29 = vld [vmem:[#allocation7 + $0x70] sm:$0xf0]  ;;  %v2866_v37 = vld [vmem:[#allocation9 + $0xc8] sm:$0xf0] }
 0x4e0   :  { %v2622_v33 = vor.u32 %v2855_v29, %v2621_v27  ;;  %v2850_v41 = vld [vmem:[#allocation7 + $0x4c] sm:$0xf]  ;;  %v3666_v39 = vor.u32 %v2866_v37, %v2662_v32  ;;  %v3677_v27 = vld [vmem:[%s4103_s5] ss:$0 sm:$0xff]  ;;  %v880_v32 = vunpack.c.l.bf16 %v877_v40  ;;  %v2700_v40 = vld [vmem:[#allocation9 + $0x114] sm:$0xf0] }
 0x4e1   :  { %v2543_v58 = vmul.f32 -1.442695, %v920_v46  ;;  %v2544_v48 = vmul.f32 -1.442695, %v940_v49  ;;  %v918_v59 = vpop.f32.mrf.mxu0  ;;  %v2606_v46 = vor.u32 %v2850_v41, %v2603_v42  ;;  %v2852_v49 = vld [vmem:[#allocation7 + $0x58] sm:$0xf0]  ;;  %v960_v29 = vadd.f32 %v3677_v27, %v3643_v21 }
 0x4e2   :  { %1342 = vmatpush.bf16.msra.mxu2 %v2622_v33  ;;  %1578 = vmatpush.bf16.msra.mxu3 %v3666_v39  ;;  %v2610_v52 = vor.u32 %v2852_v49, %v2609_v43 }
 0x4e3   :  { %2973 = vpow2.f32 %v2543_v58  ;;  %1314 = vmatpush.bf16.msra.mxu1 %v2606_v46  ;;  %v2591_v58 = vld [vmem:[#allocation7 + $0x3c] sm:$0xf0] }
 0x4e4   :  { %2975 = vpow2.f32 %v2544_v48  ;;  %v2597_v48 = vld [vmem:[#allocation7 + $0x38] sm:$0xf]  ;;  %v2594_v0 = vor.u32 %v2847_v55, %v2591_v58 }
 0x4e5   :  { %v2598_v7 = vor.u32 %v2849_v57, %v2597_v48  ;;  %v3684_v48 = vpop.permute.xlu0 %971 }
 0x4e6   :  { %v892_v35 = vpop.f32.mrf.mxu2  ;;  %v905_v30 = vpop.f32.mrf.mxu3  ;;  %1343 = vmatpush.bf16.msra.mxu2 %v2610_v52  ;;  %vm973_vm9 = vcmp.eq.s32.totalorder %v3684_v48, 1 }
 0x4e7   :  { %1315 = vmatpush.bf16.msra.mxu1 %v2594_v0  ;;  %v2582_v35 = vor.u32 %v2844_v10, %v2579_v11  ;;  %v2585_v30 = vld [vmem:[#allocation7 + $0x20] sm:$0xf]  ;;  %v2883_v10 = vld [vmem:[#allocation9 + $0x154] sm:$0xf] }
 0x4e8   :  { %v2586_v2 = vor.u32 %v2846_v47, %v2585_v30  ;;  %v2736_v11 = vld [vmem:[#allocation9 + $0x15c] sm:$0xf0]  ;;  %v2877_v30 = vld [vmem:[#allocation9 + $0x124] sm:$0xf]  ;;  %v2712_v47 = vld [vmem:[#allocation9 + $0x12c] sm:$0xf0] }
 0x4e9   :  { %v2974_v45 = vpop.eup %2973 }
 0x4ea   :  { %v2976_v3 = vpop.eup %2975  ;;  %v3657_v38 = vadd.f32 1.0, %v2974_v45  ;;  %1344 = vmatpush.bf16.msra.mxu2 %v2598_v7  ;;  %v2748_v7 = vld [vmem:[#allocation9 + $0x174] sm:$0xf0] }
 0x4eb   :  { %v3661_v23 = vadd.f32 1.0, %v2976_v3  ;;  %v2573_v3 = vld [vmem:[#allocation7 + $0x8] sm:$0xf]  ;;  %1316 = vmatpush.bf16.msra.mxu1 %v2582_v35 }
 0x4ec   :  { %2977 = vrcp.f32 %v3657_v38  ;;  %v936_v19 = vand.u32 2147483648, %v3657_v38  ;;  %v934_v56 = vand.u32 2147483647, %v3657_v38  ;;  %vm930_vm15 = vweird.f32 %v3657_v38 }
 0x4ed   :  { %2979 = vrcp.f32 %v3661_v23  ;;  %v2574_v41 = vor.u32 %v2843_v24, %v2573_v3  ;;  %v956_v43 = vand.u32 2147483648, %v3661_v23  ;;  %vm950_vm5 = vweird.f32 %v3661_v23  ;;  %v2676_v3 = vld [vmem:[#allocation9 + $0xe4] sm:$0xf0] }
 0x4ee   :  { %v937_v15 = vor.u32 1.1754944e-38, %v936_v19  ;;  %vm935_vm2 = vcmp.eq.f32.partialorder %v934_v56, 8.507059e+37  ;;  %1345 = vmatpush.bf16.msra.mxu2 %v2586_v2  ;;  %v954_v46 = vand.u32 2147483647, %v3661_v23  ;;  %v3699_v19 = vor.u32 %v2883_v10, %v2736_v11  ;;  %v2874_v56 = vld [vmem:[#allocation9 + $0x10c] sm:$0xf] }
 0x4ef   :  { %1317 = vmatpush.bf16.msra.mxu1 %v2570_v20  ;;  %v957_v21 = vor.u32 1.1754944e-38, %v956_v43  ;;  %v2871_v2 = vld [vmem:[#allocation9 + $0xf4] sm:$0xf]  ;;  %v2664_v20 = vld [vmem:[#allocation9 + $0xcc] sm:$0xf0] }
 0x4f0   :  { %vm955_vm7 = vcmp.eq.f32.partialorder %v954_v46, 8.507059e+37 }
 0x4f2   :  { %v2978_v54 = vpop.eup %2977  ;;  %1346 = vmatpush.bf16.msra.mxu2 %v2574_v41  ;;  %v1290_v41 = vpop.f32.mrf.mxu0 }
 0x4f3   :  { %v2980_v59 = vpop.eup %2979  ;;  %v926_v61 = vmul.f32 %v2978_v54, %v3657_v38  ;;  %vm931_vm13 = vweird.f32 %v2978_v54 }
 0x4f4   :  { %v946_v36 = vmul.f32 %v2980_v59, %v3661_v23  ;;  %vm932_vm0 = vmor %vm930_vm15, %vm931_vm13  ;;  %vm951_vm4 = vweird.f32 %v2980_v59 }
 0x4f5   :  { %v927_v5 = vsub.f32 1.0, %v926_v61  ;;  %vm952_vm6 = vmor %vm950_vm5, %vm951_vm4 }
 0x4f6   :  { %v947_v18 = vsub.f32 1.0, %v946_v36  ;;  %v2886_v36 = vld [vmem:[#allocation9 + $0x16c] sm:$0xf] }
 0x4f7   :  { %v928_v31 = vmul.f32 %v2978_v54, %v927_v5  ;;  %v3695_v5 = vor.u32 %v2886_v36, %v2748_v7  ;;  %v2742_v36 = vld [vmem:[#allocation9 + $0x158] sm:$0xf]  ;;  %v2885_v7 = vld [vmem:[#allocation9 + $0x160] sm:$0xf0] }
 0x4f8   :  { %v948_v50 = vmul.f32 %v2980_v59, %v947_v18  ;;  %v2724_v18 = vld [vmem:[#allocation9 + $0x144] sm:$0xf0] }
 0x4f9   :  { %v929_v45 = vadd.f32 %v2978_v54, %v928_v31  ;;  %v3709_v31 = vor.u32 %v2877_v30, %v2712_v47 }
 0x4fa   :  { %v949_v37 = vadd.f32 %v2980_v59, %v948_v50  ;;  %v3714_v50 = vor.u32 %v2874_v56, %v2700_v40  ;;  %v2730_v40 = vld [vmem:[#allocation9 + $0x140] sm:$0xf] }
 0x4fb   :  { %v933_v33 = vsel %vm932_vm0, %v2978_v54, %v929_v45  ;;  %v2688_v45 = vld [vmem:[#allocation9 + $0xfc] sm:$0xf0] }
 0x4fc   :  { %v938_v38 = vsel %vm935_vm2, %v937_v15, %v933_v33  ;;  %v953_v52 = vsel %vm952_vm6, %v2980_v59, %v949_v37  ;;  %v3722_v12 = vor.u32 %v2871_v2, %v2688_v45  ;;  %v3727_v15 = vor.u32 %v2868_v51, %v2676_v3  ;;  %v2882_v2 = vld [vmem:[#allocation9 + $0x148] sm:$0xf0]  ;;  %v2718_v3 = vld [vmem:[#allocation9 + $0x128] sm:$0xf] }
 0x4fd   :  { %v961_v42 = vmul.f32 %v960_v29, %v938_v38  ;;  %v958_v54 = vsel %vm955_vm7, %v957_v21, %v953_v52  ;;  %v2754_v52 = vld [vmem:[#allocation9 + $0x170] sm:$0xf]  ;;  %v2888_v21 = vld [vmem:[#allocation9 + $0x178] sm:$0xf0]  ;;  %v3776_v51 = vor.u32 %v2882_v2, %v2730_v40 }
 0x4fe   :  { %v964_v55 = vsub.f32 1.0, %v958_v54  ;;  %v966_v0 = vmul.f32 %v958_v54, %v3624_v16  ;;  %v1121_v54 = vld [vmem:[%s4102_s4] sm:$0x7] }
 0x4ff   :  { %v962_v49 = vadd.f32 %v961_v42, %v880_v32 }
 0x501   :  { %2981 = vtanh.f32 %v962_v49 }
 0x507   :  { %v2982_v58 = vpop.eup %2981 }
 0x508   :  { %v965_v61 = vmul.f32 %v2982_v58, %v964_v55  ;;  %v3756_v55 = vor.u32 %v2888_v21, %v2754_v52 }
 0x50a   :  { %v967_v57 = vadd.f32 %v966_v0, %v965_v61  ;;  %1597 = vmatpush.bf16.msrb.mxu0 %v3756_v55  ;;  %v3762_v0 = vperm.slane %v1121_v54, 0 }
 0x50c   :  { %v3691_v23 = vsel %vm973_vm9, %v967_v57, %v3624_v16  ;;  %v2880_v16 = vld [vmem:[#allocation9 + $0x13c] sm:$0xf]  ;;  %v3764_v57 = vperm.slane %v1121_v54, 1  ;;  %v1291_v47 = vadd.f32 %v1290_v41, %v3762_v0 }
 0x50d   :  { %v975_v59 = vpack.c.bf16 %v3691_v23, %v3691_v23  ;;  %v3704_v35 = vor.u32 %v2880_v16, %v2724_v18  ;;  %v3768_v16 = vor.u32 %v2885_v7, %v2742_v36 }
 0x50f   :  { %977 = vst [vmem:[#allocation3 + $0x18] sm:$0xf] %v975_v59  ;;  %992 = vmatmul.bf16.vlgmr.msrb.gmra.mxu1 %v975_v59  ;;  %1005 = vmatmul.bf16.vlgmr.msrb.gmra.mxu2 %v975_v59 }
 0x510   :  { %1018 = vmatmul.bf16.vlgmr.msrb.gmra.mxu3 %v975_v59  ;;  %1666 = vmatpush.bf16.msrb.mxu1 %v3637_v8  ;;  %v1292_v59 = vpop.f32.mrf.mxu0 }
 0x511   :  { %1584 = vmatpush.bf16.msrb.mxu3 %v3695_v5  ;;  %1679 = vmatpush.bf16.msrb.mxu2 %v3695_v5 }
 0x512   :  { %1598 = vmatpush.bf16.msrb.mxu0 %v3768_v16 }
 0x514   :  { %1667 = vmatpush.bf16.msrb.mxu1 %v3640_v17 }
 0x515   :  { %1585 = vmatpush.bf16.msrb.mxu3 %v3699_v19  ;;  %1680 = vmatpush.bf16.msrb.mxu2 %v3699_v19 }
 0x516   :  { %1599 = vmatpush.bf16.msrb.mxu0 %v3776_v51 }
 0x518   :  { %1668 = vmatpush.bf16.msrb.mxu1 %v3645_v25 }
 0x519   :  { %1586 = vmatpush.bf16.msrb.mxu3 %v3704_v35  ;;  %1681 = vmatpush.bf16.msrb.mxu2 %v3704_v35 }
 0x51c   :  { %1669 = vmatpush.bf16.msrb.mxu1 %v3648_v63 }
 0x51d   :  { %1587 = vmatpush.bf16.msrb.mxu3 %v3709_v31  ;;  %1682 = vmatpush.bf16.msrb.mxu2 %v3709_v31 }
 0x51f   :  { %1318 = vmatmul.bf16.vlgmr.msra.gmra.mxu1 %v3628_v53  ;;  %1347 = vmatmul.bf16.vlgmr.msra.gmra.mxu2 %v3628_v53  ;;  %v2865_v53 = vld [vmem:[#allocation9 + $0xc4] sm:$0xf] }
 0x520   :  { %1579 = vmatmul.bf16.vlgmr.msra.gmra.mxu3 %v3211_v44  ;;  %1670 = vmatpush.bf16.msrb.mxu1 %v3651_v14  ;;  %v3732_v24 = vor.u32 %v2865_v53, %v2664_v20  ;;  %v2879_v53 = vld [vmem:[#allocation9 + $0x130] sm:$0xf0] }
 0x521   :  { %1588 = vmatpush.bf16.msrb.mxu3 %v3714_v50  ;;  %1683 = vmatpush.bf16.msrb.mxu2 %v3714_v50 }
 0x524   :  { %1671 = vmatpush.bf16.msrb.mxu1 %v3654_v26 }
 0x525   :  { %1589 = vmatpush.bf16.msrb.mxu3 %v3722_v12  ;;  %1684 = vmatpush.bf16.msrb.mxu2 %v3722_v12 }
 0x528   :  { %1672 = vmatpush.bf16.msrb.mxu1 %v3659_v9 }
 0x529   :  { %1590 = vmatpush.bf16.msrb.mxu3 %v3727_v15  ;;  %1685 = vmatpush.bf16.msrb.mxu2 %v3727_v15 }
 0x52c   :  { %1673 = vmatpush.bf16.msrb.mxu1 %v3666_v39 }
 0x52d   :  { %1591 = vmatpush.bf16.msrb.mxu3 %v3732_v24  ;;  %1686 = vmatpush.bf16.msrb.mxu2 %v3732_v24 }
 0x52f   :  { %1323 = vmatmul.bf16.gmra.mxu1 %v3631_v60  ;;  %1352 = vmatmul.bf16.gmra.mxu2 %v3631_v60  ;;  %v979_v60 = vld [vmem:[#allocation4 + $0x54] sm:$0xff] }
 0x530   :  { %1774 = vmatpush.bf16.msra.mxu1 %v3695_v5  ;;  %1592 = vmatmul.bf16.vlgmr.msrb.gmra.mxu3 %v3211_v44  ;;  %v981_v29 = vunpack.c.l.bf16 %v979_v60  ;;  %v982_v37 = vunpack.c.h.bf16 %v979_v60  ;;  %v3781_v60 = vperm.slane %v1121_v54, 2 }
 0x531   :  { %1692 = vmatpush.bf16.msra.mxu3 %v3756_v55  ;;  %1787 = vmatpush.bf16.msra.mxu2 %v3756_v55 }
 0x534   :  { %1775 = vmatpush.bf16.msra.mxu1 %v3699_v19 }
 0x535   :  { %1693 = vmatpush.bf16.msra.mxu3 %v3768_v16  ;;  %1788 = vmatpush.bf16.msra.mxu2 %v3768_v16 }
 0x538   :  { %1776 = vmatpush.bf16.msra.mxu1 %v3704_v35 }
 0x539   :  { %1694 = vmatpush.bf16.msra.mxu3 %v3776_v51  ;;  %1789 = vmatpush.bf16.msra.mxu2 %v3776_v51 }
 0x53c   :  { %1777 = vmatpush.bf16.msra.mxu1 %v3709_v31 }
 0x53f   :  { %1328 = vmatmul.bf16.gmra.mxu1 %v3634_v62  ;;  %1357 = vmatmul.bf16.gmra.mxu2 %v3634_v62 }
 0x540   :  { %1778 = vmatpush.bf16.msra.mxu1 %v3714_v50 }
 0x544   :  { %1779 = vmatpush.bf16.msra.mxu1 %v3722_v12 }
 0x548   :  { %1780 = vmatpush.bf16.msra.mxu1 %v3727_v15 }
 0x54c   :  { %1781 = vmatpush.bf16.msra.mxu1 %v3732_v24 }
 0x58c   :  { %v993_v32 = vpop.f32.mrf.mxu1 }
 0x58d   :  { %v1023_v33 = vadd.f32 %v993_v32, %v981_v29 }
 0x58f   :  { %v2545_v38 = vmul.f32 -1.442695, %v1023_v33 }
 0x591   :  { %2983 = vpow2.f32 %v2545_v38  ;;  %v3787_v38 = vor.u32 %v2879_v53, %v2718_v3 }
 0x592   :  { %v1006_v42 = vpop.f32.mrf.mxu2 }
 0x593   :  { %v1043_v43 = vadd.f32 %v1006_v42, %v982_v37  ;;  %v3751_v46 = vpop.f32.mrf.mxu3  ;;  %1600 = vmatpush.bf16.msrb.mxu0 %v3787_v38  ;;  %1695 = vmatpush.bf16.msra.mxu3 %v3787_v38 }
 0x594   :  { %v995_v49 = vpop.f32.mrf.mxu1  ;;  %1790 = vmatpush.bf16.msra.mxu2 %v3787_v38 }
 0x595   :  { %v2546_v62 = vmul.f32 -1.442695, %v1043_v43  ;;  %v1293_v49 = vadd.f32 %v1292_v59, %v3762_v0 }
 0x597   :  { %v2984_v58 = vpop.eup %2983  ;;  %2985 = vpow2.f32 %v2546_v62  ;;  %v1295_v62 = vpop.f32.mrf.mxu0 }
 0x598   :  { %v3758_v61 = vadd.f32 1.0, %v2984_v58 }
 0x59a   :  { %2987 = vrcp.f32 %v3758_v61  ;;  %v1008_v10 = vpop.f32.mrf.mxu2  ;;  %v1037_v52 = vand.u32 2147483647, %v3758_v61  ;;  %v1039_v21 = vand.u32 2147483648, %v3758_v61  ;;  %vm1033_vm15 = vweird.f32 %v3758_v61 }
 0x59b   :  { %v1021_v11 = vpop.f32.mrf.mxu3 }
 0x59c   :  { %v1319_v18 = vpop.f32.mrf.mxu1  ;;  %v2706_v11 = vld [vmem:[#allocation9 + $0x110] sm:$0xf]  ;;  %vm1038_vm2 = vcmp.eq.f32.partialorder %v1037_v52, 8.507059e+37  ;;  %v1040_v3 = vor.u32 1.1754944e-38, %v1039_v21 }
 0x59d   :  { %v2986_v30 = vpop.eup %2985  ;;  %v1320_v56 = vadd.f32 %v1319_v18, %v3764_v57  ;;  %v2876_v18 = vld [vmem:[#allocation9 + $0x118] sm:$0xf0] }
 0x59e   :  { %v3774_v45 = vadd.f32 1.0, %v2986_v30  ;;  %v980_v30 = vld [vmem:[#allocation4 + $0x5c] sm:$0xf] }
 0x59f   :  { %v3779_v20 = vpack.c.bf16 %v1320_v56, %v1291_v47  ;;  %v3800_v47 = vor.u32 %v2876_v18, %v2706_v11 }
 0x5a0   :  { %v2988_v29 = vpop.eup %2987  ;;  %2989 = vrcp.f32 %v3774_v45  ;;  %vm1053_vm5 = vweird.f32 %v3774_v45 }
 0x5a1   :  { %v1029_v32 = vmul.f32 %v2988_v29, %v3758_v61  ;;  %v1440_v33 = vunpack.c.l.bf16 %v3779_v20  ;;  %vm1034_vm13 = vweird.f32 %v2988_v29  ;;  %1601 = vmatpush.bf16.msrb.mxu0 %v3800_v47  ;;  %1696 = vmatpush.bf16.msra.mxu3 %v3800_v47  ;;  %v1059_v61 = vand.u32 2147483648, %v3774_v45 }
 0x5a2   :  { %v1348_v37 = vpop.f32.mrf.mxu2  ;;  %vm1035_vm0 = vmor %vm1033_vm15, %vm1034_vm13  ;;  %1791 = vmatpush.bf16.msra.mxu2 %v3800_v47 }
 0x5a3   :  { %v1030_v41 = vsub.f32 1.0, %v1029_v32  ;;  %v1349_v42 = vadd.f32 %v1348_v37, %v3781_v60  ;;  %v1580_v43 = vpop.f32.mrf.mxu3  ;;  %v983_v32 = vunpack.c.l.bf16 %v980_v30  ;;  %v1063_v37 = vadd.f32 %v3677_v27, %v3751_v46 }
 0x5a4   :  { %v3795_v54 = vadd.f32 %v1580_v43, %v1440_v33  ;;  %v1321_v58 = vpop.f32.mrf.mxu1  ;;  %v1296_v46 = vadd.f32 %v1295_v62, %v3762_v0 }
 0x5a5   :  { %v1031_v36 = vmul.f32 %v2988_v29, %v1030_v41  ;;  %v1369_v7 = vpack.c.bf16 %v1349_v42, %v1349_v42  ;;  %v1322_v10 = vadd.f32 %v1321_v58, %v3764_v57  ;;  %v2694_v41 = vld [vmem:[#allocation9 + $0xf8] sm:$0xf]  ;;  %v2873_v42 = vld [vmem:[#allocation9 + $0x100] sm:$0xf0] }
 0x5a6   :  { %v2990_v59 = vpop.eup %2989  ;;  %v3813_v58 = vor.u32 %v2873_v42, %v2694_v41 }
 0x5a7   :  { %v1049_v56 = vmul.f32 %v2990_v59, %v3774_v45  ;;  %v1032_v40 = vadd.f32 %v2988_v29, %v1031_v36  ;;  %1385 = vst [vmem:[#allocation2 + $0x8] sm:$0xf] %v1369_v7  ;;  %v3805_v2 = vpack.c.bf16 %v1322_v10, %v1293_v49  ;;  %vm1054_vm4 = vweird.f32 %v2990_v59 }
 0x5a8   :  { %v1057_v36 = vand.u32 2147483647, %v3774_v45  ;;  %1602 = vmatpush.bf16.msrb.mxu0 %v3813_v58  ;;  %vm1055_vm6 = vmor %vm1053_vm5, %vm1054_vm4  ;;  %1697 = vmatpush.bf16.msra.mxu3 %v3813_v58  ;;  %v1060_v45 = vor.u32 1.1754944e-38, %v1059_v61 }
 0x5a9   :  { %v1050_v53 = vsub.f32 1.0, %v1049_v56  ;;  %v1036_v33 = vsel %vm1035_vm0, %v2988_v29, %v1032_v40  ;;  %v2682_v56 = vld [vmem:[#allocation9 + $0xe0] sm:$0xf]  ;;  %v2870_v40 = vld [vmem:[#allocation9 + $0xe8] sm:$0xf0]  ;;  %1792 = vmatpush.bf16.msra.mxu2 %v3813_v58  ;;  %v1662_v34 = vunpack.c.l.bf16 %v3805_v2 }
 0x5aa   :  { %v1041_v43 = vsel %vm1038_vm2, %v1040_v3, %v1036_v33  ;;  %v1350_v49 = vpop.f32.mrf.mxu2  ;;  %v1297_v3 = vpop.f32.mrf.mxu0  ;;  %v2670_v33 = vld [vmem:[#allocation9 + $0xc8] sm:$0xf]  ;;  %vm1058_vm7 = vcmp.eq.f32.partialorder %v1057_v36, 8.507059e+37 }
 0x5ab   :  { %v1051_v52 = vmul.f32 %v2990_v59, %v1050_v53  ;;  %v1064_v29 = vmul.f32 %v1063_v37, %v1041_v43  ;;  %v1351_v21 = vadd.f32 %v1350_v49, %v3781_v60  ;;  %v1582_v27 = vpop.f32.mrf.mxu3  ;;  %v3823_v53 = vor.u32 %v2870_v40, %v2682_v56  ;;  %v2867_v37 = vld [vmem:[#allocation9 + $0xd0] sm:$0xf0] }
 0x5ac   :  { %v1324_v7 = vpop.f32.mrf.mxu1  ;;  %v3830_v42 = vor.u32 %v2867_v37, %v2670_v33  ;;  %v1441_v49 = vunpack.c.h.bf16 %v3779_v20  ;;  %v3841_v20 = vpop.permute.xlu1 %1074 }
 0x5ad   :  { %v1052_v10 = vadd.f32 %v2990_v59, %v1051_v52  ;;  %v1065_v11 = vadd.f32 %v1064_v29, %v983_v32  ;;  %v1371_v18 = vpack.c.bf16 %v1351_v21, %v1351_v21  ;;  %v1325_v30 = vadd.f32 %v1324_v7, %v3764_v57  ;;  %1603 = vmatpush.bf16.msrb.mxu0 %v3823_v53 }
 0x5ae   :  { %1698 = vmatpush.bf16.msra.mxu3 %v3823_v53  ;;  %1793 = vmatpush.bf16.msra.mxu2 %v3823_v53  ;;  %vm1076_vm13 = vcmp.eq.s32.totalorder %v3841_v20, 1 }
 0x5af   :  { %v1056_v62 = vsel %vm1055_vm6, %v2990_v59, %v1052_v10  ;;  %2991 = vtanh.f32 %v1065_v11  ;;  %1387 = vst [vmem:[#allocation2 + $0x14] sm:$0xf] %v1371_v18  ;;  %v3827_v32 = vpack.c.bf16 %v1325_v30, %v1296_v46  ;;  %v1298_v46 = vadd.f32 %v1297_v3, %v3762_v0 }
 0x5b0   :  { %v1061_v41 = vsel %vm1058_vm7, %v1060_v45, %v1056_v62 }
 0x5b1   :  { %v1067_v52 = vsub.f32 1.0, %v1061_v41  ;;  %1604 = vmatpush.bf16.msrb.mxu0 %v3830_v42  ;;  %v1069_v11 = vmul.f32 %v1061_v41, %v3691_v23  ;;  %v1757_v28 = vunpack.c.l.bf16 %v3827_v32  ;;  %v1758_v4 = vunpack.c.h.bf16 %v3827_v32 }
 0x5b2   :  { %v1353_v43 = vpop.f32.mrf.mxu2  ;;  %1699 = vmatpush.bf16.msra.mxu3 %v3830_v42  ;;  %1794 = vmatpush.bf16.msra.mxu2 %v3830_v42  ;;  %v1300_v30 = vpop.f32.mrf.mxu0 }
 0x5b3   :  { %v1354_v59 = vadd.f32 %v1353_v43, %v3781_v60  ;;  %v1593_v61 = vpop.f32.mrf.mxu3  ;;  %v1301_v41 = vadd.f32 %v1300_v30, %v3762_v0 }
 0x5b4   :  { %v3836_v29 = vadd.f32 %v1593_v61, %v1441_v49  ;;  %v1326_v21 = vpop.f32.mrf.mxu1 }
 0x5b5   :  { %v2992_v27 = vpop.eup %2991  ;;  %v1373_v36 = vpack.c.bf16 %v1354_v59, %v1354_v59  ;;  %v1327_v7 = vadd.f32 %v1326_v21, %v3764_v57  ;;  %1761 = vmatpush.bf16.msra.mxu0 %v3637_v8 }
 0x5b6   :  { %v1068_v10 = vmul.f32 %v2992_v27, %v1067_v52  ;;  %1856 = vmatpush.bf16.msrb.mxu3 %v3637_v8 }
 0x5b7   :  { %1389 = vst [vmem:[#allocation2 + $0x20] sm:$0xf] %v1373_v36  ;;  %v3846_v18 = vpack.c.bf16 %v1327_v7, %v1298_v46 }
 0x5b8   :  { %v1070_v56 = vadd.f32 %v1069_v11, %v1068_v10 }
 0x5b9   :  { %1762 = vmatpush.bf16.msra.mxu0 %v3640_v17  ;;  %v1853_v13 = vunpack.c.h.bf16 %v3846_v18 }
 0x5ba   :  { %v1077_v40 = vsel %vm1076_vm13, %v1070_v56, %v3691_v23  ;;  %v1355_v3 = vpop.f32.mrf.mxu2  ;;  %1857 = vmatpush.bf16.msrb.mxu3 %v3640_v17  ;;  %v1302_v59 = vpop.f32.mrf.mxu0 }
 0x5bb   :  { %v1078_v45 = vpack.c.bf16 %v1077_v40, %v1077_v40  ;;  %v1356_v62 = vadd.f32 %v1355_v3, %v3781_v60  ;;  %v1595_v33 = vpop.f32.mrf.mxu3  ;;  %v1303_v46 = vadd.f32 %v1302_v59, %v3762_v0  ;;  %v2756_v40 = vmul.f32 -1.442695, %v3795_v54 }
 0x5bc   :  { %v1329_v37 = vpop.f32.mrf.mxu1 }
 0x5bd   :  { %1080 = vst [vmem:[#allocation3 + $0x1c] sm:$0xf] %v1078_v45  ;;  %v1375_v43 = vpack.c.bf16 %v1356_v62, %v1356_v62  ;;  %v1330_v49 = vadd.f32 %v1329_v37, %v3764_v57  ;;  %1763 = vmatpush.bf16.msra.mxu0 %v3645_v25  ;;  %2993 = vpow2.f32 %v2756_v40 }
 0x5be   :  { %1858 = vmatpush.bf16.msrb.mxu3 %v3645_v25 }
 0x5bf   :  { %1391 = vst [vmem:[#allocation2 + $0x2c] sm:$0xf] %v1375_v43  ;;  %v3860_v23 = vpack.c.bf16 %v1330_v49, %v1301_v41 }
 0x5c1   :  { %1764 = vmatpush.bf16.msra.mxu0 %v3648_v63 }
 0x5c2   :  { %v1358_v61 = vpop.f32.mrf.mxu2  ;;  %1859 = vmatpush.bf16.msrb.mxu3 %v3648_v63 }
 0x5c3   :  { %v1359_v52 = vadd.f32 %v1358_v61, %v3781_v60  ;;  %v2994_v3 = vpop.eup %2993 }
 0x5c4   :  { %v1331_v21 = vpop.f32.mrf.mxu1  ;;  %v2840_v27 = vld [vmem:[#allocation3 + $0x18] sm:$0xff]  ;;  %v1614_v45 = vadd.f32 1.0, %v2994_v3 }
 0x5c5   :  { %v1377_v36 = vpack.c.bf16 %v1359_v52, %v1359_v52  ;;  %v1332_v7 = vadd.f32 %v1331_v21, %v3764_v57  ;;  %1304 = vmatmul.bf16.gmra.mxu0 %v2840_v27  ;;  %1333 = vmatmul.bf16.gmra.mxu1 %v2840_v27 }
 0x5c6   :  { %1362 = vmatmul.bf16.gmra.mxu2 %v2840_v27  ;;  %1765 = vmatpush.bf16.msra.mxu0 %v3651_v14  ;;  %vm1620_vm0 = vweird.f32 %v1614_v45 }
 0x5c7   :  { %1393 = vst [vmem:[#allocation2 + $0x38] sm:$0xf] %v1377_v36  ;;  %v3868_v10 = vpack.c.bf16 %v1332_v7, %v1303_v46  ;;  %1860 = vmatpush.bf16.msrb.mxu3 %v3651_v14 }
 0x5c9   :  { %v2042_v1 = vunpack.c.l.bf16 %v3868_v10 }
 0x5ca   :  { %v1360_v11 = vpop.f32.mrf.mxu2  ;;  %1766 = vmatpush.bf16.msra.mxu0 %v3654_v26 }
 0x5cb   :  { %v1361_v30 = vadd.f32 %v1360_v11, %v3781_v60  ;;  %1861 = vmatpush.bf16.msrb.mxu3 %v3654_v26 }
 0x5cd   :  { %v1379_v56 = vpack.c.bf16 %v1361_v30, %v1361_v30 }
 0x5ce   :  { %1767 = vmatpush.bf16.msra.mxu0 %v3659_v9 }
 0x5cf   :  { %1395 = vst [vmem:[#allocation2 + $0x44] sm:$0xf] %v1379_v56  ;;  %1862 = vmatpush.bf16.msrb.mxu3 %v3659_v9 }
 0x5d2   :  { %1768 = vmatpush.bf16.msra.mxu0 %v3666_v39 }
 0x5d3   :  { %1863 = vmatpush.bf16.msrb.mxu3 %v3666_v39 }
 0x5d5   :  { %1605 = vmatmul.bf16.vlgmr.msrb.gmra.mxu0 %v3211_v44  ;;  %v2757_v44 = vmul.f32 -1.442695, %v3836_v29 }
 0x5d6   :  { %1869 = vmatpush.bf16.msrb.mxu0 %v3695_v5 }
 0x5d7   :  { %2995 = vpow2.f32 %v2757_v44 }
 0x5d8   :  { %2997 = vrcp.f32 %v1614_v45 }
 0x5da   :  { %1870 = vmatpush.bf16.msrb.mxu0 %v3699_v19 }
 0x5dd   :  { %v2996_v62 = vpop.eup %2995 }
 0x5de   :  { %1871 = vmatpush.bf16.msrb.mxu0 %v3704_v35  ;;  %v1634_v33 = vadd.f32 1.0, %v2996_v62  ;;  %v2998_v37 = vpop.eup %2997 }
 0x5df   :  { %v1616_v41 = vmul.f32 %v2998_v37, %v1614_v45  ;;  %vm1621_vm15 = vweird.f32 %v2998_v37 }
 0x5e0   :  { %2999 = vrcp.f32 %v1634_v33  ;;  %vm1622_vm2 = vmor %vm1620_vm0, %vm1621_vm15  ;;  %vm1640_vm6 = vweird.f32 %v1634_v33 }
 0x5e1   :  { %v1617_v21 = vsub.f32 1.0, %v1616_v41  ;;  %v3900_v41 = vld [vmem:[%s4103_s5 + $0x1] ss:$0 sm:$0xff] }
 0x5e2   :  { %1872 = vmatpush.bf16.msrb.mxu0 %v3709_v31 }
 0x5e3   :  { %v1618_v46 = vmul.f32 %v2998_v37, %v1617_v21  ;;  %v1439_v21 = vld [vmem:[#allocation2 + $0x8] sm:$0xf] }
 0x5e5   :  { %v1619_v62 = vadd.f32 %v2998_v37, %v1618_v46 }
 0x5e6   :  { %1873 = vmatpush.bf16.msrb.mxu0 %v3714_v50  ;;  %v3000_v52 = vpop.eup %2999 }
 0x5e7   :  { %v1636_v29 = vmul.f32 %v3000_v52, %v1634_v33  ;;  %vm1641_vm5 = vweird.f32 %v3000_v52 }
 0x5e8   :  { %vm1642_vm7 = vmor %vm1640_vm6, %vm1641_vm5 }
 0x5e9   :  { %v1637_v40 = vsub.f32 1.0, %v1636_v29 }
 0x5ea   :  { %1874 = vmatpush.bf16.msrb.mxu0 %v3722_v12 }
 0x5ee   :  { %1875 = vmatpush.bf16.msrb.mxu0 %v3727_v15 }
 0x5f2   :  { %1876 = vmatpush.bf16.msrb.mxu0 %v3732_v24 }
 0x642   :  { %v1305_v43 = vpop.f32.mrf.mxu0  ;;  %v1334_v49 = vpop.f32.mrf.mxu1 }
 0x643   :  { %v1306_v59 = vadd.f32 %v1305_v43, %v3762_v0  ;;  %v1335_v61 = vadd.f32 %v1334_v49, %v3764_v57  ;;  %v1626_v43 = vand.u32 2147483648, %v1614_v45  ;;  %v1624_v49 = vand.u32 2147483647, %v1614_v45 }
 0x644   :  { %v1644_v45 = vand.u32 2147483647, %v1634_v33 }
 0x645   :  { %v3892_v54 = vpack.c.bf16 %v1335_v61, %v1306_v59  ;;  %v1638_v59 = vmul.f32 %v3000_v52, %v1637_v40  ;;  %v1623_v61 = vsel %vm1622_vm2, %v2998_v37, %v1619_v62  ;;  %vm1625_vm4 = vcmp.eq.f32.partialorder %v1624_v49, 8.507059e+37 }
 0x646   :  { %vm1645_vm15 = vcmp.eq.f32.partialorder %v1644_v45, 8.507059e+37 }
 0x649   :  { %v1363_v27 = vpop.f32.mrf.mxu2 }
 0x64a   :  { %v1364_v36 = vadd.f32 %v1363_v27, %v3781_v60  ;;  %v1307_v7 = vpop.f32.mrf.mxu0  ;;  %v1336_v11 = vpop.f32.mrf.mxu1  ;;  %v1627_v27 = vor.u32 1.1754944e-38, %v1626_v43 }
 0x64b   :  { %v1308_v30 = vadd.f32 %v1307_v7, %v3762_v0  ;;  %v1337_v56 = vadd.f32 %v1336_v11, %v3764_v57 }
 0x64c   :  { %v1381_v44 = vpack.c.bf16 %v1364_v36, %v1364_v36  ;;  %v1639_v36 = vadd.f32 %v3000_v52, %v1638_v59  ;;  %v1628_v11 = vsel %vm1625_vm4, %v1627_v27, %v1623_v61 }
 0x64d   :  { %v1382_v3 = vpack.c.bf16 %v1337_v56, %v1308_v30  ;;  %v1646_v30 = vand.u32 2147483648, %v1634_v33  ;;  %v1442_v56 = vunpack.c.l.bf16 %v1439_v21 }
 0x64e   :  { %1397 = vst [vmem:[#allocation2 + $0x50] sm:$0xf] %v1381_v44  ;;  %v1643_v40 = vsel %vm1642_vm7, %v3000_v52, %v1639_v36 }
 0x64f   :  { %1398 = vst [vmem:[#allocation2 + $0x54] sm:$0xff] %v1382_v3 }
 0x651   :  { %v1365_v0 = vpop.f32.mrf.mxu2 }
 0x652   :  { %v1366_v57 = vadd.f32 %v1365_v0, %v3781_v60  ;;  %v1606_v29 = vpop.f32.mrf.mxu0  ;;  %v1647_v60 = vor.u32 1.1754944e-38, %v1646_v30 }
 0x653   :  { %v1650_v46 = vadd.f32 %v3900_v41, %v1606_v29  ;;  %v1663_v29 = vunpack.c.h.bf16 %v3805_v2 }
 0x654   :  { %v1383_v7 = vpack.c.bf16 %v1366_v57, %v1366_v57  ;;  %v1648_v62 = vsel %vm1645_vm15, %v1647_v60, %v1643_v40 }
 0x655   :  { %v1651_v44 = vmul.f32 %v1650_v46, %v1628_v11  ;;  %v1654_v43 = vsub.f32 1.0, %v1648_v62  ;;  %v1656_v0 = vmul.f32 0.0, %v1648_v62 }
 0x656   :  { %1399 = vst [vmem:[#allocation2 + $0x5c] sm:$0xf] %v1383_v7 }
 0x657   :  { %v1652_v37 = vadd.f32 %v1651_v44, %v1442_v56 }
 0x659   :  { %3001 = vtanh.f32 %v1652_v37 }
 0x65a   :  { %v1608_v3 = vpop.f32.mrf.mxu0 }
 0x65f   :  { %v3002_v49 = vpop.eup %3001 }
 0x660   :  { %v1655_v59 = vmul.f32 %v3002_v49, %v1654_v43 }
 0x662   :  { %v3904_v57 = vadd.f32 %v1656_v0, %v1655_v59 }
 0x664   :  { %v2759_v61 = vpack.c.bf16 %v3904_v57, %v3904_v57 }
 0x666   :  { %2760 = vmatmul.msk.bf16.vlgmr.msrb.gmra.mxu1 %vm3435_vm12, %v2759_v61  ;;  %2763 = vmatmul.msk.bf16.vlgmr.msrb.gmra.mxu2 %vm3435_vm12, %v2759_v61 }
 0x667   :  { %2766 = vmatmul.msk.bf16.vlgmr.msra.gmra.mxu3 %vm3435_vm12, %v2759_v61  ;;  %1882 = vmatpush.bf16.msrb.mxu1 %v3756_v55  ;;  %v1661_v61 = vld [vmem:[#allocation2 + $0x14] sm:$0xf] }
 0x668   :  { %1951 = vmatpush.bf16.msrb.mxu2 %v3637_v8  ;;  %1964 = vmatpush.bf16.msra.mxu3 %v3695_v5 }
 0x66b   :  { %1883 = vmatpush.bf16.msrb.mxu1 %v3768_v16 }
 0x66c   :  { %1952 = vmatpush.bf16.msrb.mxu2 %v3640_v17  ;;  %1965 = vmatpush.bf16.msra.mxu3 %v3699_v19 }
 0x66f   :  { %1884 = vmatpush.bf16.msrb.mxu1 %v3776_v51 }
 0x670   :  { %1953 = vmatpush.bf16.msrb.mxu2 %v3645_v25  ;;  %1966 = vmatpush.bf16.msra.mxu3 %v3704_v35 }
 0x673   :  { %1885 = vmatpush.bf16.msrb.mxu1 %v3787_v38 }
 0x674   :  { %1954 = vmatpush.bf16.msrb.mxu2 %v3648_v63  ;;  %1967 = vmatpush.bf16.msra.mxu3 %v3709_v31 }
 0x677   :  { %1886 = vmatpush.bf16.msrb.mxu1 %v3800_v47 }
 0x678   :  { %1955 = vmatpush.bf16.msrb.mxu2 %v3651_v14  ;;  %1968 = vmatpush.bf16.msra.mxu3 %v3714_v50 }
 0x67b   :  { %1887 = vmatpush.bf16.msrb.mxu1 %v3813_v58 }
 0x67c   :  { %1956 = vmatpush.bf16.msrb.mxu2 %v3654_v26  ;;  %1969 = vmatpush.bf16.msra.mxu3 %v3722_v12 }
 0x67f   :  { %1888 = vmatpush.bf16.msrb.mxu1 %v3823_v53 }
 0x680   :  { %1957 = vmatpush.bf16.msrb.mxu2 %v3659_v9  ;;  %1970 = vmatpush.bf16.msra.mxu3 %v3727_v15 }
 0x683   :  { %1889 = vmatpush.bf16.msrb.mxu1 %v3830_v42 }
 0x684   :  { %1958 = vmatpush.bf16.msrb.mxu2 %v3666_v39  ;;  %1971 = vmatpush.bf16.msra.mxu3 %v3732_v24 }
 0x6e3   :  { %v1675_v33 = vpop.f32.mrf.mxu1 }
 0x6e4   :  { %v1705_v52 = vadd.f32 %v1675_v33, %v1662_v34 }
 0x6e6   :  { %v2767_v21 = vmul.f32 -1.442695, %v1705_v52 }
 0x6e8   :  { %3003 = vpow2.f32 %v2767_v21 }
 0x6e9   :  { %v1688_v27 = vpop.f32.mrf.mxu2 }
 0x6ea   :  { %v1725_v46 = vadd.f32 %v1688_v27, %v1663_v29  ;;  %v1701_v36 = vpop.f32.mrf.mxu3 }
 0x6eb   :  { %v1677_v7 = vpop.f32.mrf.mxu1  ;;  %v1745_v29 = vadd.f32 %v3900_v41, %v1701_v36  ;;  %v1658_v36 = vsel %vm356_vm11, %v3904_v57, 0.0 }
 0x6ec   :  { %v2768_v11 = vmul.f32 -1.442695, %v1725_v46  ;;  %v1664_v46 = vunpack.c.l.bf16 %v1661_v61 }
 0x6ee   :  { %v3004_v30 = vpop.eup %3003  ;;  %3005 = vpow2.f32 %v2768_v11 }
 0x6ef   :  { %v1709_v56 = vadd.f32 1.0, %v3004_v30 }
 0x6f1   :  { %3007 = vrcp.f32 %v1709_v56  ;;  %v1690_v44 = vpop.f32.mrf.mxu2  ;;  %v1721_v43 = vand.u32 2147483648, %v1709_v56  ;;  %v1719_v2 = vand.u32 2147483647, %v1709_v56  ;;  %vm1715_vm0 = vweird.f32 %v1709_v56 }
 0x6f2   :  { %v1703_v45 = vpop.f32.mrf.mxu3 }
 0x6f3   :  { %v1722_v33 = vor.u32 1.1754944e-38, %v1721_v43  ;;  %vm1720_vm4 = vcmp.eq.f32.partialorder %v1719_v2, 8.507059e+37 }
 0x6f4   :  { %v3006_v37 = vpop.eup %3005 }
 0x6f5   :  { %v1729_v40 = vadd.f32 1.0, %v3006_v37 }
 0x6f7   :  { %v3008_v60 = vpop.eup %3007  ;;  %3009 = vrcp.f32 %v1729_v40  ;;  %v1741_v27 = vand.u32 2147483648, %v1729_v40  ;;  %v1739_v30 = vand.u32 2147483647, %v1729_v40  ;;  %vm1735_vm6 = vweird.f32 %v1729_v40 }
 0x6f8   :  { %v1711_v3 = vmul.f32 %v3008_v60, %v1709_v56  ;;  %vm1716_vm12 = vweird.f32 %v3008_v60 }
 0x6f9   :  { %vm1717_vm2 = vmor %vm1715_vm0, %vm1716_vm12  ;;  %vm1740_vm15 = vcmp.eq.f32.partialorder %v1739_v30, 8.507059e+37 }
 0x6fa   :  { %v1712_v62 = vsub.f32 1.0, %v1711_v3  ;;  %v1742_v3 = vor.u32 1.1754944e-38, %v1741_v27 }
 0x6fc   :  { %v1713_v49 = vmul.f32 %v3008_v60, %v1712_v62 }
 0x6fd   :  { %v3010_v59 = vpop.eup %3009 }
 0x6fe   :  { %v1731_v0 = vmul.f32 %v3010_v59, %v1729_v40  ;;  %v1714_v34 = vadd.f32 %v3008_v60, %v1713_v49  ;;  %vm1736_vm5 = vweird.f32 %v3010_v59 }
 0x6ff   :  { %vm1737_vm7 = vmor %vm1735_vm6, %vm1736_vm5 }
 0x700   :  { %v1732_v52 = vsub.f32 1.0, %v1731_v0  ;;  %v1718_v21 = vsel %vm1717_vm2, %v3008_v60, %v1714_v34 }
 0x701   :  { %v1723_v7 = vsel %vm1720_vm4, %v1722_v33, %v1718_v21 }
 0x702   :  { %v1733_v11 = vmul.f32 %v3010_v59, %v1732_v52  ;;  %v1746_v44 = vmul.f32 %v1745_v29, %v1723_v7 }
 0x704   :  { %v1734_v45 = vadd.f32 %v3010_v59, %v1733_v11  ;;  %v1747_v37 = vadd.f32 %v1746_v44, %v1664_v46 }
 0x706   :  { %v1738_v56 = vsel %vm1737_vm7, %v3010_v59, %v1734_v45  ;;  %3011 = vtanh.f32 %v1747_v37 }
 0x707   :  { %v1743_v62 = vsel %vm1740_vm15, %v1742_v3, %v1738_v56 }
 0x708   :  { %v1751_v60 = vmul.f32 %v1743_v62, %v1658_v36  ;;  %v1749_v43 = vsub.f32 1.0, %v1743_v62 }
 0x70c   :  { %v3012_v49 = vpop.eup %3011 }
 0x70d   :  { %v1750_v2 = vmul.f32 %v3012_v49, %v1749_v43 }
 0x70f   :  { %v1752_v0 = vadd.f32 %v1751_v60, %v1750_v2 }
 0x711   :  { %v3946_v61 = vsel %vm458_vm8, %v1752_v0, %v1658_v36 }
 0x712   :  { %v1760_v40 = vpack.c.bf16 %v3946_v61, %v3946_v61 }
 0x714   :  { %1769 = vmatmul.bf16.vlgmr.msra.gmra.mxu0 %v1760_v40  ;;  %1782 = vmatmul.bf16.vlgmr.msra.gmra.mxu1 %v1760_v40 }
 0x715   :  { %1795 = vmatmul.bf16.vlgmr.msra.gmra.mxu2 %v1760_v40  ;;  %1977 = vmatpush.bf16.msra.mxu0 %v3756_v55  ;;  %v1756_v40 = vld [vmem:[#allocation2 + $0x20] sm:$0xf] }
 0x716   :  { %2046 = vmatpush.bf16.msra.mxu1 %v3637_v8  ;;  %2059 = vmatpush.bf16.msra.mxu2 %v3695_v5 }
 0x719   :  { %1978 = vmatpush.bf16.msra.mxu0 %v3768_v16 }
 0x71a   :  { %2047 = vmatpush.bf16.msra.mxu1 %v3640_v17  ;;  %2060 = vmatpush.bf16.msra.mxu2 %v3699_v19 }
 0x71d   :  { %1979 = vmatpush.bf16.msra.mxu0 %v3776_v51 }
 0x71e   :  { %2048 = vmatpush.bf16.msra.mxu1 %v3645_v25  ;;  %2061 = vmatpush.bf16.msra.mxu2 %v3704_v35 }
 0x721   :  { %1980 = vmatpush.bf16.msra.mxu0 %v3787_v38 }
 0x722   :  { %2049 = vmatpush.bf16.msra.mxu1 %v3648_v63  ;;  %2062 = vmatpush.bf16.msra.mxu2 %v3709_v31 }
 0x725   :  { %1981 = vmatpush.bf16.msra.mxu0 %v3800_v47 }
 0x726   :  { %2050 = vmatpush.bf16.msra.mxu1 %v3651_v14  ;;  %2063 = vmatpush.bf16.msra.mxu2 %v3714_v50 }
 0x729   :  { %1982 = vmatpush.bf16.msra.mxu0 %v3813_v58 }
 0x72a   :  { %2051 = vmatpush.bf16.msra.mxu1 %v3654_v26  ;;  %2064 = vmatpush.bf16.msra.mxu2 %v3722_v12 }
 0x72d   :  { %1983 = vmatpush.bf16.msra.mxu0 %v3823_v53 }
 0x72e   :  { %2052 = vmatpush.bf16.msra.mxu1 %v3659_v9  ;;  %2065 = vmatpush.bf16.msra.mxu2 %v3727_v15 }
 0x731   :  { %1984 = vmatpush.bf16.msra.mxu0 %v3830_v42 }
 0x732   :  { %2053 = vmatpush.bf16.msra.mxu1 %v3666_v39  ;;  %2066 = vmatpush.bf16.msra.mxu2 %v3732_v24 }
 0x791   :  { %v1770_v57 = vpop.f32.mrf.mxu0  ;;  %v1783_v59 = vpop.f32.mrf.mxu1 }
 0x792   :  { %v1800_v34 = vadd.f32 %v1770_v57, %v1757_v28  ;;  %v1820_v33 = vadd.f32 %v1783_v59, %v1758_v4 }
 0x794   :  { %v2769_v52 = vmul.f32 -1.442695, %v1800_v34  ;;  %v2770_v21 = vmul.f32 -1.442695, %v1820_v33 }
 0x796   :  { %3013 = vpow2.f32 %v2769_v52  ;;  %v1759_v52 = vunpack.c.l.bf16 %v1756_v40 }
 0x797   :  { %3015 = vpow2.f32 %v2770_v21 }
 0x798   :  { %v1796_v29 = vpop.f32.mrf.mxu2 }
 0x799   :  { %v1772_v27 = vpop.f32.mrf.mxu0  ;;  %v1785_v46 = vpop.f32.mrf.mxu1  ;;  %v1840_v57 = vadd.f32 %v3900_v41, %v1796_v29 }
 0x79c   :  { %v3014_v7 = vpop.eup %3013 }
 0x79d   :  { %v3016_v11 = vpop.eup %3015  ;;  %v1804_v30 = vadd.f32 1.0, %v3014_v7 }
 0x79e   :  { %v1824_v44 = vadd.f32 1.0, %v3016_v11 }
 0x79f   :  { %3017 = vrcp.f32 %v1804_v30  ;;  %v1816_v60 = vand.u32 2147483648, %v1804_v30  ;;  %v1814_v49 = vand.u32 2147483647, %v1804_v30  ;;  %vm1810_vm8 = vweird.f32 %v1804_v30 }
 0x7a0   :  { %3019 = vrcp.f32 %v1824_v44  ;;  %v1798_v45 = vpop.f32.mrf.mxu2  ;;  %v1836_v33 = vand.u32 2147483648, %v1824_v44  ;;  %vm1830_vm4 = vweird.f32 %v1824_v44  ;;  %v1834_v27 = vand.u32 2147483647, %v1824_v44 }
 0x7a1   :  { %v1817_v28 = vor.u32 1.1754944e-38, %v1816_v60  ;;  %vm1815_vm0 = vcmp.eq.f32.partialorder %v1814_v49, 8.507059e+37 }
 0x7a2   :  { %v1837_v11 = vor.u32 1.1754944e-38, %v1836_v33  ;;  %vm1835_vm6 = vcmp.eq.f32.partialorder %v1834_v27, 8.507059e+37 }
 0x7a5   :  { %v3018_v37 = vpop.eup %3017 }
 0x7a6   :  { %v3020_v32 = vpop.eup %3019  ;;  %v1806_v3 = vmul.f32 %v3018_v37, %v1804_v30  ;;  %vm1811_vm11 = vweird.f32 %v3018_v37 }
 0x7a7   :  { %v1826_v56 = vmul.f32 %v3020_v32, %v1824_v44  ;;  %vm1812_vm12 = vmor %vm1810_vm8, %vm1811_vm11  ;;  %vm1831_vm2 = vweird.f32 %v3020_v32 }
 0x7a8   :  { %v1807_v62 = vsub.f32 1.0, %v1806_v3  ;;  %vm1832_vm5 = vmor %vm1830_vm4, %vm1831_vm2 }
 0x7a9   :  { %v1827_v36 = vsub.f32 1.0, %v1826_v56 }
 0x7aa   :  { %v1808_v43 = vmul.f32 %v3018_v37, %v1807_v62 }
 0x7ab   :  { %v1828_v2 = vmul.f32 %v3020_v32, %v1827_v36 }
 0x7ac   :  { %v1809_v0 = vadd.f32 %v3018_v37, %v1808_v43  ;;  %v1852_v43 = vunpack.c.l.bf16 %v3846_v18 }
 0x7ad   :  { %v1829_v59 = vadd.f32 %v3020_v32, %v1828_v2 }
 0x7ae   :  { %v1813_v4 = vsel %vm1812_vm12, %v3018_v37, %v1809_v0 }
 0x7af   :  { %v1818_v34 = vsel %vm1815_vm0, %v1817_v28, %v1813_v4  ;;  %v1833_v7 = vsel %vm1832_vm5, %v3020_v32, %v1829_v59 }
 0x7b0   :  { %v1841_v21 = vmul.f32 %v1840_v57, %v1818_v34  ;;  %v1838_v30 = vsel %vm1835_vm6, %v1837_v11, %v1833_v7 }
 0x7b1   :  { %v1844_v45 = vsub.f32 1.0, %v1838_v30  ;;  %v1846_v29 = vmul.f32 %v1838_v30, %v3946_v61 }
 0x7b2   :  { %v1842_v46 = vadd.f32 %v1841_v21, %v1759_v52 }
 0x7b4   :  { %3021 = vtanh.f32 %v1842_v46 }
 0x7ba   :  { %v3022_v37 = vpop.eup %3021 }
 0x7bb   :  { %v1845_v3 = vmul.f32 %v3022_v37, %v1844_v45 }
 0x7bd   :  { %v1847_v56 = vadd.f32 %v1846_v29, %v1845_v3  ;;  %v1851_v29 = vld [vmem:[#allocation2 + $0x2c] sm:$0xf] }
 0x7bf   :  { %v3981_v62 = vsel %vm561_vm3, %v1847_v56, %v3946_v61 }
 0x7c0   :  { %v1855_v44 = vpack.c.bf16 %v3981_v62, %v3981_v62 }
 0x7c2   :  { %1864 = vmatmul.bf16.vlgmr.msrb.gmra.mxu3 %v1855_v44  ;;  %1877 = vmatmul.bf16.vlgmr.msrb.gmra.mxu0 %v1855_v44 }
 0x7c3   :  { %1890 = vmatmul.bf16.vlgmr.msrb.gmra.mxu1 %v1855_v44  ;;  %2072 = vmatpush.bf16.msrb.mxu3 %v3756_v55 }
 0x7c4   :  { %2141 = vmatpush.bf16.msrb.mxu0 %v3637_v8  ;;  %2154 = vmatpush.bf16.msrb.mxu1 %v3695_v5 }
 0x7c7   :  { %2073 = vmatpush.bf16.msrb.mxu3 %v3768_v16 }
 0x7c8   :  { %2142 = vmatpush.bf16.msrb.mxu0 %v3640_v17  ;;  %2155 = vmatpush.bf16.msrb.mxu1 %v3699_v19 }
 0x7cb   :  { %2074 = vmatpush.bf16.msrb.mxu3 %v3776_v51 }
 0x7cc   :  { %2143 = vmatpush.bf16.msrb.mxu0 %v3645_v25  ;;  %2156 = vmatpush.bf16.msrb.mxu1 %v3704_v35 }
 0x7cf   :  { %2075 = vmatpush.bf16.msrb.mxu3 %v3787_v38 }
 0x7d0   :  { %2144 = vmatpush.bf16.msrb.mxu0 %v3648_v63  ;;  %2157 = vmatpush.bf16.msrb.mxu1 %v3709_v31 }
 0x7d3   :  { %2076 = vmatpush.bf16.msrb.mxu3 %v3800_v47 }
 0x7d4   :  { %2145 = vmatpush.bf16.msrb.mxu0 %v3651_v14  ;;  %2158 = vmatpush.bf16.msrb.mxu1 %v3714_v50 }
 0x7d7   :  { %2077 = vmatpush.bf16.msrb.mxu3 %v3813_v58 }
 0x7d8   :  { %2146 = vmatpush.bf16.msrb.mxu0 %v3654_v26  ;;  %2159 = vmatpush.bf16.msrb.mxu1 %v3722_v12 }
 0x7db   :  { %2078 = vmatpush.bf16.msrb.mxu3 %v3823_v53 }
 0x7dc   :  { %2147 = vmatpush.bf16.msrb.mxu0 %v3659_v9  ;;  %2160 = vmatpush.bf16.msrb.mxu1 %v3727_v15 }
 0x7df   :  { %2079 = vmatpush.bf16.msrb.mxu3 %v3830_v42 }
 0x7e0   :  { %2148 = vmatpush.bf16.msrb.mxu0 %v3666_v39  ;;  %2161 = vmatpush.bf16.msrb.mxu1 %v3732_v24 }
 0x83f   :  { %v1878_v61 = vpop.f32.mrf.mxu0 }
 0x840   :  { %v1915_v32 = vadd.f32 %v1878_v61, %v1853_v13  ;;  %v1891_v36 = vpop.f32.mrf.mxu1 }
 0x841   :  { %v1935_v44 = vadd.f32 %v3900_v41, %v1891_v36 }
 0x842   :  { %v2772_v60 = vmul.f32 -1.442695, %v1915_v32 }
 0x844   :  { %3023 = vpow2.f32 %v2772_v60 }
 0x845   :  { %v1865_v49 = vpop.f32.mrf.mxu3 }
 0x846   :  { %v1895_v2 = vadd.f32 %v1865_v49, %v1852_v43  ;;  %v1854_v43 = vunpack.c.l.bf16 %v1851_v29 }
 0x847   :  { %v1880_v0 = vpop.f32.mrf.mxu0 }
 0x848   :  { %v2771_v40 = vmul.f32 -1.442695, %v1895_v2  ;;  %v1893_v28 = vpop.f32.mrf.mxu1 }
 0x84a   :  { %v3024_v4 = vpop.eup %3023  ;;  %3025 = vpow2.f32 %v2771_v40 }
 0x84b   :  { %v1919_v57 = vadd.f32 1.0, %v3024_v4 }
 0x84d   :  { %v1867_v59 = vpop.f32.mrf.mxu3  ;;  %3027 = vrcp.f32 %v1919_v57  ;;  %v1931_v60 = vand.u32 2147483648, %v1919_v57  ;;  %vm1925_vm12 = vweird.f32 %v1919_v57  ;;  %v1929_v2 = vand.u32 2147483647, %v1919_v57 }
 0x84f   :  { %v1932_v28 = vor.u32 1.1754944e-38, %v1931_v60  ;;  %vm1930_vm2 = vcmp.eq.f32.partialorder %v1929_v2, 8.507059e+37 }
 0x850   :  { %v3026_v34 = vpop.eup %3025 }
 0x851   :  { %v1899_v33 = vadd.f32 1.0, %v3026_v34 }
 0x853   :  { %3029 = vrcp.f32 %v1899_v33  ;;  %v3028_v52 = vpop.eup %3027  ;;  %v1911_v18 = vand.u32 2147483648, %v1899_v33  ;;  %v1909_v45 = vand.u32 2147483647, %v1899_v33  ;;  %vm1905_vm7 = vweird.f32 %v1899_v33 }
 0x854   :  { %v1921_v21 = vmul.f32 %v3028_v52, %v1919_v57  ;;  %vm1926_vm8 = vweird.f32 %v3028_v52 }
 0x855   :  { %v1912_v56 = vor.u32 1.1754944e-38, %v1911_v18  ;;  %vm1910_vm11 = vcmp.eq.f32.partialorder %v1909_v45, 8.507059e+37  ;;  %vm1927_vm0 = vmor %vm1925_vm12, %vm1926_vm8 }
 0x856   :  { %v1922_v7 = vsub.f32 1.0, %v1921_v21 }
 0x858   :  { %v1923_v37 = vmul.f32 %v3028_v52, %v1922_v7 }
 0x859   :  { %v3030_v27 = vpop.eup %3029 }
 0x85a   :  { %v1901_v46 = vmul.f32 %v3030_v27, %v1899_v33  ;;  %vm1906_vm3 = vweird.f32 %v3030_v27  ;;  %v1924_v61 = vadd.f32 %v3028_v52, %v1923_v37 }
 0x85b   :  { %vm1907_vm15 = vmor %vm1905_vm7, %vm1906_vm3 }
 0x85c   :  { %v1902_v11 = vsub.f32 1.0, %v1901_v46  ;;  %v1928_v40 = vsel %vm1927_vm0, %v3028_v52, %v1924_v61 }
 0x85d   :  { %v1933_v4 = vsel %vm1930_vm2, %v1932_v28, %v1928_v40 }
 0x85e   :  { %v1903_v30 = vmul.f32 %v3030_v27, %v1902_v11  ;;  %v1939_v59 = vsub.f32 1.0, %v1933_v4  ;;  %v1941_v36 = vmul.f32 %v1933_v4, %v3981_v62 }
 0x860   :  { %v1904_v3 = vadd.f32 %v3030_v27, %v1903_v30 }
 0x862   :  { %v1908_v13 = vsel %vm1907_vm15, %v3030_v27, %v1904_v3  ;;  %v1946_v3 = vld [vmem:[#allocation2 + $0x38] sm:$0xf] }
 0x863   :  { %v1913_v32 = vsel %vm1910_vm11, %v1912_v56, %v1908_v13 }
 0x864   :  { %v1936_v49 = vmul.f32 %v1935_v44, %v1913_v32  ;;  %v1949_v32 = vunpack.c.l.bf16 %v1946_v3 }
 0x866   :  { %v1937_v0 = vadd.f32 %v1936_v49, %v1854_v43 }
 0x868   :  { %3031 = vtanh.f32 %v1937_v0 }
 0x86e   :  { %v3032_v34 = vpop.eup %3031 }
 0x86f   :  { %v1940_v33 = vmul.f32 %v3032_v34, %v1939_v59 }
 0x871   :  { %v1942_v21 = vadd.f32 %v1941_v36, %v1940_v33 }
 0x873   :  { %v4016_v27 = vsel %vm664_vm1, %v1942_v21, %v3981_v62 }
 0x874   :  { %v1950_v57 = vpack.c.bf16 %v4016_v27, %v4016_v27 }
 0x876   :  { %1959 = vmatmul.bf16.vlgmr.msrb.gmra.mxu2 %v1950_v57  ;;  %1972 = vmatmul.bf16.vlgmr.msra.gmra.mxu3 %v1950_v57 }
 0x877   :  { %1985 = vmatmul.bf16.vlgmr.msra.gmra.mxu0 %v1950_v57  ;;  %2167 = vmatpush.bf16.msrb.mxu2 %v3756_v55 }
 0x878   :  { %2236 = vmatpush.bf16.msra.mxu3 %v3637_v8  ;;  %2249 = vmatpush.bf16.msra.mxu0 %v3695_v5  ;;  %v1947_v8 = vunpack.c.l.bf16 %v3860_v23 }
 0x87b   :  { %2168 = vmatpush.bf16.msrb.mxu2 %v3768_v16 }
 0x87c   :  { %2237 = vmatpush.bf16.msra.mxu3 %v3640_v17  ;;  %2250 = vmatpush.bf16.msra.mxu0 %v3699_v19  ;;  %v1948_v17 = vunpack.c.h.bf16 %v3860_v23 }
 0x87f   :  { %2169 = vmatpush.bf16.msrb.mxu2 %v3776_v51 }
 0x880   :  { %2238 = vmatpush.bf16.msra.mxu3 %v3645_v25  ;;  %2251 = vmatpush.bf16.msra.mxu0 %v3704_v35 }
 0x883   :  { %2170 = vmatpush.bf16.msrb.mxu2 %v3787_v38 }
 0x884   :  { %2239 = vmatpush.bf16.msra.mxu3 %v3648_v63  ;;  %2252 = vmatpush.bf16.msra.mxu0 %v3709_v31 }
 0x887   :  { %2171 = vmatpush.bf16.msrb.mxu2 %v3800_v47 }
 0x888   :  { %2240 = vmatpush.bf16.msra.mxu3 %v3651_v14  ;;  %2253 = vmatpush.bf16.msra.mxu0 %v3714_v50 }
 0x88b   :  { %2172 = vmatpush.bf16.msrb.mxu2 %v3813_v58 }
 0x88c   :  { %2241 = vmatpush.bf16.msra.mxu3 %v3654_v26  ;;  %2254 = vmatpush.bf16.msra.mxu0 %v3722_v12 }
 0x88f   :  { %2173 = vmatpush.bf16.msrb.mxu2 %v3823_v53 }
 0x890   :  { %2242 = vmatpush.bf16.msra.mxu3 %v3659_v9  ;;  %2255 = vmatpush.bf16.msra.mxu0 %v3727_v15 }
 0x893   :  { %2174 = vmatpush.bf16.msrb.mxu2 %v3830_v42 }
 0x894   :  { %2243 = vmatpush.bf16.msra.mxu3 %v3666_v39  ;;  %2256 = vmatpush.bf16.msra.mxu0 %v3732_v24 }
 0x8f4   :  { %v1986_v6 = vpop.f32.mrf.mxu0 }
 0x8f5   :  { %v2030_v56 = vadd.f32 %v3900_v41, %v1986_v6 }
 0x8f9   :  { %v1960_v25 = vpop.f32.mrf.mxu2  ;;  %v1973_v63 = vpop.f32.mrf.mxu3 }
 0x8fa   :  { %v1990_v14 = vadd.f32 %v1960_v25, %v1947_v8  ;;  %v2010_v26 = vadd.f32 %v1973_v63, %v1948_v17 }
 0x8fc   :  { %v2773_v5 = vmul.f32 -1.442695, %v1990_v14  ;;  %v2774_v19 = vmul.f32 -1.442695, %v2010_v26  ;;  %v1988_v9 = vpop.f32.mrf.mxu0 }
 0x8fe   :  { %3033 = vpow2.f32 %v2773_v5 }
 0x8ff   :  { %3035 = vpow2.f32 %v2774_v19 }
 0x901   :  { %v1962_v35 = vpop.f32.mrf.mxu2  ;;  %v1975_v31 = vpop.f32.mrf.mxu3 }
 0x904   :  { %v3034_v50 = vpop.eup %3033 }
 0x905   :  { %v3036_v39 = vpop.eup %3035  ;;  %v1994_v12 = vadd.f32 1.0, %v3034_v50 }
 0x906   :  { %v2014_v15 = vadd.f32 1.0, %v3036_v39  ;;  %v2041_v39 = vld [vmem:[#allocation2 + $0x44] sm:$0xf] }
 0x907   :  { %3037 = vrcp.f32 %v1994_v12  ;;  %v2006_v7 = vand.u32 2147483648, %v1994_v12  ;;  %v2004_v30 = vand.u32 2147483647, %v1994_v12  ;;  %vm2000_vm4 = vweird.f32 %v1994_v12 }
 0x908   :  { %3039 = vrcp.f32 %v2014_v15  ;;  %v2026_v43 = vand.u32 2147483648, %v2014_v15  ;;  %vm2020_vm7 = vweird.f32 %v2014_v15  ;;  %v2024_v49 = vand.u32 2147483647, %v2014_v15 }
 0x909   :  { %v2007_v29 = vor.u32 1.1754944e-38, %v2006_v7  ;;  %vm2005_vm6 = vcmp.eq.f32.partialorder %v2004_v30, 8.507059e+37 }
 0x90a   :  { %v2027_v40 = vor.u32 1.1754944e-38, %v2026_v43  ;;  %vm2025_vm11 = vcmp.eq.f32.partialorder %v2024_v49, 8.507059e+37 }
 0x90d   :  { %v3038_v24 = vpop.eup %3037 }
 0x90e   :  { %v3040_v62 = vpop.eup %3039  ;;  %v1996_v23 = vmul.f32 %v3038_v24, %v1994_v12  ;;  %vm2001_vm1 = vweird.f32 %v3038_v24 }
 0x90f   :  { %v2016_v52 = vmul.f32 %v3040_v62, %v2014_v15  ;;  %vm2002_vm5 = vmor %vm2000_vm4, %vm2001_vm1  ;;  %vm2021_vm3 = vweird.f32 %v3040_v62 }
 0x910   :  { %v1997_v46 = vsub.f32 1.0, %v1996_v23  ;;  %vm2022_vm15 = vmor %vm2020_vm7, %vm2021_vm3 }
 0x911   :  { %v2017_v11 = vsub.f32 1.0, %v2016_v52  ;;  %v2044_v52 = vunpack.c.l.bf16 %v2041_v39 }
 0x912   :  { %v1998_v18 = vmul.f32 %v3038_v24, %v1997_v46 }
 0x913   :  { %v2018_v45 = vmul.f32 %v3040_v62, %v2017_v11 }
 0x914   :  { %v1999_v37 = vadd.f32 %v3038_v24, %v1998_v18 }
 0x915   :  { %v2019_v61 = vadd.f32 %v3040_v62, %v2018_v45 }
 0x916   :  { %v2003_v44 = vsel %vm2002_vm5, %v3038_v24, %v1999_v37 }
 0x917   :  { %v2008_v13 = vsel %vm2005_vm6, %v2007_v29, %v2003_v44  ;;  %v2023_v0 = vsel %vm2022_vm15, %v3040_v62, %v2019_v61 }
 0x918   :  { %v2031_v60 = vmul.f32 %v2030_v56, %v2008_v13  ;;  %v2028_v28 = vsel %vm2025_vm11, %v2027_v40, %v2023_v0  ;;  %v2138_v0 = vunpack.c.h.bf16 %v3892_v54 }
 0x919   :  { %v2034_v4 = vsub.f32 1.0, %v2028_v28  ;;  %v2036_v34 = vmul.f32 %v2028_v28, %v4016_v27 }
 0x91a   :  { %v2032_v2 = vadd.f32 %v2031_v60, %v1949_v32 }
 0x91c   :  { %3041 = vtanh.f32 %v2032_v2  ;;  %v2137_v2 = vunpack.c.l.bf16 %v3892_v54 }
 0x922   :  { %v3042_v59 = vpop.eup %3041 }
 0x923   :  { %v2035_v36 = vmul.f32 %v3042_v59, %v2034_v4 }
 0x925   :  { %v2037_v33 = vadd.f32 %v2036_v34, %v2035_v36 }
 0x927   :  { %v4051_v21 = vsel %vm767_vm14, %v2037_v33, %v4016_v27 }
 0x928   :  { %v2045_v57 = vpack.c.bf16 %v4051_v21, %v4051_v21 }
 0x92a   :  { %2054 = vmatmul.bf16.vlgmr.msra.gmra.mxu1 %v2045_v57  ;;  %2067 = vmatmul.bf16.vlgmr.msra.gmra.mxu2 %v2045_v57 }
 0x92b   :  { %2080 = vmatmul.bf16.vlgmr.msrb.gmra.mxu3 %v2045_v57  ;;  %2262 = vmatpush.bf16.msra.mxu1 %v3756_v55  ;;  %v2043_v55 = vunpack.c.h.bf16 %v3868_v10 }
 0x92f   :  { %2263 = vmatpush.bf16.msra.mxu1 %v3768_v16 }
 0x933   :  { %2264 = vmatpush.bf16.msra.mxu1 %v3776_v51 }
 0x937   :  { %2265 = vmatpush.bf16.msra.mxu1 %v3787_v38 }
 0x93b   :  { %2266 = vmatpush.bf16.msra.mxu1 %v3800_v47 }
 0x93f   :  { %2267 = vmatpush.bf16.msra.mxu1 %v3813_v58 }
 0x943   :  { %2268 = vmatpush.bf16.msra.mxu1 %v3823_v53 }
 0x947   :  { %2269 = vmatpush.bf16.msra.mxu1 %v3830_v42 }
 0x9a7   :  { %v2055_v27 = vpop.f32.mrf.mxu1 }
 0x9a8   :  { %v2085_v6 = vadd.f32 %v2055_v27, %v2042_v1 }
 0x9aa   :  { %v2775_v8 = vmul.f32 -1.442695, %v2085_v6 }
 0x9ac   :  { %3043 = vpow2.f32 %v2775_v8 }
 0x9ad   :  { %v2068_v16 = vpop.f32.mrf.mxu2 }
 0x9ae   :  { %v2105_v51 = vadd.f32 %v2068_v16, %v2043_v55  ;;  %v2081_v17 = vpop.f32.mrf.mxu3 }
 0x9af   :  { %v2057_v38 = vpop.f32.mrf.mxu1  ;;  %v2125_v23 = vadd.f32 %v3900_v41, %v2081_v17 }
 0x9b0   :  { %v2776_v25 = vmul.f32 -1.442695, %v2105_v51 }
 0x9b2   :  { %v3044_v47 = vpop.eup %3043  ;;  %3045 = vpow2.f32 %v2776_v25 }
 0x9b3   :  { %v2089_v58 = vadd.f32 1.0, %v3044_v47 }
 0x9b5   :  { %3047 = vrcp.f32 %v2089_v58  ;;  %v2070_v53 = vpop.f32.mrf.mxu2  ;;  %v2101_v9 = vand.u32 2147483648, %v2089_v58  ;;  %v2099_v10 = vand.u32 2147483647, %v2089_v58  ;;  %vm2095_vm8 = vweird.f32 %v2089_v58 }
 0x9b6   :  { %v2083_v63 = vpop.f32.mrf.mxu3 }
 0x9b7   :  { %v2102_v15 = vor.u32 1.1754944e-38, %v2101_v9  ;;  %vm2100_vm0 = vcmp.eq.f32.partialorder %v2099_v10, 8.507059e+37 }
 0x9b8   :  { %v3046_v42 = vpop.eup %3045 }
 0x9b9   :  { %v2109_v14 = vadd.f32 1.0, %v3046_v42  ;;  %v2136_v42 = vld [vmem:[#allocation2 + $0x50] sm:$0xf] }
 0x9ba   :  { %v2139_v10 = vunpack.c.l.bf16 %v2136_v42 }
 0x9bb   :  { %v3048_v26 = vpop.eup %3047  ;;  %3049 = vrcp.f32 %v2109_v14  ;;  %v2121_v11 = vand.u32 2147483648, %v2109_v14  ;;  %v2119_v30 = vand.u32 2147483647, %v2109_v14  ;;  %vm2115_vm1 = vweird.f32 %v2109_v14 }
 0x9bc   :  { %v2091_v5 = vmul.f32 %v3048_v26, %v2089_v58  ;;  %vm2096_vm14 = vweird.f32 %v3048_v26 }
 0x9bd   :  { %vm2097_vm12 = vmor %vm2095_vm8, %vm2096_vm14  ;;  %v2122_v3 = vor.u32 1.1754944e-38, %v2121_v11  ;;  %vm2120_vm5 = vcmp.eq.f32.partialorder %v2119_v30, 8.507059e+37  ;;  %v2230_v30 = vld [vmem:[#allocation2 + $0x54] sm:$0xff] }
 0x9be   :  { %v2092_v19 = vsub.f32 1.0, %v2091_v5 }
 0x9c0   :  { %v2093_v35 = vmul.f32 %v3048_v26, %v2092_v19 }
 0x9c1   :  { %v3050_v31 = vpop.eup %3049 }
 0x9c2   :  { %v2111_v50 = vmul.f32 %v3050_v31, %v2109_v14  ;;  %v2094_v12 = vadd.f32 %v3048_v26, %v2093_v35  ;;  %vm2116_vm2 = vweird.f32 %v3050_v31 }
 0x9c3   :  { %vm2117_vm4 = vmor %vm2115_vm1, %vm2116_vm2 }
 0x9c4   :  { %v2112_v24 = vsub.f32 1.0, %v2111_v50  ;;  %v2098_v62 = vsel %vm2097_vm12, %v3048_v26, %v2094_v12 }
 0x9c5   :  { %v2103_v46 = vsel %vm2100_vm0, %v2102_v15, %v2098_v62 }
 0x9c6   :  { %v2113_v7 = vmul.f32 %v3050_v31, %v2112_v24  ;;  %v2126_v18 = vmul.f32 %v2125_v23, %v2103_v46 }
 0x9c8   :  { %v2114_v45 = vadd.f32 %v3050_v31, %v2113_v7  ;;  %v2127_v37 = vadd.f32 %v2126_v18, %v2044_v52  ;;  %v2896_v18 = vld [vmem:[#allocation10 + $0x38] sm:$0xff] }
 0x9c9   :  { %2393 = vmatpush.bf16.msra.mxu2 %v2896_v18 }
 0x9ca   :  { %v2118_v29 = vsel %vm2117_vm4, %v3050_v31, %v2114_v45  ;;  %3051 = vtanh.f32 %v2127_v37  ;;  %v2895_v45 = vld [vmem:[#allocation10 + $0x30] sm:$0xff]  ;;  %v2233_v37 = vunpack.c.h.bf16 %v2230_v30 }
 0x9cb   :  { %v2123_v56 = vsel %vm2120_vm5, %v2122_v3, %v2118_v29  ;;  %v2894_v29 = vld [vmem:[#allocation10 + $0x28] sm:$0xff] }
 0x9cc   :  { %v2129_v44 = vsub.f32 1.0, %v2123_v56  ;;  %v2131_v32 = vmul.f32 %v2123_v56, %v4051_v21 }
 0x9cd   :  { %2394 = vmatpush.bf16.msra.mxu2 %v2895_v45 }
 0x9d0   :  { %v3052_v13 = vpop.eup %3051 }
 0x9d1   :  { %v2130_v61 = vmul.f32 %v3052_v13, %v2129_v44  ;;  %2395 = vmatpush.bf16.msra.mxu2 %v2894_v29  ;;  %v2893_v13 = vld [vmem:[#allocation10 + $0x20] sm:$0xff] }
 0x9d3   :  { %v2132_v60 = vadd.f32 %v2131_v32, %v2130_v61  ;;  %v2232_v61 = vunpack.c.l.bf16 %v2230_v30 }
 0x9d5   :  { %v4070_v43 = vsel %vm870_vm10, %v2132_v60, %v4051_v21  ;;  %2396 = vmatpush.bf16.msra.mxu2 %v2893_v13 }
 0x9d6   :  { %v2140_v49 = vpack.c.bf16 %v4070_v43, %v4070_v43 }
 0x9d8   :  { %2149 = vmatmul.bf16.vlgmr.msrb.gmra.mxu0 %v2140_v49  ;;  %2162 = vmatmul.bf16.vlgmr.msrb.gmra.mxu1 %v2140_v49 }
 0x9d9   :  { %2175 = vmatmul.bf16.vlgmr.msrb.gmra.mxu2 %v2140_v49  ;;  %v2892_v49 = vld [vmem:[#allocation10 + $0x18] sm:$0xff] }
 0x9da   :  { %2397 = vmatpush.bf16.msra.mxu2 %v2892_v49 }
 0xa55   :  { %v2150_v40 = vpop.f32.mrf.mxu0  ;;  %v2163_v28 = vpop.f32.mrf.mxu1 }
 0xa56   :  { %v2180_v4 = vadd.f32 %v2150_v40, %v2137_v2  ;;  %v2200_v59 = vadd.f32 %v2163_v28, %v2138_v0  ;;  %v2891_v40 = vld [vmem:[#allocation10 + $0x10] sm:$0xff] }
 0xa57   :  { %2398 = vmatpush.bf16.msra.mxu2 %v2891_v40 }
 0xa58   :  { %v2777_v34 = vmul.f32 -1.442695, %v2180_v4  ;;  %v2778_v36 = vmul.f32 -1.442695, %v2200_v59 }
 0xa5a   :  { %3053 = vpow2.f32 %v2777_v34  ;;  %v2890_v34 = vld [vmem:[#allocation10 + $0x8] sm:$0xff] }
 0xa5b   :  { %3055 = vpow2.f32 %v2778_v36  ;;  %2399 = vmatpush.bf16.msra.mxu2 %v2890_v34 }
 0xa5c   :  { %v2176_v22 = vpop.f32.mrf.mxu2 }
 0xa5d   :  { %v2152_v33 = vpop.f32.mrf.mxu0  ;;  %v2165_v21 = vpop.f32.mrf.mxu1  ;;  %v2220_v5 = vadd.f32 %v3900_v41, %v2176_v22 }
 0xa5e   :  { %v2889_v33 = vld [vmem:[#allocation10] sm:$0xff] }
 0xa5f   :  { %2400 = vmatpush.bf16.msra.mxu2 %v2889_v33 }
 0xa60   :  { %v3054_v57 = vpop.eup %3053 }
 0xa61   :  { %v3056_v1 = vpop.eup %3055  ;;  %v2184_v27 = vadd.f32 1.0, %v3054_v57 }
 0xa62   :  { %v2204_v6 = vadd.f32 1.0, %v3056_v1 }
 0xa63   :  { %3057 = vrcp.f32 %v2184_v27  ;;  %v2196_v25 = vand.u32 2147483648, %v2184_v27  ;;  %v2194_v58 = vand.u32 2147483647, %v2184_v27  ;;  %vm2190_vm6 = vweird.f32 %v2184_v27 }
 0xa64   :  { %3059 = vrcp.f32 %v2204_v6  ;;  %v2178_v8 = vpop.f32.mrf.mxu2  ;;  %v2216_v35 = vand.u32 2147483648, %v2204_v6  ;;  %vm2210_vm11 = vweird.f32 %v2204_v6  ;;  %v2214_v50 = vand.u32 2147483647, %v2204_v6 }
 0xa65   :  { %v2197_v14 = vor.u32 1.1754944e-38, %v2196_v25  ;;  %vm2195_vm7 = vcmp.eq.f32.partialorder %v2194_v58, 8.507059e+37 }
 0xa66   :  { %v2217_v15 = vor.u32 1.1754944e-38, %v2216_v35  ;;  %vm2215_vm8 = vcmp.eq.f32.partialorder %v2214_v50, 8.507059e+37 }
 0xa69   :  { %v3058_v55 = vpop.eup %3057 }
 0xa6a   :  { %v3060_v54 = vpop.eup %3059  ;;  %v2186_v16 = vmul.f32 %v3058_v55, %v2184_v27  ;;  %vm2191_vm10 = vweird.f32 %v3058_v55 }
 0xa6b   :  { %v2206_v51 = vmul.f32 %v3060_v54, %v2204_v6  ;;  %vm2192_vm3 = vmor %vm2190_vm6, %vm2191_vm10  ;;  %vm2211_vm15 = vweird.f32 %v3060_v54 }
 0xa6c   :  { %v2187_v17 = vsub.f32 1.0, %v2186_v16  ;;  %vm2212_vm14 = vmor %vm2210_vm11, %vm2211_vm15 }
 0xa6d   :  { %v2207_v38 = vsub.f32 1.0, %v2206_v51 }
 0xa6e   :  { %v2188_v47 = vmul.f32 %v3058_v55, %v2187_v17 }
 0xa6f   :  { %v2208_v53 = vmul.f32 %v3060_v54, %v2207_v38  ;;  %v2231_v38 = vld [vmem:[#allocation2 + $0x5c] sm:$0xf] }
 0xa70   :  { %v2189_v63 = vadd.f32 %v3058_v55, %v2188_v47  ;;  %v3074_v47 = vld [vmem:[%s4103_s5 + $0x1] ss:$0 sm:$0xff] }
 0xa71   :  { %v2209_v19 = vadd.f32 %v3060_v54, %v2208_v53 }
 0xa72   :  { %v2193_v26 = vsel %vm2192_vm3, %v3058_v55, %v2189_v63 }
 0xa73   :  { %v2198_v9 = vsel %vm2195_vm7, %v2197_v14, %v2193_v26  ;;  %v2213_v12 = vsel %vm2212_vm14, %v3060_v54, %v2209_v19  ;;  %v2234_v26 = vunpack.c.l.bf16 %v2231_v38 }
 0xa74   :  { %v2221_v31 = vmul.f32 %v2220_v5, %v2198_v9  ;;  %v2218_v24 = vsel %vm2215_vm8, %v2217_v15, %v2213_v12 }
 0xa75   :  { %v2224_v62 = vsub.f32 1.0, %v2218_v24  ;;  %v2226_v41 = vmul.f32 %v2218_v24, %v4070_v43 }
 0xa76   :  { %v2222_v39 = vadd.f32 %v2221_v31, %v2139_v10 }
 0xa78   :  { %3061 = vtanh.f32 %v2222_v39 }
 0xa7e   :  { %v3062_v23 = vpop.eup %3061 }
 0xa7f   :  { %v2225_v52 = vmul.f32 %v3062_v23, %v2224_v62 }
 0xa81   :  { %v2227_v46 = vadd.f32 %v2226_v41, %v2225_v52  ;;  %v2912_v52 = vld [vmem:[%s4105_s7] ss:$0 sm:$0xff] }
 0xa83   :  { %v4081_v7 = vsel %vm973_vm9, %v2227_v46, %v4070_v43 }
 0xa84   :  { %v2235_v11 = vpack.c.bf16 %v4081_v7, %v4081_v7 }
 0xa86   :  { %2244 = vmatmul.bf16.vlgmr.msra.gmra.mxu3 %v2235_v11  ;;  %2257 = vmatmul.bf16.vlgmr.msra.gmra.mxu0 %v2235_v11 }
 0xa87   :  { %2270 = vmatmul.bf16.vlgmr.msra.gmra.mxu1 %v2235_v11 }
 0xb03   :  { %v2258_v3 = vpop.f32.mrf.mxu0 }
 0xb04   :  { %v2295_v56 = vadd.f32 %v2258_v3, %v2233_v37  ;;  %v2271_v44 = vpop.f32.mrf.mxu1 }
 0xb05   :  { %v2315_v58 = vadd.f32 %v3074_v47, %v2271_v44 }
 0xb06   :  { %v2780_v48 = vmul.f32 -1.442695, %v2295_v56 }
 0xb08   :  { %3063 = vpow2.f32 %v2780_v48 }
 0xb09   :  { %v2245_v32 = vpop.f32.mrf.mxu3 }
 0xb0a   :  { %v2275_v60 = vadd.f32 %v2245_v32, %v2232_v61 }
 0xb0b   :  { %v2260_v43 = vpop.f32.mrf.mxu0 }
 0xb0c   :  { %v2779_v2 = vmul.f32 -1.442695, %v2275_v60  ;;  %v2273_v0 = vpop.f32.mrf.mxu1 }
 0xb0e   :  { %v3064_v28 = vpop.eup %3063  ;;  %3065 = vpow2.f32 %v2779_v2 }
 0xb0f   :  { %v2299_v4 = vadd.f32 1.0, %v3064_v28 }
 0xb11   :  { %v2247_v59 = vpop.f32.mrf.mxu3  ;;  %3067 = vrcp.f32 %v2299_v4  ;;  %v2311_v14 = vand.u32 2147483648, %v2299_v4  ;;  %vm2305_vm4 = vweird.f32 %v2299_v4  ;;  %v2309_v19 = vand.u32 2147483647, %v2299_v4 }
 0xb13   :  { %v2312_v10 = vor.u32 1.1754944e-38, %v2311_v14  ;;  %vm2310_vm10 = vcmp.eq.f32.partialorder %v2309_v19, 8.507059e+37 }
 0xb14   :  { %v3066_v36 = vpop.eup %3065 }
 0xb15   :  { %v2279_v22 = vadd.f32 1.0, %v3066_v36 }
 0xb17   :  { %3069 = vrcp.f32 %v2279_v22  ;;  %v3068_v21 = vpop.eup %3067  ;;  %v2291_v55 = vand.u32 2147483648, %v2279_v22  ;;  %v2289_v16 = vand.u32 2147483647, %v2279_v22  ;;  %vm2285_vm12 = vweird.f32 %v2279_v22 }
 0xb18   :  { %v2301_v57 = vmul.f32 %v3068_v21, %v2299_v4  ;;  %vm2306_vm1 = vweird.f32 %v3068_v21 }
 0xb19   :  { %v2292_v25 = vor.u32 1.1754944e-38, %v2291_v55  ;;  %vm2290_vm2 = vcmp.eq.f32.partialorder %v2289_v16, 8.507059e+37  ;;  %vm2307_vm5 = vmor %vm2305_vm4, %vm2306_vm1 }
 0xb1a   :  { %v2302_v6 = vsub.f32 1.0, %v2301_v57 }
 0xb1c   :  { %v2303_v51 = vmul.f32 %v3068_v21, %v2302_v6 }
 0xb1d   :  { %v3070_v1 = vpop.eup %3069 }
 0xb1e   :  { %v2281_v27 = vmul.f32 %v3070_v1, %v2279_v22  ;;  %vm2286_vm9 = vweird.f32 %v3070_v1  ;;  %v2304_v63 = vadd.f32 %v3068_v21, %v2303_v51 }
 0xb1f   :  { %vm2287_vm0 = vmor %vm2285_vm12, %vm2286_vm9 }
 0xb20   :  { %v2282_v8 = vsub.f32 1.0, %v2281_v27  ;;  %v2308_v35 = vsel %vm2307_vm5, %v3068_v21, %v2304_v63 }
 0xb21   :  { %v2313_v31 = vsel %vm2310_vm10, %v2312_v10, %v2308_v35 }
 0xb22   :  { %v2283_v54 = vmul.f32 %v3070_v1, %v2282_v8  ;;  %v2319_v50 = vsub.f32 1.0, %v2313_v31  ;;  %v2321_v15 = vmul.f32 %v2313_v31, %v4081_v7 }
 0xb24   :  { %v2284_v17 = vadd.f32 %v3070_v1, %v2283_v54 }
 0xb26   :  { %v2288_v53 = vsel %vm2287_vm0, %v3070_v1, %v2284_v17 }
 0xb27   :  { %v2293_v42 = vsel %vm2290_vm2, %v2292_v25, %v2288_v53 }
 0xb28   :  { %v2316_v5 = vmul.f32 %v2315_v58, %v2293_v42 }
 0xb2a   :  { %v2317_v9 = vadd.f32 %v2316_v5, %v2234_v26 }
 0xb2c   :  { %3071 = vtanh.f32 %v2317_v9 }
 0xb32   :  { %v3072_v39 = vpop.eup %3071 }
 0xb33   :  { %v2320_v12 = vmul.f32 %v3072_v39, %v2319_v50 }
 0xb35   :  { %v2322_v24 = vadd.f32 %v2321_v15, %v2320_v12 }
 0xb37   :  { %v2323_v62 = vsel %vm1076_vm13, %v2322_v24, %v4081_v7 }
 0xb38   :  { %v2324_v23 = vpack.c.bf16 %v2323_v62, %v2323_v62 }
 0xb3a   :  { %2401 = vmatmul.bf16.vlgmr.msra.gmra.mxu2 %v2324_v23 }
 0xbbd   :  { %v2402_v41 = vpop.f32.mrf.mxu2 }
 0xbbe   :  { %v2403_v46 = vadd.f32 %v2912_v52, %v2402_v41 }
 0xbc0   :  { %2406 = vst [vmem:[#allocation12] sm:$0xff] %v2403_v46 }
 0xbc1   :  { %2417 = dma.vmem_to_hbm [thread:$0]  %s2413_s15, 128, %s2415_s18, [#allocation6]  }
 0xbc5   :  { %v2404_v20 = vpop.f32.mrf.mxu2 }
 0xbc6   :  { %3201 = dma.done.wait [#allocation6], 128  }
 0xbc7   :  { %3202 = vsyncadd [#allocation6], 4294967168 }
 0xbc8   :  { %2422 = vsyncpa [#allocation5], 1 }
 0xbc9   :  { %2423 = vsyncpa [#allocation8], 1 }
 0xbca   :  { %2424 = vsyncpa [#allocation11], 1 }
 0xbcb   :  { %2425 = vsyncpa [#allocation6], 1 }

</bundles_post_ra>
